<compile_context>
chip_gen: v6e
topology: v6e:2x2x1
jax: 0.10.0
libtpu: 0.0.40
codegen_flags: <defaults>
</compile_context>

<pallas_src>
import functools

import jax
import jax.numpy as jnp
from jax import lax
from jax.experimental import pallas as pl
from jax.experimental.pallas import tpu as pltpu


def _mynet_head_kernel(x_ref, p_ref, w_ref, feat_ref, logits_ref, *, use_cos):
    # x_ref:      (bb, C*HW)   encoder feature-map block (NCHW flattened, lane-dense)
    # p_ref:      (C*HW, C)    block-diagonal avg-pool matrix (1/HW entries), resident
    # w_ref:      (C, NCpad)   fc weight: transposed, (cos-)normalized, * temperature
    # feat_ref:   (bb, C)      pooled feature (returned un-normalized, like PyTorch)
    # logits_ref: (bb, NCpad)  temperature-scaled logits (NC zero-padded to 128 mult)
    x = x_ref[...]                                                   # input dtype

    # adaptive_avg_pool2d(., 1).squeeze() as an MXU matmul (vextended slot, XLU-free):
    feat = jnp.dot(x, p_ref[...], preferred_element_type=jnp.float32)    # (bb, C) f32
    feat_ref[...] = feat.astype(feat_ref.dtype)

    raw = jnp.dot(feat.astype(w_ref.dtype), w_ref[...],
                  preferred_element_type=jnp.float32)                    # (bb, NCpad)

    if use_cos:
        # temperature * (f/||f||) . (w/||w||): the weight normalization and the
        # temperature are folded into w_ref by the wrapper; only the per-row feature
        # inverse norm is computed here (tiny (bb, 1) tile, EUP rsqrt).
        f_ss = jnp.sum(feat * feat, axis=-1, keepdims=True)              # (bb, 1)
        logits = raw * lax.rsqrt(jnp.maximum(f_ss, 1e-24))
    else:  # 'dot' mode (temperature already folded into w_ref)
        logits = raw
    logits_ref[...] = logits.astype(logits_ref.dtype)


def _round_up(v, m):
    return (v + m - 1) // m * m


def _vmem_budget_bytes():
    """Per-x-buffer VMEM budget, aware of the chip generation (v7x has only 64 MiB)."""
    try:
        cap = pltpu.get_tpu_info().vmem_capacity_bytes
    except Exception:  # info API unavailable -> assume the smallest (v7x) VMEM
        cap = 64 << 20
    return max(1 << 20, min(8 << 20, cap // 16))


def _choose_block_b(padded_B, row_bytes, budget_bytes):
    """Largest multiple-of-8 batch block under the VMEM budget, with >=2 grid steps
    whenever the (padded) batch allows, so 'parallel' shards across both v7x cores
    and the input DMA actually pipelines."""
    bb = max(8, min(padded_B, (budget_bytes // max(row_bytes, 1)) // 8 * 8))
    if padded_B >= 16:
        bb = min(bb, max(8, (padded_B // 2) // 8 * 8))
    while bb > 8 and padded_B % bb != 0:
        bb -= 8
    return max(8, bb)


def mynet_forward(x_nchw, fc_weight, *, temperature=16.0, mode="cos", block_b=None):
    """x_nchw: (B, C, H, W) encoder output feature map. fc_weight: (num_classes, C)."""
    B, C, H, W = x_nchw.shape
    NC = fc_weight.shape[0]
    HW = H * W
    CHW = C * HW
    use_cos = "cos" in mode
    compute_dtype = x_nchw.dtype

    # Free reshape (NCHW is contiguous): fully lane-dense slab, no HBM transpose.
    x = x_nchw.reshape(B, CHW)

    padded_B = _round_up(B, 8)
    if padded_B != B:
        x = jnp.pad(x, ((0, padded_B - B), (0, 0)))

    # fc weight -> (C, NCpad): transposed, per-class L2-normalized (cos mode) and
    # scaled by temperature, zero-padded so the logits block is lane-dense, and cast
    # once in the wrapper to the kernel's compute dtype (no per-step casts).
    NCpad = _round_up(NC, 128)
    w32 = fc_weight.astype(jnp.float32)
    if use_cos:
        w32 = w32 / jnp.maximum(
            jnp.sqrt(jnp.sum(w32 * w32, axis=-1, keepdims=True)), 1e-12)
    w_eff = (float(temperature) * w32).T                              # (C, NC)
    if NCpad != NC:
        w_eff = jnp.pad(w_eff, ((0, 0), (0, NCpad - NC)))
    w_eff = w_eff.astype(compute_dtype)

    # Block-diagonal average-pooling matrix: P[c*HW + hw, c] = 1/HW.
    pool = (jnp.repeat(jnp.eye(C, dtype=jnp.float32), HW, axis=0) / HW
            ).astype(compute_dtype)                                   # (C*HW, C)

    row_bytes = CHW * x.dtype.itemsize
    if block_b is None:
        block_b = _choose_block_b(padded_B, row_bytes, _vmem_budget_bytes())
    assert padded_B % block_b == 0, "block_b must divide the padded batch"
    grid = (padded_B // block_b,)

    # Scoped-VMEM request: double-buffered x + resident pool/weight + outputs, with
    # headroom, capped at 48 MiB (v7x physical VMEM is only 64 MiB).
    itemsize = jnp.dtype(compute_dtype).itemsize
    est = (2 * block_b * CHW * itemsize          # x (double-buffered)
           + 2 * CHW * C * itemsize              # pooling matrix (resident)
           + 2 * C * NCpad * itemsize            # weight (resident)
           + 4 * block_b * (C + NCpad) * 4)      # outputs (double-buffered, f32)
    vmem_limit = int(min(max(2 * est, 16 << 20), 48 << 20))

    kernel = functools.partial(_mynet_head_kernel, use_cos=use_cos)

    feature, logits = pl.pallas_call(
        kernel,
        out_shape=(
            jax.ShapeDtypeStruct((padded_B, C), jnp.float32),
            jax.ShapeDtypeStruct((padded_B, NCpad), jnp.float32),
        ),
        grid=grid,
        in_specs=[
            pl.BlockSpec((block_b, CHW), lambda i: (i, 0)),
            pl.BlockSpec((CHW, C), lambda i: (0, 0)),      # pooling matrix: resident
            pl.BlockSpec((C, NCpad), lambda i: (0, 0)),    # weight: resident
        ],
        out_specs=(
            pl.BlockSpec((block_b, C), lambda i: (i, 0)),
            pl.BlockSpec((block_b, NCpad), lambda i: (i, 0)),
        ),
        compiler_params=pltpu.CompilerParams(
            dimension_semantics=("parallel",),             # batch blocks independent
            vmem_limit_bytes=vmem_limit),
    )(x, pool, w_eff)

    return feature[:B], logits[:B, :NC]


def _reference(x_nchw, fc_weight, temperature, mode):
    feat = jnp.mean(x_nchw.astype(jnp.float32), axis=(2, 3))
    w = fc_weight.astype(jnp.float32)
    if "cos" in mode:
        fn = feat / jnp.maximum(jnp.linalg.norm(feat, axis=-1, keepdims=True), 1e-12)
        wn = w / jnp.maximum(jnp.linalg.norm(w, axis=-1, keepdims=True), 1e-12)
    else:
        fn, wn = feat, w
    return feat, temperature * (fn @ wn.T)


if __name__ == "__main__":
    # Small, module-consistent shapes: batch=16, num_features=128, spatial=8x8, classes=64.
    B, C, H, W = 16, 128, 8, 8
    NUM_CLASSES = 64
    TEMPERATURE = 16.0

    key = jax.random.PRNGKey(0)
    kx, kw = jax.random.split(key)
    # Encoder output feature map (stand-in for ResNet12(x)).
    x = jax.random.normal(kx, (B, C, H, W), dtype=jnp.float32)
    # fc: nn.Linear(num_features, num_classes, bias=False), init normal(mean=0, std=0.01).
    fc_weight = 0.01 * jax.random.normal(kw, (NUM_CLASSES, C), dtype=jnp.float32)

    ref_feat, ref_logits = _reference(x, fc_weight, TEMPERATURE, "cos")

    # Default path: auto block -> 2 batch blocks ("parallel" grid, both cores on v7x).
    feature, logits = mynet_forward(x, fc_weight, temperature=TEMPERATURE, mode="cos")
    jax.block_until_ready((feature, logits))
    assert feature.shape == (B, C) and logits.shape == (B, NUM_CLASSES)
    assert jnp.allclose(feature, ref_feat, atol=2e-3, rtol=2e-3)
    assert jnp.allclose(logits, ref_logits, atol=2e-2, rtol=2e-2)

    # Single-block path (whole batch in one grid step): same numerics.
    feature1, logits1 = mynet_forward(
        x, fc_weight, temperature=TEMPERATURE, mode="cos", block_b=16)
    jax.block_until_ready((feature1, logits1))
    assert jnp.allclose(feature1, ref_feat, atol=2e-3, rtol=2e-3)
    assert jnp.allclose(logits1, ref_logits, atol=2e-2, rtol=2e-2)

    # 'dot' mode path.
    ref_feat_d, ref_logits_d = _reference(x, fc_weight, TEMPERATURE, "dot")
    feat_d, logits_d = mynet_forward(x, fc_weight, temperature=TEMPERATURE, mode="dot")
    jax.block_until_ready((feat_d, logits_d))
    assert jnp.allclose(feat_d, ref_feat_d, atol=2e-3, rtol=2e-3)
    assert jnp.allclose(logits_d, ref_logits_d, atol=2e-2, rtol=2e-2)

    # Awkward batch (not a multiple of 8): exercised via zero-padding + slicing.
    B2 = 10
    ref_feat2, ref_logits2 = _reference(x[:B2], fc_weight, TEMPERATURE, "cos")
    feat2, logits2 = mynet_forward(x[:B2], fc_weight, temperature=TEMPERATURE, mode="cos")
    jax.block_until_ready((feat2, logits2))
    assert feat2.shape == (B2, C) and logits2.shape == (B2, NUM_CLASSES)
    assert jnp.allclose(feat2, ref_feat2, atol=2e-3, rtol=2e-3)
    assert jnp.allclose(logits2, ref_logits2, atol=2e-2, rtol=2e-2)

    print("KERNEL_OK")
</pallas_src>

<mosaic_0001>
module attributes {stable_mosaic.version = 11 : i64} {
  func.func @_mynet_head_kernel(%arg0: i32, %arg1: memref<8x8192xf32, #tpu.memory_space<vmem>>, %arg2: memref<8192x128xf32, #tpu.memory_space<vmem>>, %arg3: memref<128x128xf32, #tpu.memory_space<vmem>>, %arg4: memref<8x128xf32, #tpu.memory_space<vmem>>, %arg5: memref<8x128xf32, #tpu.memory_space<vmem>>) attributes {dimension_semantics = [#tpu.dimension_semantics<parallel>], iteration_bounds = array<i64: 2>, scalar_prefetch = 0 : i64, scratch_operands = 0 : i64, tpu.core_type = #tpu.core_type<tc>, window_params = [{transform_indices = @transform_0, window_bounds = array<i64: 8, 8192>}, {pipeline_mode = #tpu.pipeline_mode<synchronous>, transform_indices = @transform_1, window_bounds = array<i64: 8192, 128>}, {pipeline_mode = #tpu.pipeline_mode<synchronous>, transform_indices = @transform_2, window_bounds = array<i64: 128, 128>}, {transform_indices = @transform_3, window_bounds = array<i64: 8, 128>}, {transform_indices = @transform_4, window_bounds = array<i64: 8, 128>}]} {
    %c0 = arith.constant 0 : index
    %c0_0 = arith.constant 0 : index
    %0 = vector.load %arg1[%c0, %c0_0] : memref<8x8192xf32, #tpu.memory_space<vmem>>, vector<8x8192xf32>
    %c0_1 = arith.constant 0 : index
    %c0_2 = arith.constant 0 : index
    %1 = vector.load %arg2[%c0_1, %c0_2] : memref<8192x128xf32, #tpu.memory_space<vmem>>, vector<8192x128xf32>
    %cst = arith.constant dense<0.000000e+00> : vector<8x128xf32>
    %2 = tpu.matmul %0, %1, %cst {dimension_numbers = #tpu.dot_dimension_numbers<[1], [0], [0], [1], [0, 0, 1, 1], [], []>} : vector<8x8192xf32>, vector<8192x128xf32>, vector<8x128xf32> -> vector<8x128xf32>
    %c0_3 = arith.constant 0 : index
    %c0_4 = arith.constant 0 : index
    %3 = vector.load %arg4[%c0_3, %c0_4] : memref<8x128xf32, #tpu.memory_space<vmem>>, vector<8x128xf32>
    tpu.vector_store %arg4[%c0_3, %c0_4], %2 {strides = array<i32>} : memref<8x128xf32, #tpu.memory_space<vmem>>, vector<8x128xf32>,
    %c0_5 = arith.constant 0 : index
    %c0_6 = arith.constant 0 : index
    %4 = vector.load %arg3[%c0_5, %c0_6] : memref<128x128xf32, #tpu.memory_space<vmem>>, vector<128x128xf32>
    %cst_7 = arith.constant dense<0.000000e+00> : vector<8x128xf32>
    %5 = tpu.matmul %2, %4, %cst_7 {dimension_numbers = #tpu.dot_dimension_numbers<[1], [0], [0], [1], [0, 0, 1, 1], [], []>} : vector<8x128xf32>, vector<128x128xf32>, vector<8x128xf32> -> vector<8x128xf32>
    %6 = arith.mulf %2, %2 : vector<8x128xf32>
    %cst_8 = arith.constant dense<0.000000e+00> : vector<8xf32>
    %7 = vector.multi_reduction <add>, %6, %cst_8 [1] : vector<8x128xf32> to vector<8xf32>
    %8 = vector.shape_cast %7 : vector<8xf32> to vector<8x1xf32>
    %cst_9 = arith.constant 1.000000e-24 : f32
    %9 = vector.broadcast %cst_9 : f32 to vector<8x1xf32>
    %10 = arith.maximumf %8, %9 : vector<8x1xf32>
    %11 = math.rsqrt %10 : vector<8x1xf32>
    %12 = vector.broadcast %11 : vector<8x1xf32> to vector<8x128xf32>
    %13 = arith.mulf %5, %12 : vector<8x128xf32>
    %c0_10 = arith.constant 0 : index
    %c0_11 = arith.constant 0 : index
    %14 = vector.load %arg5[%c0_10, %c0_11] : memref<8x128xf32, #tpu.memory_space<vmem>>, vector<8x128xf32>
    tpu.vector_store %arg5[%c0_10, %c0_11], %13 {strides = array<i32>} : memref<8x128xf32, #tpu.memory_space<vmem>>, vector<8x128xf32>,
    return
  }
  func.func @transform_0(%arg0: i32) -> (i32, i32) {
    %c0_i32 = arith.constant 0 : i32
    %c0_i32_0 = arith.constant 0 : i32
    return %arg0, %c0_i32 : i32, i32
  }
  func.func @transform_1(%arg0: i32) -> (i32, i32) {
    %c0_i32 = arith.constant 0 : i32
    %c0_i32_0 = arith.constant 0 : i32
    %c0_i32_1 = arith.constant 0 : i32
    return %c0_i32, %c0_i32_0 : i32, i32
  }
  func.func @transform_2(%arg0: i32) -> (i32, i32) {
    %c0_i32 = arith.constant 0 : i32
    %c0_i32_0 = arith.constant 0 : i32
    %c0_i32_1 = arith.constant 0 : i32
    return %c0_i32, %c0_i32_0 : i32, i32
  }
  func.func @transform_3(%arg0: i32) -> (i32, i32) {
    %c0_i32 = arith.constant 0 : i32
    %c0_i32_0 = arith.constant 0 : i32
    return %arg0, %c0_i32 : i32, i32
  }
  func.func @transform_4(%arg0: i32) -> (i32, i32) {
    %c0_i32 = arith.constant 0 : i32
    %c0_i32_0 = arith.constant 0 : i32
    return %arg0, %c0_i32 : i32, i32
  }
}

</mosaic_0001>

<bundles_post_ra>
// kernel: tpu_custom_call.1
= control target key start
LH: loop header
LB: loop body
LE: loop exit
PB: predicated region body
PF: predicated region fallthrough
CT: control target
= control target key end

     0   :  { %10 = vsyncpa [#allocation3], 0  ;;  %s5576_s0 = inlined_call_operand.hbm [shape: f32[16,8192], index: 0, kind: input, shape index: {}]   ;;  %s5577_s1 = inlined_call_operand.hbm [shape: f32[8192,128], index: 1, kind: input, shape index: {}]   ;;  %s5578_s2 = inlined_call_operand.hbm [shape: f32[128,128], index: 2, kind: input, shape index: {}]   ;;  %s5579_s3 = inlined_call_operand.hbm [shape: f32[16,128], index: 3, kind: output, shape index: {0}]   ;;  %s5580_s4 = inlined_call_operand.hbm [shape: f32[16,128], index: 4, kind: output, shape index: {1}]  }
   0x1   :  { %12 = vsyncpa [#allocation3 + $0x1], 0 }
   0x2   :  { %13 = vsyncpa [#allocation6], 0 }
   0x3   :  { %14 = vsyncpa [#allocation4], 0 }
   0x4   :  { %16 = vsyncpa [#allocation4 + $0x1], 0 }
   0x5   :  { %17 = vsyncpa [#allocation10], 0 }
   0x6   :  { %19 = vsyncpa [#allocation10 + $0x1], 0  ;;  %s5314_s15 = smov 0   ;;  %s5316_s16 = smov 0  }
   0x7   :  { %s5318_s17 = smov 0   ;;  %s5320_s18 = smov 0  }
   0x8 LB: > { %s5335_s19 = sadd.s32 4294967295, %s5278_s18   ;;  %s3829_s20 = sadd.s32 4294967294, %s5278_s18   ;;  %s5278_s18 = sphi %s5320_s18, %s5602_s18   ;;  %s5274_s17 = sphi %s5318_s17, %s5601_s17   ;;  %s5270_s16 = sphi %s5316_s16, %s5600_s16   ;;  %s5266_s15 = sphi %s5314_s15, %s5599_s15  }
   0x9   : > { %p45_p0 = scmp.ne.s32.totalorder %s5270_s16, %s5266_s15  ;;  %p5581_p1 = scmp.eq.s32.totalorder %s5335_s19, 0 }
   0xa   : > { %p117_p3 = scmp.eq.s32.totalorder %s3829_s20, 1  ;;  %p3830_p5 = scmp.ge.s32.totalorder %s5278_s18, 1 }
   0xb   : > { %p5344_p4 = por %p5581_p1, %p45_p0  ;;  %p150_p7 = scmp.lt.s32.totalorder %s5278_s18, 3 }
   0xc   : > { %p5349_p6 = por %p117_p3, %p45_p0  ;;  %s5280_s24 = smov [#allocation5]  }
   0xd   : > { %s5585_s21 = scalar_select %p5344_p4, 1, 0 }
   0xe   : > { %s5586_s22 = scalar_select %p5349_p6, 1, 0 }
   0xf   : > { %p5354_p8 = pnand %p3830_p5, %p150_p7  ;;  %s162_s25 = sshll.u32 %s5280_s24, 4  ;;  %s163_s25 = int_to_ptr.vmem [resolvable:$true] %s162_s25 }
  0x10   : > { %s5281_s27 = smov [#allocation7]   ;;  %s5111_s29 = scalar_lea.vmem %s163_s25, 131072 }
  0x11   : > { %s5587_s23 = scalar_select %p5354_p8, 1, 0 }
  0x12   : > { %p5036_p9 = pneg %p5354_p8  ;;  %s175_s28 = sshll.u32 %s5281_s27, 4  ;;  %s176_s28 = int_to_ptr.vmem [resolvable:$true] %s175_s28 }
  0x13   : > { %p5112_p13 = scmp.ne.s32.totalorder %s163_s25, %s5111_s29  ;;  %p5119_p5 = scmp.lt.s32.totalorder %s163_s25, %s163_s25 }
  0x14   : > { %p5363_p11 = pnand %p5036_p9, %p5581_p1  ;;  %p5120_p7 = scmp.lt.s32.totalorder %s5111_s29, %s5111_s29 }
  0x16   : > { %p5102_p12 = pneg %p5363_p11  ;;  %p5121_p10 = por %p5120_p7, %p5119_p5 }
  0x18   : > { %p5114_p0 = pnand %p5112_p13, %p5102_p12 }
  0x1a   : > { %p5115_p3 = pneg %p5114_p0 }
  0x1c   : > { %p5122_p9 = pnand %p5121_p10, %p5115_p3 }
  0x1e   : > { %5125 = shalt.err (!%p5122_p9)
}
  0x1f   : > { %s5282_s30 = smov 128   ;;  %s5283_s5 = smov 8  }
  0x20   : > { %5039 = dma.hbm_to_vmem [thread:$0]  (!%p5363_p11), %s5577_s1, 131072, %s163_s25, [#allocation6], %s5282_s30, %s5282_s30, %s5283_s5  }
  0x21   : > { %s5137_s8 = scalar_lea.vmem %s176_s28, 2048  ;;  %p5145_p2 = scmp.lt.s32.totalorder %s176_s28, %s176_s28 }
  0x22   : > { %p5138_p1 = scmp.ne.s32.totalorder %s176_s28, %s5137_s8  ;;  %p5146_p6 = scmp.lt.s32.totalorder %s5137_s8, %s5137_s8 }
  0x24   : > { %p5140_p13 = pnand %p5138_p1, %p5102_p12  ;;  %p5147_p5 = por %p5146_p6, %p5145_p2 }
  0x26   : > { %p5141_p0 = pneg %p5140_p13 }
  0x28   : > { %p5148_p10 = pnand %p5147_p5, %p5141_p0 }
  0x2a   : > { %5151 = shalt.err (!%p5148_p10)
}
  0x2b   : > { %5042 = dma.hbm_to_vmem [thread:$0]  (!%p5363_p11), %s5578_s2, 2048, %s176_s28, [#allocation6], %s5282_s30, %s5282_s30, %s5283_s5  }
  0x2c   : > { %s5386_s11 = sadd.s32 1, %s5278_s18   ;;  %s32_s12 = sadd.s32 1, %s5274_s17 }
  0x2d   : > { %s29_s13 = ssub.s32 %s5278_s18, %s5386_s11  ;;  %p39_p1 = scmp.ne.s32.totalorder %s5274_s17, %s5270_s16 }
  0x2e   : > { %p30_p2 = scmp.eq.s32.totalorder %s29_s13, 0  ;;  %p40_p6 = scmp.eq.s32.totalorder %s5278_s18, 0 }
  0x2f   : > { %p5589_p12 = scmp.eq.s32.totalorder %s5335_s19, 1  ;;  %p5056_p7 = scmp.lt.s32.totalorder %s5278_s18, 2 }
  0x30   : > { %s5402_s20 = scalar_select %p30_p2, %s5274_s17, %s32_s12  }
  0x31   : > { %p5396_p3 = por %p5589_p12, %p39_p1  ;;  %p41_p9 = por %p40_p6, %p39_p1 }
  0x32   : > { %s189_s24 = sand.u32 1, %s5274_s17   ;;  %s3849_s26 = sshll.u32 %s5278_s18, 13 }
  0x33   : > { %s5590_s14 = scalar_select %p5396_p3, 1, 0 }
  0x34   : > { %s3834_s25 = sshll.u32 %s189_s24, 9  ;;  %s5409_s29 = scalar_lea.hbm %s5576_s0, %s3849_s26 }
  0x35   : > { %s193_s30 = scalar_lea.vmem [#allocation2], %s3834_s25  ;;  %p5411_p11 = pnand %p5056_p7, %p41_p9 }
  0x36   : > { %s201_s5 = sshll.u32 %s193_s30, 4  ;;  %s190_s7 = scalar_lea.sflag [#allocation3], %s189_s24  ;;  %s202_s5 = int_to_ptr.vmem [resolvable:$true] %s201_s5 }
  0x37   : > { %s5152_s8 = scalar_lea.hbm %s5409_s29, 8192  ;;  %p5154_p0 = pneg %p5411_p11 }
  0x38   : > { %p5153_p13 = scmp.ne.s32.totalorder %s5409_s29, %s5152_s8  ;;  %s5157_s12 = scalar_lea.hbm %s5576_s0, 16384 }
  0x39   : > { %p5158_p1 = scmp.lt.s32.totalorder %s5409_s29, %s5576_s0  ;;  %p5159_p2 = scmp.lt.s32.totalorder %s5157_s12, %s5152_s8 }
  0x3a   : > { %p5155_p5 = pnand %p5154_p0, %p5153_p13 }
  0x3b   : > { %p5160_p6 = por %p5159_p2, %p5158_p1 }
  0x3c   : > { %p5156_p10 = pneg %p5155_p5 }
  0x3e   : > { %p5161_p12 = pnand %p5160_p6, %p5156_p10 }
  0x40   : > { %5164 = shalt.err (!%p5161_p12)
}
  0x41   : > { %s5165_s26 = scalar_lea.vmem %s202_s5, 8192  ;;  %s5284_s24 = smov [#allocation2]  }
  0x42   : > { %p5166_p7 = scmp.ne.s32.totalorder %s202_s5, %s5165_s26  ;;  %s5170_s27 = sshll.u32 %s5284_s24, 4  ;;  %s5171_s27 = int_to_ptr.vmem [resolvable:$false] %s5170_s27 }
  0x43   : > { %s5172_s28 = scalar_lea.vmem %s5171_s27, 16384  ;;  %p5173_p13 = scmp.lt.s32.totalorder %s202_s5, %s5171_s27 }
  0x44   : > { %p5168_p9 = pnand %p5166_p7, %p5154_p0  ;;  %p5174_p5 = scmp.lt.s32.totalorder %s5172_s28, %s5165_s26 }
  0x46   : > { %p5169_p3 = pneg %p5168_p9  ;;  %p5175_p4 = por %p5174_p5, %p5173_p13 }
  0x48   : > { %p5176_p8 = pnand %p5175_p4, %p5169_p3 }
  0x4a   : > { %5179 = shalt.err (!%p5176_p8)
}
  0x4b   : > { %5046 = dma.hbm_to_vmem [thread:$0]  (!%p5411_p11), %s5409_s29, 8192, %s202_s5, %s190_s7  }
  0x4c   : > { %p5592_p10 = scmp.ne.s32.totalorder %s5587_s23, 0 }
  0x4d   : > { %s5432_s30 = sand.u32 (!%p5592_p10), 1, %s5270_s16   ;;  %p5593_p0 = scmp.ne.s32.totalorder (!%p5592_p10), %s5585_s21, 0 }
  0x4e   : > { %210 = sbr.rel (%p5592_p10) target bundleno = 1041 (0x411), region = 32  ;;  %s3838_s8 = sshll.u32 (!%p5592_p10), %s5432_s30, 9 }
  0x4f   : > { %s213_s9 = scalar_lea.sflag (!%p5592_p10), [#allocation3], %s5432_s30  ;;  %s5436_s10 = scalar_lea.vmem (!%p5592_p10), [#allocation2], %s3838_s8 }
  0x53   : > { %5249 = dma.done.wait (%p5593_p0), %s213_s9, 8192  }
  0x54   : > { %5251 = vsyncadd (%p5593_p0), %s213_s9, 4294959104  ;;  %p5594_p4 = scmp.eq.s32.totalorder %s5335_s19, 0 }
  0x56   : > { %5253 = dma.done.wait (%p5594_p4), [#allocation6], 133120   ;;  %p5595_p8 = pmov %p5594_p4 }
  0x57   : > { %v349_v0 = vld [vmem:[#allocation5 + $0xf8] sm:$0xff]  ;;  %v348_v4 = vld [vmem:[#allocation5 + $0xf0] sm:$0xff]  ;;  %v347_v8 = vld [vmem:[#allocation5 + $0xe8] sm:$0xff]  ;;  %vm5286_vm0 = vmmov 0   ;;  %s3841_s21 = sshll.u32 %s5432_s30, 3  ;;  %s3845_s29 = sshll.u32 %s5335_s19, 7 }
  0x58   : > { %5255 = vsyncadd (%p5595_p8), [#allocation6], 4294834176  ;;  %v381_v1 = vld [vmem:[#allocation5 + $0x1f8] sm:$0xff]  ;;  %3850 = vmatprep.subr.mxu0 %v349_v0  ;;  %v380_v5 = vld [vmem:[#allocation5 + $0x1f0] sm:$0xff]  ;;  %s246_s23 = scalar_lea.vmem [#allocation8], %s3841_s21  ;;  %s3693_s12 = scalar_lea.hbm %s5579_s3, %s3845_s29 }
  0x59   : > { %v333_v2 = vld [vmem:[#allocation5 + $0x78] sm:$0xff]  ;;  %3885 = vmatprep.subr.mxu1 %v381_v1  ;;  %v332_v6 = vld [vmem:[#allocation5 + $0x70] sm:$0xff]  ;;  %v379_v9 = vld [vmem:[#allocation5 + $0x1e8] sm:$0xff]  ;;  %s3695_s5 = sshll.u32 %s246_s23, 4  ;;  %s3677_s13 = scalar_lea.sflag [#allocation4], %s5432_s30  ;;  %s3696_s5 = int_to_ptr.vmem [resolvable:$true] %s3695_s5 }
  0x5a   : > { %v365_v3 = vld [vmem:[#allocation5 + $0x178] sm:$0xff]  ;;  %3851 = vmatpush3.msra.mxu0 %v333_v2  ;;  %v364_v7 = vld [vmem:[#allocation5 + $0x170] sm:$0xff]  ;;  %v331_v10 = vld [vmem:[#allocation5 + $0x68] sm:$0xff]  ;;  %s5180_s25 = scalar_lea.vmem %s3696_s5, 128  ;;  %p5596_p11 = scmp.ne.s32.totalorder %s5590_s14, 0 }
  0x5b   : > { %3886 = vmatpush3.msra.mxu1 %v365_v3  ;;  %3852 = vmatprep.subr.mxu0 %v348_v4  ;;  %v363_v11 = vld [vmem:[#allocation5 + $0x168] sm:$0xff]  ;;  %v346_v12 = vld [vmem:[#allocation5 + $0xe0] sm:$0xff]  ;;  %v345_v16 = vld [vmem:[#allocation5 + $0xd8] sm:$0xff]  ;;  %p5181_p3 = scmp.ne.s32.totalorder %s3696_s5, %s5180_s25  ;;  %s5287_s26 = smov [#allocation8]  }
  0x5c   : > { %3887 = vmatprep.subr.mxu1 %v380_v5  ;;  %3853 = vmatpush3.msra.mxu0 %v332_v6  ;;  %v378_v13 = vld [vmem:[#allocation5 + $0x1e0] sm:$0xff]  ;;  %v377_v17 = vld [vmem:[#allocation5 + $0x1d8] sm:$0xff]  ;;  %v344_v20 = vld [vmem:[#allocation5 + $0xd0] sm:$0xff]  ;;  %s5184_s24 = sshll.u32 %s5287_s26, 4  ;;  %s5185_s24 = int_to_ptr.vmem [resolvable:$false] %s5184_s24 }
  0x5d   : > { %3888 = vmatpush3.msra.mxu1 %v364_v7  ;;  %3854 = vmatprep.subr.mxu0 %v347_v8  ;;  %v330_v14 = vld [vmem:[#allocation5 + $0x60] sm:$0xff]  ;;  %v329_v18 = vld [vmem:[#allocation5 + $0x58] sm:$0xff]  ;;  %v376_v21 = vld [vmem:[#allocation5 + $0x1d0] sm:$0xff]  ;;  %p5182_p1 = pnand %p5181_p3, %p5596_p11  ;;  %s5186_s27 = scalar_lea.vmem %s5185_s24, 256 }
  0x5e   : > { %3889 = vmatprep.subr.mxu1 %v379_v9  ;;  %v362_v15 = vld [vmem:[#allocation5 + $0x160] sm:$0xff]  ;;  %3855 = vmatpush3.msra.mxu0 %v331_v10  ;;  %v361_v19 = vld [vmem:[#allocation5 + $0x158] sm:$0xff]  ;;  %v328_v22 = vld [vmem:[#allocation5 + $0x50] sm:$0xff]  ;;  %p5187_p6 = scmp.lt.s32.totalorder %s3696_s5, %s5185_s24  ;;  %p5188_p12 = scmp.lt.s32.totalorder %s5186_s27, %s5180_s25 }
  0x5f   : > { %3890 = vmatpush3.msra.mxu1 %v363_v11  ;;  %3856 = vmatprep.subr.mxu0 %v346_v12  ;;  %v360_v23 = vld [vmem:[#allocation5 + $0x150] sm:$0xff]  ;;  %v343_v24 = vld [vmem:[#allocation5 + $0xc8] sm:$0xff]  ;;  %v342_v28 = vld [vmem:[#allocation5 + $0xc0] sm:$0xff]  ;;  %p5183_p2 = pneg %p5182_p1 }
  0x60   : > { %3891 = vmatprep.subr.mxu1 %v378_v13  ;;  %3857 = vmatpush3.msra.mxu0 %v330_v14  ;;  %v375_v25 = vld [vmem:[#allocation5 + $0x1c8] sm:$0xff]  ;;  %v374_v29 = vld [vmem:[#allocation5 + $0x1c0] sm:$0xff]  ;;  %v341_v32 = vld [vmem:[#allocation5 + $0xb8] sm:$0xff]  ;;  %p5189_p7 = por %p5188_p12, %p5187_p6 }
  0x61   : > { %3892 = vmatpush3.msra.mxu1 %v362_v15  ;;  %3858 = vmatprep.subr.mxu0 %v345_v16  ;;  %v327_v26 = vld [vmem:[#allocation5 + $0x48] sm:$0xff]  ;;  %v326_v30 = vld [vmem:[#allocation5 + $0x40] sm:$0xff]  ;;  %v373_v33 = vld [vmem:[#allocation5 + $0x1b8] sm:$0xff] }
  0x62   : > { %3893 = vmatprep.subr.mxu1 %v377_v17  ;;  %3859 = vmatpush3.msra.mxu0 %v329_v18  ;;  %v359_v27 = vld [vmem:[#allocation5 + $0x148] sm:$0xff]  ;;  %v358_v31 = vld [vmem:[#allocation5 + $0x140] sm:$0xff]  ;;  %v325_v34 = vld [vmem:[#allocation5 + $0x38] sm:$0xff]  ;;  %p5190_p9 = pnand %p5189_p7, %p5183_p2 }
  0x63   : > { %3894 = vmatpush3.msra.mxu1 %v361_v19  ;;  %3860 = vmatprep.subr.mxu0 %v344_v20  ;;  %v357_v35 = vld [vmem:[#allocation5 + $0x138] sm:$0xff]  ;;  %v340_v36 = vld [vmem:[#allocation5 + $0xb0] sm:$0xff]  ;;  %v339_v40 = vld [vmem:[#allocation5 + $0xa8] sm:$0xff] }
  0x64   : > { %3895 = vmatprep.subr.mxu1 %v376_v21  ;;  %3861 = vmatpush3.msra.mxu0 %v328_v22  ;;  %v372_v37 = vld [vmem:[#allocation5 + $0x1b0] sm:$0xff]  ;;  %v371_v41 = vld [vmem:[#allocation5 + $0x1a8] sm:$0xff]  ;;  %v338_v44 = vld [vmem:[#allocation5 + $0xa0] sm:$0xff] }
  0x65   : > { %3896 = vmatpush3.msra.mxu1 %v360_v23  ;;  %3862 = vmatprep.subr.mxu0 %v343_v24  ;;  %v324_v38 = vld [vmem:[#allocation5 + $0x30] sm:$0xff]  ;;  %v323_v42 = vld [vmem:[#allocation5 + $0x28] sm:$0xff]  ;;  %v370_v45 = vld [vmem:[#allocation5 + $0x1a0] sm:$0xff] }
  0x66   : > { %3897 = vmatprep.subr.mxu1 %v375_v25  ;;  %3863 = vmatpush3.msra.mxu0 %v327_v26  ;;  %v356_v39 = vld [vmem:[#allocation5 + $0x130] sm:$0xff]  ;;  %v355_v43 = vld [vmem:[#allocation5 + $0x128] sm:$0xff]  ;;  %v322_v46 = vld [vmem:[#allocation5 + $0x20] sm:$0xff] }
  0x67   : > { %3898 = vmatpush3.msra.mxu1 %v359_v27  ;;  %3864 = vmatprep.subr.mxu0 %v342_v28  ;;  %v354_v47 = vld [vmem:[#allocation5 + $0x120] sm:$0xff]  ;;  %v337_v48 = vld [vmem:[#allocation5 + $0x98] sm:$0xff]  ;;  %v336_v52 = vld [vmem:[#allocation5 + $0x90] sm:$0xff] }
  0x68   : > { %3899 = vmatprep.subr.mxu1 %v374_v29  ;;  %3865 = vmatpush3.msra.mxu0 %v326_v30  ;;  %v369_v49 = vld [vmem:[#allocation5 + $0x198] sm:$0xff]  ;;  %v368_v53 = vld [vmem:[#allocation5 + $0x190] sm:$0xff]  ;;  %v335_v56 = vld [vmem:[#allocation5 + $0x88] sm:$0xff] }
  0x69   : > { %3900 = vmatpush3.msra.mxu1 %v358_v31  ;;  %3866 = vmatprep.subr.mxu0 %v341_v32  ;;  %v321_v50 = vld [vmem:[#allocation5 + $0x18] sm:$0xff]  ;;  %v320_v54 = vld [vmem:[#allocation5 + $0x10] sm:$0xff]  ;;  %v367_v57 = vld [vmem:[#allocation5 + $0x188] sm:$0xff] }
  0x6a   : > { %3901 = vmatprep.subr.mxu1 %v373_v33  ;;  %3867 = vmatpush3.msra.mxu0 %v325_v34  ;;  %v353_v51 = vld [vmem:[#allocation5 + $0x118] sm:$0xff]  ;;  %v352_v55 = vld [vmem:[#allocation5 + $0x110] sm:$0xff]  ;;  %v319_v58 = vld [vmem:[#allocation5 + $0x8] sm:$0xff] }
  0x6b   : > { %3902 = vmatpush3.msra.mxu1 %v357_v35  ;;  %3868 = vmatprep.subr.mxu0 %v340_v36  ;;  %v351_v59 = vld [vmem:[#allocation5 + $0x108] sm:$0xff]  ;;  %v334_v60 = vld [vmem:[#allocation5 + $0x80] sm:$0xff]  ;;  %v257_v1 = vld [vmem:[%s5436_s10 + $0x18] sm:$0xff] }
  0x6c   : > { %3903 = vmatprep.subr.mxu1 %v372_v37  ;;  %3869 = vmatpush3.msra.mxu0 %v324_v38  ;;  %v366_v61 = vld [vmem:[#allocation5 + $0x180] sm:$0xff]  ;;  %v255_v63 = vld [vmem:[%s5436_s10 + $0x8] sm:$0xff]  ;;  %v256_v3 = vld [vmem:[%s5436_s10 + $0x10] sm:$0xff] }
  0x6d   : > { %3904 = vmatpush3.msra.mxu1 %v356_v39  ;;  %3870 = vmatprep.subr.mxu0 %v339_v40  ;;  %v318_v62 = vld [vmem:[#allocation5] sm:$0xff]  ;;  %v413_v4 = vld [vmem:[#allocation5 + $0x2f8] sm:$0xff]  ;;  %v412_v8 = vld [vmem:[#allocation5 + $0x2f0] sm:$0xff] }
  0x6e   : > { %3905 = vmatprep.subr.mxu1 %v371_v41  ;;  %3871 = vmatpush3.msra.mxu0 %v323_v42  ;;  %v350_v0 = vld [vmem:[#allocation5 + $0x100] sm:$0xff]  ;;  %v445_v5 = vld [vmem:[#allocation5 + $0x3f8] sm:$0xff]  ;;  %v444_v9 = vld [vmem:[#allocation5 + $0x3f0] sm:$0xff] }
  0x6f   : > { %3906 = vmatpush3.msra.mxu1 %v355_v43  ;;  %3872 = vmatprep.subr.mxu0 %v338_v44  ;;  %v254_v2 = vld [vmem:[%s5436_s10] sm:$0xff]  ;;  %v397_v6 = vld [vmem:[#allocation5 + $0x278] sm:$0xff]  ;;  %v396_v10 = vld [vmem:[#allocation5 + $0x270] sm:$0xff] }
  0x70   : > { %3907 = vmatprep.subr.mxu1 %v370_v45  ;;  %3873 = vmatpush3.msra.mxu0 %v322_v46  ;;  %v429_v7 = vld [vmem:[#allocation5 + $0x378] sm:$0xff]  ;;  %v428_v11 = vld [vmem:[#allocation5 + $0x370] sm:$0xff]  ;;  %v411_v12 = vld [vmem:[#allocation5 + $0x2e8] sm:$0xff] }
  0x71   : > { %3908 = vmatpush3.msra.mxu1 %v354_v47  ;;  %3874 = vmatprep.subr.mxu0 %v337_v48  ;;  %v443_v13 = vld [vmem:[#allocation5 + $0x3e8] sm:$0xff]  ;;  %v410_v16 = vld [vmem:[#allocation5 + $0x2e0] sm:$0xff]  ;;  %v409_v20 = vld [vmem:[#allocation5 + $0x2d8] sm:$0xff] }
  0x72   : > { %3909 = vmatprep.subr.mxu1 %v369_v49  ;;  %3875 = vmatpush3.msra.mxu0 %v321_v50  ;;  %v395_v14 = vld [vmem:[#allocation5 + $0x268] sm:$0xff]  ;;  %v442_v17 = vld [vmem:[#allocation5 + $0x3e0] sm:$0xff]  ;;  %v441_v21 = vld [vmem:[#allocation5 + $0x3d8] sm:$0xff] }
  0x73   : > { %3910 = vmatpush3.msra.mxu1 %v353_v51  ;;  %3876 = vmatprep.subr.mxu0 %v336_v52  ;;  %v427_v15 = vld [vmem:[#allocation5 + $0x368] sm:$0xff]  ;;  %v394_v18 = vld [vmem:[#allocation5 + $0x260] sm:$0xff]  ;;  %v393_v22 = vld [vmem:[#allocation5 + $0x258] sm:$0xff] }
  0x74   : > { %3911 = vmatprep.subr.mxu1 %v368_v53  ;;  %3877 = vmatpush3.msra.mxu0 %v320_v54  ;;  %v426_v19 = vld [vmem:[#allocation5 + $0x360] sm:$0xff]  ;;  %v425_v23 = vld [vmem:[#allocation5 + $0x358] sm:$0xff]  ;;  %v408_v24 = vld [vmem:[#allocation5 + $0x2d0] sm:$0xff] }
  0x75   : > { %3912 = vmatpush3.msra.mxu1 %v352_v55  ;;  %3878 = vmatprep.subr.mxu0 %v335_v56  ;;  %v440_v25 = vld [vmem:[#allocation5 + $0x3d0] sm:$0xff]  ;;  %v407_v28 = vld [vmem:[#allocation5 + $0x2c8] sm:$0xff]  ;;  %v406_v32 = vld [vmem:[#allocation5 + $0x2c0] sm:$0xff] }
  0x76   : > { %3913 = vmatprep.subr.mxu1 %v367_v57  ;;  %3879 = vmatpush3.msra.mxu0 %v319_v58  ;;  %v392_v26 = vld [vmem:[#allocation5 + $0x250] sm:$0xff]  ;;  %v439_v29 = vld [vmem:[#allocation5 + $0x3c8] sm:$0xff]  ;;  %v438_v33 = vld [vmem:[#allocation5 + $0x3c0] sm:$0xff] }
  0x77   : > { %3914 = vmatpush3.msra.mxu1 %v351_v59  ;;  %3880 = vmatprep.subr.mxu0 %v334_v60  ;;  %v424_v27 = vld [vmem:[#allocation5 + $0x350] sm:$0xff]  ;;  %v391_v30 = vld [vmem:[#allocation5 + $0x248] sm:$0xff]  ;;  %v390_v34 = vld [vmem:[#allocation5 + $0x240] sm:$0xff] }
  0x78   : > { %3915 = vmatprep.subr.mxu1 %v366_v61  ;;  %3881 = vmatpush3.msra.mxu0 %v318_v62  ;;  %v423_v31 = vld [vmem:[#allocation5 + $0x348] sm:$0xff]  ;;  %v422_v35 = vld [vmem:[#allocation5 + $0x340] sm:$0xff]  ;;  %v405_v36 = vld [vmem:[#allocation5 + $0x2b8] sm:$0xff] }
  0x79   : > { %1406 = vmatprep.mubr.f32.mxu0 %v255_v63  ;;  %3916 = vmatpush3.msra.mxu1 %v350_v0  ;;  %v437_v37 = vld [vmem:[#allocation5 + $0x3b8] sm:$0xff]  ;;  %v404_v40 = vld [vmem:[#allocation5 + $0x2b0] sm:$0xff]  ;;  %v403_v44 = vld [vmem:[#allocation5 + $0x2a8] sm:$0xff] }
  0x7a   : > { %1476 = vmatprep.mubr.f32.mxu1 %v257_v1  ;;  %1407 = vmatmul.mubr.f32.vlgmr.msra.gmra.mxu0 %v254_v2  ;;  %v389_v38 = vld [vmem:[#allocation5 + $0x238] sm:$0xff]  ;;  %v436_v41 = vld [vmem:[#allocation5 + $0x3b0] sm:$0xff]  ;;  %v435_v45 = vld [vmem:[#allocation5 + $0x3a8] sm:$0xff] }
  0x7b   : > { %1477 = vmatmul.mubr.f32.vlgmr.msra.gmra.mxu1 %v256_v3  ;;  %3920 = vmatprep.subr.mxu0 %v413_v4  ;;  %v421_v39 = vld [vmem:[#allocation5 + $0x338] sm:$0xff]  ;;  %v388_v42 = vld [vmem:[#allocation5 + $0x230] sm:$0xff]  ;;  %v387_v46 = vld [vmem:[#allocation5 + $0x228] sm:$0xff] }
  0x7c   : > { %3955 = vmatprep.subr.mxu1 %v445_v5  ;;  %3921 = vmatpush3.msra.mxu0 %v397_v6  ;;  %v420_v43 = vld [vmem:[#allocation5 + $0x330] sm:$0xff]  ;;  %v419_v47 = vld [vmem:[#allocation5 + $0x328] sm:$0xff]  ;;  %v402_v48 = vld [vmem:[#allocation5 + $0x2a0] sm:$0xff] }
  0x7d   : > { %3956 = vmatpush3.msra.mxu1 %v429_v7  ;;  %3922 = vmatprep.subr.mxu0 %v412_v8  ;;  %v434_v49 = vld [vmem:[#allocation5 + $0x3a0] sm:$0xff]  ;;  %v401_v52 = vld [vmem:[#allocation5 + $0x298] sm:$0xff]  ;;  %v400_v56 = vld [vmem:[#allocation5 + $0x290] sm:$0xff] }
  0x7e   : > { %3957 = vmatprep.subr.mxu1 %v444_v9  ;;  %3923 = vmatpush3.msra.mxu0 %v396_v10  ;;  %v386_v50 = vld [vmem:[#allocation5 + $0x220] sm:$0xff]  ;;  %v433_v53 = vld [vmem:[#allocation5 + $0x398] sm:$0xff]  ;;  %v432_v57 = vld [vmem:[#allocation5 + $0x390] sm:$0xff] }
  0x7f   : > { %3958 = vmatpush3.msra.mxu1 %v428_v11  ;;  %3924 = vmatprep.subr.mxu0 %v411_v12  ;;  %v418_v51 = vld [vmem:[#allocation5 + $0x320] sm:$0xff]  ;;  %v385_v54 = vld [vmem:[#allocation5 + $0x218] sm:$0xff]  ;;  %v384_v58 = vld [vmem:[#allocation5 + $0x210] sm:$0xff] }
  0x80   : > { %3959 = vmatprep.subr.mxu1 %v443_v13  ;;  %3925 = vmatpush3.msra.mxu0 %v395_v14  ;;  %v417_v55 = vld [vmem:[#allocation5 + $0x318] sm:$0xff]  ;;  %v416_v59 = vld [vmem:[#allocation5 + $0x310] sm:$0xff]  ;;  %v399_v60 = vld [vmem:[#allocation5 + $0x288] sm:$0xff] }
  0x81   : > { %3960 = vmatpush3.msra.mxu1 %v427_v15  ;;  %3926 = vmatprep.subr.mxu0 %v410_v16  ;;  %v431_v61 = vld [vmem:[#allocation5 + $0x388] sm:$0xff]  ;;  %v398_v0 = vld [vmem:[#allocation5 + $0x280] sm:$0xff]  ;;  %v261_v6 = vld [vmem:[%s5436_s10 + $0x38] sm:$0xff] }
  0x82   : > { %3961 = vmatprep.subr.mxu1 %v442_v17  ;;  %3927 = vmatpush3.msra.mxu0 %v394_v18  ;;  %v383_v62 = vld [vmem:[#allocation5 + $0x208] sm:$0xff]  ;;  %v430_v1 = vld [vmem:[#allocation5 + $0x380] sm:$0xff]  ;;  %v477_v7 = vld [vmem:[#allocation5 + $0x4f8] sm:$0xff] }
  0x83   : > { %3962 = vmatpush3.msra.mxu1 %v426_v19  ;;  %3928 = vmatprep.subr.mxu0 %v409_v20  ;;  %v415_v63 = vld [vmem:[#allocation5 + $0x308] sm:$0xff]  ;;  %v382_v2 = vld [vmem:[#allocation5 + $0x200] sm:$0xff]  ;;  %v509_v8 = vld [vmem:[#allocation5 + $0x5f8] sm:$0xff] }
  0x84   : > { %3963 = vmatprep.subr.mxu1 %v441_v21  ;;  %3929 = vmatpush3.msra.mxu0 %v393_v22  ;;  %v259_v3 = vld [vmem:[%s5436_s10 + $0x28] sm:$0xff]  ;;  %v414_v4 = vld [vmem:[#allocation5 + $0x300] sm:$0xff]  ;;  %v260_v9 = vld [vmem:[%s5436_s10 + $0x30] sm:$0xff] }
  0x85   : > { %3964 = vmatpush3.msra.mxu1 %v425_v23  ;;  %3930 = vmatprep.subr.mxu0 %v408_v24  ;;  %v258_v5 = vld [vmem:[%s5436_s10 + $0x20] sm:$0xff]  ;;  %v461_v10 = vld [vmem:[#allocation5 + $0x478] sm:$0xff]  ;;  %v476_v12 = vld [vmem:[#allocation5 + $0x4f0] sm:$0xff] }
  0x86   : > { %3965 = vmatprep.subr.mxu1 %v440_v25  ;;  %3931 = vmatpush3.msra.mxu0 %v392_v26  ;;  %v493_v11 = vld [vmem:[#allocation5 + $0x578] sm:$0xff]  ;;  %v508_v13 = vld [vmem:[#allocation5 + $0x5f0] sm:$0xff]  ;;  %v475_v16 = vld [vmem:[#allocation5 + $0x4e8] sm:$0xff] }
  0x87   : > { %3966 = vmatpush3.msra.mxu1 %v424_v27  ;;  %3932 = vmatprep.subr.mxu0 %v407_v28  ;;  %v460_v14 = vld [vmem:[#allocation5 + $0x470] sm:$0xff]  ;;  %v507_v17 = vld [vmem:[#allocation5 + $0x5e8] sm:$0xff]  ;;  %v474_v20 = vld [vmem:[#allocation5 + $0x4e0] sm:$0xff] }
  0x88   : > { %3967 = vmatprep.subr.mxu1 %v439_v29  ;;  %3933 = vmatpush3.msra.mxu0 %v391_v30  ;;  %v492_v15 = vld [vmem:[#allocation5 + $0x570] sm:$0xff]  ;;  %v459_v18 = vld [vmem:[#allocation5 + $0x468] sm:$0xff]  ;;  %v506_v21 = vld [vmem:[#allocation5 + $0x5e0] sm:$0xff] }
  0x89   : > { %3968 = vmatpush3.msra.mxu1 %v423_v31  ;;  %3934 = vmatprep.subr.mxu0 %v406_v32  ;;  %v491_v19 = vld [vmem:[#allocation5 + $0x568] sm:$0xff]  ;;  %v458_v22 = vld [vmem:[#allocation5 + $0x460] sm:$0xff]  ;;  %v473_v24 = vld [vmem:[#allocation5 + $0x4d8] sm:$0xff] }
  0x8a   : > { %3969 = vmatprep.subr.mxu1 %v438_v33  ;;  %3935 = vmatpush3.msra.mxu0 %v390_v34  ;;  %v490_v23 = vld [vmem:[#allocation5 + $0x560] sm:$0xff]  ;;  %v505_v25 = vld [vmem:[#allocation5 + $0x5d8] sm:$0xff]  ;;  %v472_v28 = vld [vmem:[#allocation5 + $0x4d0] sm:$0xff] }
  0x8b   : > { %3970 = vmatpush3.msra.mxu1 %v422_v35  ;;  %3936 = vmatprep.subr.mxu0 %v405_v36  ;;  %v457_v26 = vld [vmem:[#allocation5 + $0x458] sm:$0xff]  ;;  %v504_v29 = vld [vmem:[#allocation5 + $0x5d0] sm:$0xff]  ;;  %v471_v32 = vld [vmem:[#allocation5 + $0x4c8] sm:$0xff] }
  0x8c   : > { %3971 = vmatprep.subr.mxu1 %v437_v37  ;;  %3937 = vmatpush3.msra.mxu0 %v389_v38  ;;  %v489_v27 = vld [vmem:[#allocation5 + $0x558] sm:$0xff]  ;;  %v456_v30 = vld [vmem:[#allocation5 + $0x450] sm:$0xff]  ;;  %v503_v33 = vld [vmem:[#allocation5 + $0x5c8] sm:$0xff] }
  0x8d   : > { %3972 = vmatpush3.msra.mxu1 %v421_v39  ;;  %3938 = vmatprep.subr.mxu0 %v404_v40  ;;  %v488_v31 = vld [vmem:[#allocation5 + $0x550] sm:$0xff]  ;;  %v455_v34 = vld [vmem:[#allocation5 + $0x448] sm:$0xff]  ;;  %v470_v36 = vld [vmem:[#allocation5 + $0x4c0] sm:$0xff] }
  0x8e   : > { %3973 = vmatprep.subr.mxu1 %v436_v41  ;;  %3939 = vmatpush3.msra.mxu0 %v388_v42  ;;  %v487_v35 = vld [vmem:[#allocation5 + $0x548] sm:$0xff]  ;;  %v502_v37 = vld [vmem:[#allocation5 + $0x5c0] sm:$0xff]  ;;  %v469_v40 = vld [vmem:[#allocation5 + $0x4b8] sm:$0xff] }
  0x8f   : > { %3974 = vmatpush3.msra.mxu1 %v420_v43  ;;  %3940 = vmatprep.subr.mxu0 %v403_v44  ;;  %v454_v38 = vld [vmem:[#allocation5 + $0x440] sm:$0xff]  ;;  %v501_v41 = vld [vmem:[#allocation5 + $0x5b8] sm:$0xff]  ;;  %v468_v44 = vld [vmem:[#allocation5 + $0x4b0] sm:$0xff] }
  0x90   : > { %3975 = vmatprep.subr.mxu1 %v435_v45  ;;  %3941 = vmatpush3.msra.mxu0 %v387_v46  ;;  %v486_v39 = vld [vmem:[#allocation5 + $0x540] sm:$0xff]  ;;  %v453_v42 = vld [vmem:[#allocation5 + $0x438] sm:$0xff]  ;;  %v500_v45 = vld [vmem:[#allocation5 + $0x5b0] sm:$0xff] }
  0x91   : > { %3976 = vmatpush3.msra.mxu1 %v419_v47  ;;  %3942 = vmatprep.subr.mxu0 %v402_v48  ;;  %v485_v43 = vld [vmem:[#allocation5 + $0x538] sm:$0xff]  ;;  %v452_v46 = vld [vmem:[#allocation5 + $0x430] sm:$0xff]  ;;  %v467_v48 = vld [vmem:[#allocation5 + $0x4a8] sm:$0xff] }
  0x92   : > { %3977 = vmatprep.subr.mxu1 %v434_v49  ;;  %3943 = vmatpush3.msra.mxu0 %v386_v50  ;;  %v484_v47 = vld [vmem:[#allocation5 + $0x530] sm:$0xff]  ;;  %v499_v49 = vld [vmem:[#allocation5 + $0x5a8] sm:$0xff] }
  0x93   : > { %3978 = vmatpush3.msra.mxu1 %v418_v51  ;;  %3944 = vmatprep.subr.mxu0 %v401_v52  ;;  %v451_v50 = vld [vmem:[#allocation5 + $0x428] sm:$0xff]  ;;  %v466_v52 = vld [vmem:[#allocation5 + $0x4a0] sm:$0xff] }
  0x94   : > { %3979 = vmatprep.subr.mxu1 %v433_v53  ;;  %3945 = vmatpush3.msra.mxu0 %v385_v54  ;;  %v483_v51 = vld [vmem:[#allocation5 + $0x528] sm:$0xff]  ;;  %v498_v53 = vld [vmem:[#allocation5 + $0x5a0] sm:$0xff] }
  0x95   : > { %3980 = vmatpush3.msra.mxu1 %v417_v55  ;;  %3946 = vmatprep.subr.mxu0 %v400_v56  ;;  %v450_v54 = vld [vmem:[#allocation5 + $0x420] sm:$0xff]  ;;  %v465_v56 = vld [vmem:[#allocation5 + $0x498] sm:$0xff] }
  0x96   : > { %3981 = vmatprep.subr.mxu1 %v432_v57  ;;  %3947 = vmatpush3.msra.mxu0 %v384_v58  ;;  %v482_v55 = vld [vmem:[#allocation5 + $0x520] sm:$0xff]  ;;  %v497_v57 = vld [vmem:[#allocation5 + $0x598] sm:$0xff] }
  0x97   : > { %3982 = vmatpush3.msra.mxu1 %v416_v59  ;;  %3948 = vmatprep.subr.mxu0 %v399_v60  ;;  %v449_v58 = vld [vmem:[#allocation5 + $0x418] sm:$0xff]  ;;  %v464_v60 = vld [vmem:[#allocation5 + $0x490] sm:$0xff] }
  0x98   : > { %3983 = vmatprep.subr.mxu1 %v431_v61  ;;  %3949 = vmatpush3.msra.mxu0 %v383_v62  ;;  %v481_v59 = vld [vmem:[#allocation5 + $0x518] sm:$0xff]  ;;  %v496_v61 = vld [vmem:[#allocation5 + $0x590] sm:$0xff] }
  0x99   : > { %3984 = vmatpush3.msra.mxu1 %v415_v63  ;;  %3950 = vmatprep.subr.mxu0 %v398_v0  ;;  %v448_v62 = vld [vmem:[#allocation5 + $0x410] sm:$0xff]  ;;  %v463_v0 = vld [vmem:[#allocation5 + $0x488] sm:$0xff] }
  0x9a   : > { %3985 = vmatprep.subr.mxu1 %v430_v1  ;;  %3951 = vmatpush3.msra.mxu0 %v382_v2  ;;  %v480_v63 = vld [vmem:[#allocation5 + $0x510] sm:$0xff]  ;;  %v495_v1 = vld [vmem:[#allocation5 + $0x588] sm:$0xff] }
  0x9b   : > { %1546 = vmatprep.mubr.f32.mxu0 %v259_v3  ;;  %3986 = vmatpush3.msra.mxu1 %v414_v4  ;;  %v447_v2 = vld [vmem:[#allocation5 + $0x408] sm:$0xff]  ;;  %v462_v4 = vld [vmem:[#allocation5 + $0x480] sm:$0xff] }
  0x9c   : > { %1547 = vmatmul.mubr.f32.vlgmr.msra.gmra.mxu0 %v258_v5  ;;  %1616 = vmatprep.mubr.f32.mxu1 %v261_v6  ;;  %v479_v3 = vld [vmem:[#allocation5 + $0x508] sm:$0xff]  ;;  %v494_v5 = vld [vmem:[#allocation5 + $0x580] sm:$0xff] }
  0x9d   : > { %3990 = vmatprep.subr.mxu0 %v477_v7  ;;  %4025 = vmatprep.subr.mxu1 %v509_v8  ;;  %v446_v6 = vld [vmem:[#allocation5 + $0x400] sm:$0xff]  ;;  %v263_v7 = vld [vmem:[%s5436_s10 + $0x48] sm:$0xff] }
  0x9e   : > { %1617 = vmatmul.mubr.f32.vlgmr.msra.gmra.mxu1 %v260_v9  ;;  %3991 = vmatpush3.msra.mxu0 %v461_v10  ;;  %v478_v8 = vld [vmem:[#allocation5 + $0x500] sm:$0xff]  ;;  %v265_v10 = vld [vmem:[%s5436_s10 + $0x58] sm:$0xff] }
  0x9f   : > { %4026 = vmatpush3.msra.mxu1 %v493_v11  ;;  %3992 = vmatprep.subr.mxu0 %v476_v12  ;;  %v262_v9 = vld [vmem:[%s5436_s10 + $0x40] sm:$0xff]  ;;  %v541_v11 = vld [vmem:[#allocation5 + $0x6f8] sm:$0xff] }
  0xa0   : > { %4027 = vmatprep.subr.mxu1 %v508_v13  ;;  %3993 = vmatpush3.msra.mxu0 %v460_v14  ;;  %v573_v12 = vld [vmem:[#allocation5 + $0x7f8] sm:$0xff]  ;;  %v264_v13 = vld [vmem:[%s5436_s10 + $0x50] sm:$0xff] }
  0xa1   : > { %4028 = vmatpush3.msra.mxu1 %v492_v15  ;;  %3994 = vmatprep.subr.mxu0 %v475_v16  ;;  %v525_v14 = vld [vmem:[#allocation5 + $0x678] sm:$0xff]  ;;  %v540_v16 = vld [vmem:[#allocation5 + $0x6f0] sm:$0xff] }
  0xa2   : > { %4029 = vmatprep.subr.mxu1 %v507_v17  ;;  %3995 = vmatpush3.msra.mxu0 %v459_v18  ;;  %v557_v15 = vld [vmem:[#allocation5 + $0x778] sm:$0xff]  ;;  %v572_v17 = vld [vmem:[#allocation5 + $0x7f0] sm:$0xff] }
  0xa3   : > { %4030 = vmatpush3.msra.mxu1 %v491_v19  ;;  %3996 = vmatprep.subr.mxu0 %v474_v20  ;;  %v524_v18 = vld [vmem:[#allocation5 + $0x670] sm:$0xff]  ;;  %v539_v20 = vld [vmem:[#allocation5 + $0x6e8] sm:$0xff] }
  0xa4   : > { %4031 = vmatprep.subr.mxu1 %v506_v21  ;;  %3997 = vmatpush3.msra.mxu0 %v458_v22  ;;  %v556_v19 = vld [vmem:[#allocation5 + $0x770] sm:$0xff]  ;;  %v571_v21 = vld [vmem:[#allocation5 + $0x7e8] sm:$0xff] }
  0xa5   : > { %4032 = vmatpush3.msra.mxu1 %v490_v23  ;;  %3998 = vmatprep.subr.mxu0 %v473_v24  ;;  %v523_v22 = vld [vmem:[#allocation5 + $0x668] sm:$0xff]  ;;  %v538_v24 = vld [vmem:[#allocation5 + $0x6e0] sm:$0xff] }
  0xa6   : > { %4033 = vmatprep.subr.mxu1 %v505_v25  ;;  %3999 = vmatpush3.msra.mxu0 %v457_v26  ;;  %v555_v23 = vld [vmem:[#allocation5 + $0x768] sm:$0xff]  ;;  %v570_v25 = vld [vmem:[#allocation5 + $0x7e0] sm:$0xff] }
  0xa7   : > { %4034 = vmatpush3.msra.mxu1 %v489_v27  ;;  %4000 = vmatprep.subr.mxu0 %v472_v28  ;;  %v522_v26 = vld [vmem:[#allocation5 + $0x660] sm:$0xff]  ;;  %v537_v28 = vld [vmem:[#allocation5 + $0x6d8] sm:$0xff] }
  0xa8   : > { %4035 = vmatprep.subr.mxu1 %v504_v29  ;;  %4001 = vmatpush3.msra.mxu0 %v456_v30  ;;  %v554_v27 = vld [vmem:[#allocation5 + $0x760] sm:$0xff]  ;;  %v569_v29 = vld [vmem:[#allocation5 + $0x7d8] sm:$0xff] }
  0xa9   : > { %4036 = vmatpush3.msra.mxu1 %v488_v31  ;;  %4002 = vmatprep.subr.mxu0 %v471_v32  ;;  %v521_v30 = vld [vmem:[#allocation5 + $0x658] sm:$0xff]  ;;  %v536_v32 = vld [vmem:[#allocation5 + $0x6d0] sm:$0xff] }
  0xaa   : > { %4037 = vmatprep.subr.mxu1 %v503_v33  ;;  %4003 = vmatpush3.msra.mxu0 %v455_v34  ;;  %v553_v31 = vld [vmem:[#allocation5 + $0x758] sm:$0xff]  ;;  %v568_v33 = vld [vmem:[#allocation5 + $0x7d0] sm:$0xff] }
  0xab   : > { %4038 = vmatpush3.msra.mxu1 %v487_v35  ;;  %4004 = vmatprep.subr.mxu0 %v470_v36  ;;  %v520_v34 = vld [vmem:[#allocation5 + $0x650] sm:$0xff]  ;;  %v535_v36 = vld [vmem:[#allocation5 + $0x6c8] sm:$0xff] }
  0xac   : > { %4039 = vmatprep.subr.mxu1 %v502_v37  ;;  %4005 = vmatpush3.msra.mxu0 %v454_v38  ;;  %v552_v35 = vld [vmem:[#allocation5 + $0x750] sm:$0xff]  ;;  %v567_v37 = vld [vmem:[#allocation5 + $0x7c8] sm:$0xff] }
  0xad   : > { %4040 = vmatpush3.msra.mxu1 %v486_v39  ;;  %4006 = vmatprep.subr.mxu0 %v469_v40  ;;  %v519_v38 = vld [vmem:[#allocation5 + $0x648] sm:$0xff]  ;;  %v534_v40 = vld [vmem:[#allocation5 + $0x6c0] sm:$0xff] }
  0xae   : > { %4041 = vmatprep.subr.mxu1 %v501_v41  ;;  %4007 = vmatpush3.msra.mxu0 %v453_v42  ;;  %v551_v39 = vld [vmem:[#allocation5 + $0x748] sm:$0xff]  ;;  %v566_v41 = vld [vmem:[#allocation5 + $0x7c0] sm:$0xff] }
  0xaf   : > { %4042 = vmatpush3.msra.mxu1 %v485_v43  ;;  %4008 = vmatprep.subr.mxu0 %v468_v44  ;;  %v518_v42 = vld [vmem:[#allocation5 + $0x640] sm:$0xff]  ;;  %v533_v44 = vld [vmem:[#allocation5 + $0x6b8] sm:$0xff] }
  0xb0   : > { %4043 = vmatprep.subr.mxu1 %v500_v45  ;;  %4009 = vmatpush3.msra.mxu0 %v452_v46  ;;  %v550_v43 = vld [vmem:[#allocation5 + $0x740] sm:$0xff]  ;;  %v565_v45 = vld [vmem:[#allocation5 + $0x7b8] sm:$0xff] }
  0xb1   : > { %4044 = vmatpush3.msra.mxu1 %v484_v47  ;;  %4010 = vmatprep.subr.mxu0 %v467_v48  ;;  %v517_v46 = vld [vmem:[#allocation5 + $0x638] sm:$0xff]  ;;  %v532_v48 = vld [vmem:[#allocation5 + $0x6b0] sm:$0xff] }
  0xb2   : > { %4045 = vmatprep.subr.mxu1 %v499_v49  ;;  %4011 = vmatpush3.msra.mxu0 %v451_v50  ;;  %v549_v47 = vld [vmem:[#allocation5 + $0x738] sm:$0xff]  ;;  %v564_v49 = vld [vmem:[#allocation5 + $0x7b0] sm:$0xff] }
  0xb3   : > { %4046 = vmatpush3.msra.mxu1 %v483_v51  ;;  %4012 = vmatprep.subr.mxu0 %v466_v52  ;;  %v516_v50 = vld [vmem:[#allocation5 + $0x630] sm:$0xff]  ;;  %v531_v52 = vld [vmem:[#allocation5 + $0x6a8] sm:$0xff] }
  0xb4   : > { %4047 = vmatprep.subr.mxu1 %v498_v53  ;;  %4013 = vmatpush3.msra.mxu0 %v450_v54  ;;  %v548_v51 = vld [vmem:[#allocation5 + $0x730] sm:$0xff]  ;;  %v563_v53 = vld [vmem:[#allocation5 + $0x7a8] sm:$0xff] }
  0xb5   : > { %4048 = vmatpush3.msra.mxu1 %v482_v55  ;;  %4014 = vmatprep.subr.mxu0 %v465_v56  ;;  %v515_v54 = vld [vmem:[#allocation5 + $0x628] sm:$0xff]  ;;  %v530_v56 = vld [vmem:[#allocation5 + $0x6a0] sm:$0xff] }
  0xb6   : > { %4049 = vmatprep.subr.mxu1 %v497_v57  ;;  %4015 = vmatpush3.msra.mxu0 %v449_v58  ;;  %v547_v55 = vld [vmem:[#allocation5 + $0x728] sm:$0xff]  ;;  %v562_v57 = vld [vmem:[#allocation5 + $0x7a0] sm:$0xff] }
  0xb7   : > { %4050 = vmatpush3.msra.mxu1 %v481_v59  ;;  %4016 = vmatprep.subr.mxu0 %v464_v60  ;;  %v514_v58 = vld [vmem:[#allocation5 + $0x620] sm:$0xff]  ;;  %v529_v60 = vld [vmem:[#allocation5 + $0x698] sm:$0xff] }
  0xb8   : > { %4051 = vmatprep.subr.mxu1 %v496_v61  ;;  %4017 = vmatpush3.msra.mxu0 %v448_v62  ;;  %v546_v59 = vld [vmem:[#allocation5 + $0x720] sm:$0xff]  ;;  %v561_v61 = vld [vmem:[#allocation5 + $0x798] sm:$0xff] }
  0xb9   : > { %4052 = vmatpush3.msra.mxu1 %v480_v63  ;;  %4018 = vmatprep.subr.mxu0 %v463_v0  ;;  %v513_v62 = vld [vmem:[#allocation5 + $0x618] sm:$0xff]  ;;  %v528_v0 = vld [vmem:[#allocation5 + $0x690] sm:$0xff] }
  0xba   : > { %4053 = vmatprep.subr.mxu1 %v495_v1  ;;  %4019 = vmatpush3.msra.mxu0 %v447_v2  ;;  %v545_v63 = vld [vmem:[#allocation5 + $0x718] sm:$0xff]  ;;  %v560_v1 = vld [vmem:[#allocation5 + $0x790] sm:$0xff] }
  0xbb   : > { %4054 = vmatpush3.msra.mxu1 %v479_v3  ;;  %4020 = vmatprep.subr.mxu0 %v462_v4  ;;  %v512_v2 = vld [vmem:[#allocation5 + $0x610] sm:$0xff]  ;;  %v527_v4 = vld [vmem:[#allocation5 + $0x688] sm:$0xff] }
  0xbc   : > { %4055 = vmatprep.subr.mxu1 %v494_v5  ;;  %4021 = vmatpush3.msra.mxu0 %v446_v6  ;;  %v544_v3 = vld [vmem:[#allocation5 + $0x710] sm:$0xff]  ;;  %v559_v5 = vld [vmem:[#allocation5 + $0x788] sm:$0xff] }
  0xbd   : > { %1686 = vmatprep.mubr.f32.mxu0 %v263_v7  ;;  %4056 = vmatpush3.msra.mxu1 %v478_v8  ;;  %v511_v6 = vld [vmem:[#allocation5 + $0x608] sm:$0xff]  ;;  %v526_v8 = vld [vmem:[#allocation5 + $0x680] sm:$0xff] }
  0xbe   : > { %1687 = vmatmul.mubr.f32.vlgmr.msra.gmra.mxu0 %v262_v9  ;;  %1756 = vmatprep.mubr.f32.mxu1 %v265_v10  ;;  %v543_v7 = vld [vmem:[#allocation5 + $0x708] sm:$0xff]  ;;  %v558_v9 = vld [vmem:[#allocation5 + $0x780] sm:$0xff] }
  0xbf   : > { %4060 = vmatprep.subr.mxu0 %v541_v11  ;;  %4095 = vmatprep.subr.mxu1 %v573_v12  ;;  %v510_v10 = vld [vmem:[#allocation5 + $0x600] sm:$0xff]  ;;  %v267_v11 = vld [vmem:[%s5436_s10 + $0x68] sm:$0xff] }
  0xc0   : > { %1757 = vmatmul.mubr.f32.vlgmr.msra.gmra.mxu1 %v264_v13  ;;  %4061 = vmatpush3.msra.mxu0 %v525_v14  ;;  %v542_v12 = vld [vmem:[#allocation5 + $0x700] sm:$0xff]  ;;  %v269_v14 = vld [vmem:[%s5436_s10 + $0x78] sm:$0xff] }
  0xc1   : > { %4096 = vmatpush3.msra.mxu1 %v557_v15  ;;  %4062 = vmatprep.subr.mxu0 %v540_v16  ;;  %v266_v13 = vld [vmem:[%s5436_s10 + $0x60] sm:$0xff]  ;;  %v605_v15 = vld [vmem:[#allocation5 + $0x8f8] sm:$0xff] }
  0xc2   : > { %4097 = vmatprep.subr.mxu1 %v572_v17  ;;  %4063 = vmatpush3.msra.mxu0 %v524_v18  ;;  %v637_v16 = vld [vmem:[#allocation5 + $0x9f8] sm:$0xff]  ;;  %v268_v17 = vld [vmem:[%s5436_s10 + $0x70] sm:$0xff] }
  0xc3   : > { %4098 = vmatpush3.msra.mxu1 %v556_v19  ;;  %4064 = vmatprep.subr.mxu0 %v539_v20  ;;  %v589_v18 = vld [vmem:[#allocation5 + $0x878] sm:$0xff]  ;;  %v604_v20 = vld [vmem:[#allocation5 + $0x8f0] sm:$0xff] }
  0xc4   : > { %4099 = vmatprep.subr.mxu1 %v571_v21  ;;  %4065 = vmatpush3.msra.mxu0 %v523_v22  ;;  %v621_v19 = vld [vmem:[#allocation5 + $0x978] sm:$0xff]  ;;  %v636_v21 = vld [vmem:[#allocation5 + $0x9f0] sm:$0xff] }
  0xc5   : > { %4100 = vmatpush3.msra.mxu1 %v555_v23  ;;  %4066 = vmatprep.subr.mxu0 %v538_v24  ;;  %v588_v22 = vld [vmem:[#allocation5 + $0x870] sm:$0xff]  ;;  %v603_v24 = vld [vmem:[#allocation5 + $0x8e8] sm:$0xff] }
  0xc6   : > { %4101 = vmatprep.subr.mxu1 %v570_v25  ;;  %4067 = vmatpush3.msra.mxu0 %v522_v26  ;;  %v620_v23 = vld [vmem:[#allocation5 + $0x970] sm:$0xff]  ;;  %v635_v25 = vld [vmem:[#allocation5 + $0x9e8] sm:$0xff] }
  0xc7   : > { %4102 = vmatpush3.msra.mxu1 %v554_v27  ;;  %4068 = vmatprep.subr.mxu0 %v537_v28  ;;  %v587_v26 = vld [vmem:[#allocation5 + $0x868] sm:$0xff]  ;;  %v602_v28 = vld [vmem:[#allocation5 + $0x8e0] sm:$0xff] }
  0xc8   : > { %4103 = vmatprep.subr.mxu1 %v569_v29  ;;  %4069 = vmatpush3.msra.mxu0 %v521_v30  ;;  %v619_v27 = vld [vmem:[#allocation5 + $0x968] sm:$0xff]  ;;  %v634_v29 = vld [vmem:[#allocation5 + $0x9e0] sm:$0xff] }
  0xc9   : > { %4104 = vmatpush3.msra.mxu1 %v553_v31  ;;  %4070 = vmatprep.subr.mxu0 %v536_v32  ;;  %v586_v30 = vld [vmem:[#allocation5 + $0x860] sm:$0xff]  ;;  %v601_v32 = vld [vmem:[#allocation5 + $0x8d8] sm:$0xff] }
  0xca   : > { %4105 = vmatprep.subr.mxu1 %v568_v33  ;;  %4071 = vmatpush3.msra.mxu0 %v520_v34  ;;  %v618_v31 = vld [vmem:[#allocation5 + $0x960] sm:$0xff]  ;;  %v633_v33 = vld [vmem:[#allocation5 + $0x9d8] sm:$0xff] }
  0xcb   : > { %4106 = vmatpush3.msra.mxu1 %v552_v35  ;;  %4072 = vmatprep.subr.mxu0 %v535_v36  ;;  %v585_v34 = vld [vmem:[#allocation5 + $0x858] sm:$0xff]  ;;  %v600_v36 = vld [vmem:[#allocation5 + $0x8d0] sm:$0xff] }
  0xcc   : > { %4107 = vmatprep.subr.mxu1 %v567_v37  ;;  %4073 = vmatpush3.msra.mxu0 %v519_v38  ;;  %v617_v35 = vld [vmem:[#allocation5 + $0x958] sm:$0xff]  ;;  %v632_v37 = vld [vmem:[#allocation5 + $0x9d0] sm:$0xff] }
  0xcd   : > { %4108 = vmatpush3.msra.mxu1 %v551_v39  ;;  %4074 = vmatprep.subr.mxu0 %v534_v40  ;;  %v584_v38 = vld [vmem:[#allocation5 + $0x850] sm:$0xff]  ;;  %v599_v40 = vld [vmem:[#allocation5 + $0x8c8] sm:$0xff] }
  0xce   : > { %4109 = vmatprep.subr.mxu1 %v566_v41  ;;  %4075 = vmatpush3.msra.mxu0 %v518_v42  ;;  %v616_v39 = vld [vmem:[#allocation5 + $0x950] sm:$0xff]  ;;  %v631_v41 = vld [vmem:[#allocation5 + $0x9c8] sm:$0xff] }
  0xcf   : > { %4110 = vmatpush3.msra.mxu1 %v550_v43  ;;  %4076 = vmatprep.subr.mxu0 %v533_v44  ;;  %v583_v42 = vld [vmem:[#allocation5 + $0x848] sm:$0xff]  ;;  %v598_v44 = vld [vmem:[#allocation5 + $0x8c0] sm:$0xff] }
  0xd0   : > { %4111 = vmatprep.subr.mxu1 %v565_v45  ;;  %4077 = vmatpush3.msra.mxu0 %v517_v46  ;;  %v615_v43 = vld [vmem:[#allocation5 + $0x948] sm:$0xff]  ;;  %v630_v45 = vld [vmem:[#allocation5 + $0x9c0] sm:$0xff] }
  0xd1   : > { %4112 = vmatpush3.msra.mxu1 %v549_v47  ;;  %4078 = vmatprep.subr.mxu0 %v532_v48  ;;  %v582_v46 = vld [vmem:[#allocation5 + $0x840] sm:$0xff]  ;;  %v597_v48 = vld [vmem:[#allocation5 + $0x8b8] sm:$0xff] }
  0xd2   : > { %4113 = vmatprep.subr.mxu1 %v564_v49  ;;  %4079 = vmatpush3.msra.mxu0 %v516_v50  ;;  %v614_v47 = vld [vmem:[#allocation5 + $0x940] sm:$0xff]  ;;  %v629_v49 = vld [vmem:[#allocation5 + $0x9b8] sm:$0xff] }
  0xd3   : > { %4114 = vmatpush3.msra.mxu1 %v548_v51  ;;  %4080 = vmatprep.subr.mxu0 %v531_v52  ;;  %v581_v50 = vld [vmem:[#allocation5 + $0x838] sm:$0xff]  ;;  %v596_v52 = vld [vmem:[#allocation5 + $0x8b0] sm:$0xff] }
  0xd4   : > { %4115 = vmatprep.subr.mxu1 %v563_v53  ;;  %4081 = vmatpush3.msra.mxu0 %v515_v54  ;;  %v613_v51 = vld [vmem:[#allocation5 + $0x938] sm:$0xff]  ;;  %v628_v53 = vld [vmem:[#allocation5 + $0x9b0] sm:$0xff] }
  0xd5   : > { %4116 = vmatpush3.msra.mxu1 %v547_v55  ;;  %4082 = vmatprep.subr.mxu0 %v530_v56  ;;  %v580_v54 = vld [vmem:[#allocation5 + $0x830] sm:$0xff]  ;;  %v595_v56 = vld [vmem:[#allocation5 + $0x8a8] sm:$0xff] }
  0xd6   : > { %4117 = vmatprep.subr.mxu1 %v562_v57  ;;  %4083 = vmatpush3.msra.mxu0 %v514_v58  ;;  %v612_v55 = vld [vmem:[#allocation5 + $0x930] sm:$0xff]  ;;  %v627_v57 = vld [vmem:[#allocation5 + $0x9a8] sm:$0xff] }
  0xd7   : > { %4118 = vmatpush3.msra.mxu1 %v546_v59  ;;  %4084 = vmatprep.subr.mxu0 %v529_v60  ;;  %v579_v58 = vld [vmem:[#allocation5 + $0x828] sm:$0xff]  ;;  %v594_v60 = vld [vmem:[#allocation5 + $0x8a0] sm:$0xff] }
  0xd8   : > { %4119 = vmatprep.subr.mxu1 %v561_v61  ;;  %4085 = vmatpush3.msra.mxu0 %v513_v62  ;;  %v611_v59 = vld [vmem:[#allocation5 + $0x928] sm:$0xff]  ;;  %v626_v61 = vld [vmem:[#allocation5 + $0x9a0] sm:$0xff] }
  0xd9   : > { %4120 = vmatpush3.msra.mxu1 %v545_v63  ;;  %4086 = vmatprep.subr.mxu0 %v528_v0  ;;  %v578_v62 = vld [vmem:[#allocation5 + $0x820] sm:$0xff]  ;;  %v593_v0 = vld [vmem:[#allocation5 + $0x898] sm:$0xff] }
  0xda   : > { %4121 = vmatprep.subr.mxu1 %v560_v1  ;;  %4087 = vmatpush3.msra.mxu0 %v512_v2  ;;  %v610_v63 = vld [vmem:[#allocation5 + $0x920] sm:$0xff]  ;;  %v625_v1 = vld [vmem:[#allocation5 + $0x998] sm:$0xff] }
  0xdb   : > { %4122 = vmatpush3.msra.mxu1 %v544_v3  ;;  %4088 = vmatprep.subr.mxu0 %v527_v4  ;;  %v577_v2 = vld [vmem:[#allocation5 + $0x818] sm:$0xff]  ;;  %v592_v4 = vld [vmem:[#allocation5 + $0x890] sm:$0xff] }
  0xdc   : > { %4123 = vmatprep.subr.mxu1 %v559_v5  ;;  %4089 = vmatpush3.msra.mxu0 %v511_v6  ;;  %v609_v3 = vld [vmem:[#allocation5 + $0x918] sm:$0xff]  ;;  %v624_v5 = vld [vmem:[#allocation5 + $0x990] sm:$0xff] }
  0xdd   : > { %4124 = vmatpush3.msra.mxu1 %v543_v7  ;;  %4090 = vmatprep.subr.mxu0 %v526_v8  ;;  %v576_v6 = vld [vmem:[#allocation5 + $0x810] sm:$0xff]  ;;  %v591_v8 = vld [vmem:[#allocation5 + $0x888] sm:$0xff] }
  0xde   : > { %4125 = vmatprep.subr.mxu1 %v558_v9  ;;  %4091 = vmatpush3.msra.mxu0 %v510_v10  ;;  %v608_v7 = vld [vmem:[#allocation5 + $0x910] sm:$0xff]  ;;  %v623_v9 = vld [vmem:[#allocation5 + $0x988] sm:$0xff] }
  0xdf   : > { %1826 = vmatprep.mubr.f32.mxu0 %v267_v11  ;;  %4126 = vmatpush3.msra.mxu1 %v542_v12  ;;  %v575_v10 = vld [vmem:[#allocation5 + $0x808] sm:$0xff]  ;;  %v590_v12 = vld [vmem:[#allocation5 + $0x880] sm:$0xff] }
  0xe0   : > { %1827 = vmatmul.mubr.f32.vlgmr.msra.gmra.mxu0 %v266_v13  ;;  %1896 = vmatprep.mubr.f32.mxu1 %v269_v14  ;;  %v607_v11 = vld [vmem:[#allocation5 + $0x908] sm:$0xff]  ;;  %v622_v13 = vld [vmem:[#allocation5 + $0x980] sm:$0xff] }
  0xe1   : > { %4130 = vmatprep.subr.mxu0 %v605_v15  ;;  %4165 = vmatprep.subr.mxu1 %v637_v16  ;;  %v574_v14 = vld [vmem:[#allocation5 + $0x800] sm:$0xff]  ;;  %v271_v15 = vld [vmem:[%s5436_s10 + $0x88] sm:$0xff] }
  0xe2   : > { %1897 = vmatmul.mubr.f32.vlgmr.msra.gmra.mxu1 %v268_v17  ;;  %4131 = vmatpush3.msra.mxu0 %v589_v18  ;;  %v606_v16 = vld [vmem:[#allocation5 + $0x900] sm:$0xff]  ;;  %v273_v18 = vld [vmem:[%s5436_s10 + $0x98] sm:$0xff] }
  0xe3   : > { %4166 = vmatpush3.msra.mxu1 %v621_v19  ;;  %4132 = vmatprep.subr.mxu0 %v604_v20  ;;  %v270_v17 = vld [vmem:[%s5436_s10 + $0x80] sm:$0xff]  ;;  %v669_v19 = vld [vmem:[#allocation5 + $0xaf8] sm:$0xff] }
  0xe4   : > { %4167 = vmatprep.subr.mxu1 %v636_v21  ;;  %4133 = vmatpush3.msra.mxu0 %v588_v22  ;;  %v701_v20 = vld [vmem:[#allocation5 + $0xbf8] sm:$0xff]  ;;  %v272_v21 = vld [vmem:[%s5436_s10 + $0x90] sm:$0xff] }
  0xe5   : > { %4168 = vmatpush3.msra.mxu1 %v620_v23  ;;  %4134 = vmatprep.subr.mxu0 %v603_v24  ;;  %v653_v22 = vld [vmem:[#allocation5 + $0xa78] sm:$0xff]  ;;  %v668_v24 = vld [vmem:[#allocation5 + $0xaf0] sm:$0xff] }
  0xe6   : > { %4169 = vmatprep.subr.mxu1 %v635_v25  ;;  %4135 = vmatpush3.msra.mxu0 %v587_v26  ;;  %v685_v23 = vld [vmem:[#allocation5 + $0xb78] sm:$0xff]  ;;  %v700_v25 = vld [vmem:[#allocation5 + $0xbf0] sm:$0xff] }
  0xe7   : > { %4170 = vmatpush3.msra.mxu1 %v619_v27  ;;  %4136 = vmatprep.subr.mxu0 %v602_v28  ;;  %v652_v26 = vld [vmem:[#allocation5 + $0xa70] sm:$0xff]  ;;  %v667_v28 = vld [vmem:[#allocation5 + $0xae8] sm:$0xff] }
  0xe8   : > { %4171 = vmatprep.subr.mxu1 %v634_v29  ;;  %4137 = vmatpush3.msra.mxu0 %v586_v30  ;;  %v684_v27 = vld [vmem:[#allocation5 + $0xb70] sm:$0xff]  ;;  %v699_v29 = vld [vmem:[#allocation5 + $0xbe8] sm:$0xff] }
  0xe9   : > { %4172 = vmatpush3.msra.mxu1 %v618_v31  ;;  %4138 = vmatprep.subr.mxu0 %v601_v32  ;;  %v651_v30 = vld [vmem:[#allocation5 + $0xa68] sm:$0xff]  ;;  %v666_v32 = vld [vmem:[#allocation5 + $0xae0] sm:$0xff] }
  0xea   : > { %4173 = vmatprep.subr.mxu1 %v633_v33  ;;  %4139 = vmatpush3.msra.mxu0 %v585_v34  ;;  %v683_v31 = vld [vmem:[#allocation5 + $0xb68] sm:$0xff]  ;;  %v698_v33 = vld [vmem:[#allocation5 + $0xbe0] sm:$0xff] }
  0xeb   : > { %4174 = vmatpush3.msra.mxu1 %v617_v35  ;;  %4140 = vmatprep.subr.mxu0 %v600_v36  ;;  %v650_v34 = vld [vmem:[#allocation5 + $0xa60] sm:$0xff]  ;;  %v665_v36 = vld [vmem:[#allocation5 + $0xad8] sm:$0xff] }
  0xec   : > { %4175 = vmatprep.subr.mxu1 %v632_v37  ;;  %4141 = vmatpush3.msra.mxu0 %v584_v38  ;;  %v682_v35 = vld [vmem:[#allocation5 + $0xb60] sm:$0xff]  ;;  %v697_v37 = vld [vmem:[#allocation5 + $0xbd8] sm:$0xff] }
  0xed   : > { %4176 = vmatpush3.msra.mxu1 %v616_v39  ;;  %4142 = vmatprep.subr.mxu0 %v599_v40  ;;  %v649_v38 = vld [vmem:[#allocation5 + $0xa58] sm:$0xff]  ;;  %v664_v40 = vld [vmem:[#allocation5 + $0xad0] sm:$0xff] }
  0xee   : > { %4177 = vmatprep.subr.mxu1 %v631_v41  ;;  %4143 = vmatpush3.msra.mxu0 %v583_v42  ;;  %v681_v39 = vld [vmem:[#allocation5 + $0xb58] sm:$0xff]  ;;  %v696_v41 = vld [vmem:[#allocation5 + $0xbd0] sm:$0xff] }
  0xef   : > { %4178 = vmatpush3.msra.mxu1 %v615_v43  ;;  %4144 = vmatprep.subr.mxu0 %v598_v44  ;;  %v648_v42 = vld [vmem:[#allocation5 + $0xa50] sm:$0xff]  ;;  %v663_v44 = vld [vmem:[#allocation5 + $0xac8] sm:$0xff] }
  0xf0   : > { %4179 = vmatprep.subr.mxu1 %v630_v45  ;;  %4145 = vmatpush3.msra.mxu0 %v582_v46  ;;  %v680_v43 = vld [vmem:[#allocation5 + $0xb50] sm:$0xff]  ;;  %v695_v45 = vld [vmem:[#allocation5 + $0xbc8] sm:$0xff] }
  0xf1   : > { %4180 = vmatpush3.msra.mxu1 %v614_v47  ;;  %4146 = vmatprep.subr.mxu0 %v597_v48  ;;  %v647_v46 = vld [vmem:[#allocation5 + $0xa48] sm:$0xff]  ;;  %v662_v48 = vld [vmem:[#allocation5 + $0xac0] sm:$0xff] }
  0xf2   : > { %4181 = vmatprep.subr.mxu1 %v629_v49  ;;  %4147 = vmatpush3.msra.mxu0 %v581_v50  ;;  %v679_v47 = vld [vmem:[#allocation5 + $0xb48] sm:$0xff]  ;;  %v694_v49 = vld [vmem:[#allocation5 + $0xbc0] sm:$0xff] }
  0xf3   : > { %4182 = vmatpush3.msra.mxu1 %v613_v51  ;;  %4148 = vmatprep.subr.mxu0 %v596_v52  ;;  %v646_v50 = vld [vmem:[#allocation5 + $0xa40] sm:$0xff]  ;;  %v661_v52 = vld [vmem:[#allocation5 + $0xab8] sm:$0xff] }
  0xf4   : > { %4183 = vmatprep.subr.mxu1 %v628_v53  ;;  %4149 = vmatpush3.msra.mxu0 %v580_v54  ;;  %v678_v51 = vld [vmem:[#allocation5 + $0xb40] sm:$0xff]  ;;  %v693_v53 = vld [vmem:[#allocation5 + $0xbb8] sm:$0xff] }
  0xf5   : > { %4184 = vmatpush3.msra.mxu1 %v612_v55  ;;  %4150 = vmatprep.subr.mxu0 %v595_v56  ;;  %v645_v54 = vld [vmem:[#allocation5 + $0xa38] sm:$0xff]  ;;  %v660_v56 = vld [vmem:[#allocation5 + $0xab0] sm:$0xff] }
  0xf6   : > { %4185 = vmatprep.subr.mxu1 %v627_v57  ;;  %4151 = vmatpush3.msra.mxu0 %v579_v58  ;;  %v677_v55 = vld [vmem:[#allocation5 + $0xb38] sm:$0xff]  ;;  %v692_v57 = vld [vmem:[#allocation5 + $0xbb0] sm:$0xff] }
  0xf7   : > { %4186 = vmatpush3.msra.mxu1 %v611_v59  ;;  %4152 = vmatprep.subr.mxu0 %v594_v60  ;;  %v644_v58 = vld [vmem:[#allocation5 + $0xa30] sm:$0xff]  ;;  %v659_v60 = vld [vmem:[#allocation5 + $0xaa8] sm:$0xff] }
  0xf8   : > { %4187 = vmatprep.subr.mxu1 %v626_v61  ;;  %4153 = vmatpush3.msra.mxu0 %v578_v62  ;;  %v676_v59 = vld [vmem:[#allocation5 + $0xb30] sm:$0xff]  ;;  %v691_v61 = vld [vmem:[#allocation5 + $0xba8] sm:$0xff] }
  0xf9   : > { %4188 = vmatpush3.msra.mxu1 %v610_v63  ;;  %4154 = vmatprep.subr.mxu0 %v593_v0  ;;  %v643_v62 = vld [vmem:[#allocation5 + $0xa28] sm:$0xff]  ;;  %v658_v0 = vld [vmem:[#allocation5 + $0xaa0] sm:$0xff] }
  0xfa   : > { %4189 = vmatprep.subr.mxu1 %v625_v1  ;;  %4155 = vmatpush3.msra.mxu0 %v577_v2  ;;  %v675_v63 = vld [vmem:[#allocation5 + $0xb28] sm:$0xff]  ;;  %v690_v1 = vld [vmem:[#allocation5 + $0xba0] sm:$0xff] }
  0xfb   : > { %4190 = vmatpush3.msra.mxu1 %v609_v3  ;;  %4156 = vmatprep.subr.mxu0 %v592_v4  ;;  %v642_v2 = vld [vmem:[#allocation5 + $0xa20] sm:$0xff]  ;;  %v657_v4 = vld [vmem:[#allocation5 + $0xa98] sm:$0xff] }
  0xfc   : > { %4191 = vmatprep.subr.mxu1 %v624_v5  ;;  %4157 = vmatpush3.msra.mxu0 %v576_v6  ;;  %v674_v3 = vld [vmem:[#allocation5 + $0xb20] sm:$0xff]  ;;  %v689_v5 = vld [vmem:[#allocation5 + $0xb98] sm:$0xff] }
  0xfd   : > { %4192 = vmatpush3.msra.mxu1 %v608_v7  ;;  %4158 = vmatprep.subr.mxu0 %v591_v8  ;;  %v641_v6 = vld [vmem:[#allocation5 + $0xa18] sm:$0xff]  ;;  %v656_v8 = vld [vmem:[#allocation5 + $0xa90] sm:$0xff] }
  0xfe   : > { %4193 = vmatprep.subr.mxu1 %v623_v9  ;;  %4159 = vmatpush3.msra.mxu0 %v575_v10  ;;  %v673_v7 = vld [vmem:[#allocation5 + $0xb18] sm:$0xff]  ;;  %v688_v9 = vld [vmem:[#allocation5 + $0xb90] sm:$0xff] }
  0xff   : > { %4194 = vmatpush3.msra.mxu1 %v607_v11  ;;  %4160 = vmatprep.subr.mxu0 %v590_v12  ;;  %v640_v10 = vld [vmem:[#allocation5 + $0xa10] sm:$0xff]  ;;  %v655_v12 = vld [vmem:[#allocation5 + $0xa88] sm:$0xff] }
 0x100   : > { %4195 = vmatprep.subr.mxu1 %v622_v13  ;;  %4161 = vmatpush3.msra.mxu0 %v574_v14  ;;  %v672_v11 = vld [vmem:[#allocation5 + $0xb10] sm:$0xff]  ;;  %v687_v13 = vld [vmem:[#allocation5 + $0xb88] sm:$0xff] }
 0x101   : > { %1966 = vmatprep.mubr.f32.mxu0 %v271_v15  ;;  %4196 = vmatpush3.msra.mxu1 %v606_v16  ;;  %v639_v14 = vld [vmem:[#allocation5 + $0xa08] sm:$0xff]  ;;  %v654_v16 = vld [vmem:[#allocation5 + $0xa80] sm:$0xff] }
 0x102   : > { %1967 = vmatmul.mubr.f32.vlgmr.msra.gmra.mxu0 %v270_v17  ;;  %2036 = vmatprep.mubr.f32.mxu1 %v273_v18  ;;  %v671_v15 = vld [vmem:[#allocation5 + $0xb08] sm:$0xff]  ;;  %v686_v17 = vld [vmem:[#allocation5 + $0xb80] sm:$0xff] }
 0x103   : > { %4200 = vmatprep.subr.mxu0 %v669_v19  ;;  %4235 = vmatprep.subr.mxu1 %v701_v20  ;;  %v638_v18 = vld [vmem:[#allocation5 + $0xa00] sm:$0xff]  ;;  %v275_v19 = vld [vmem:[%s5436_s10 + $0xa8] sm:$0xff] }
 0x104   : > { %2037 = vmatmul.mubr.f32.vlgmr.msra.gmra.mxu1 %v272_v21  ;;  %4201 = vmatpush3.msra.mxu0 %v653_v22  ;;  %v670_v20 = vld [vmem:[#allocation5 + $0xb00] sm:$0xff]  ;;  %v277_v22 = vld [vmem:[%s5436_s10 + $0xb8] sm:$0xff] }
 0x105   : > { %4236 = vmatpush3.msra.mxu1 %v685_v23  ;;  %4202 = vmatprep.subr.mxu0 %v668_v24  ;;  %v274_v21 = vld [vmem:[%s5436_s10 + $0xa0] sm:$0xff]  ;;  %v733_v23 = vld [vmem:[#allocation5 + $0xcf8] sm:$0xff] }
 0x106   : > { %4237 = vmatprep.subr.mxu1 %v700_v25  ;;  %4203 = vmatpush3.msra.mxu0 %v652_v26  ;;  %v765_v24 = vld [vmem:[#allocation5 + $0xdf8] sm:$0xff]  ;;  %v276_v25 = vld [vmem:[%s5436_s10 + $0xb0] sm:$0xff] }
 0x107   : > { %4238 = vmatpush3.msra.mxu1 %v684_v27  ;;  %4204 = vmatprep.subr.mxu0 %v667_v28  ;;  %v717_v26 = vld [vmem:[#allocation5 + $0xc78] sm:$0xff]  ;;  %v732_v28 = vld [vmem:[#allocation5 + $0xcf0] sm:$0xff] }
 0x108   : > { %4239 = vmatprep.subr.mxu1 %v699_v29  ;;  %4205 = vmatpush3.msra.mxu0 %v651_v30  ;;  %v749_v27 = vld [vmem:[#allocation5 + $0xd78] sm:$0xff]  ;;  %v764_v29 = vld [vmem:[#allocation5 + $0xdf0] sm:$0xff] }
 0x109   : > { %4240 = vmatpush3.msra.mxu1 %v683_v31  ;;  %4206 = vmatprep.subr.mxu0 %v666_v32  ;;  %v716_v30 = vld [vmem:[#allocation5 + $0xc70] sm:$0xff]  ;;  %v731_v32 = vld [vmem:[#allocation5 + $0xce8] sm:$0xff] }
 0x10a   : > { %4241 = vmatprep.subr.mxu1 %v698_v33  ;;  %4207 = vmatpush3.msra.mxu0 %v650_v34  ;;  %v748_v31 = vld [vmem:[#allocation5 + $0xd70] sm:$0xff]  ;;  %v763_v33 = vld [vmem:[#allocation5 + $0xde8] sm:$0xff] }
 0x10b   : > { %4242 = vmatpush3.msra.mxu1 %v682_v35  ;;  %4208 = vmatprep.subr.mxu0 %v665_v36  ;;  %v715_v34 = vld [vmem:[#allocation5 + $0xc68] sm:$0xff]  ;;  %v730_v36 = vld [vmem:[#allocation5 + $0xce0] sm:$0xff] }
 0x10c   : > { %4243 = vmatprep.subr.mxu1 %v697_v37  ;;  %4209 = vmatpush3.msra.mxu0 %v649_v38  ;;  %v747_v35 = vld [vmem:[#allocation5 + $0xd68] sm:$0xff]  ;;  %v762_v37 = vld [vmem:[#allocation5 + $0xde0] sm:$0xff] }
 0x10d   : > { %4244 = vmatpush3.msra.mxu1 %v681_v39  ;;  %4210 = vmatprep.subr.mxu0 %v664_v40  ;;  %v714_v38 = vld [vmem:[#allocation5 + $0xc60] sm:$0xff]  ;;  %v729_v40 = vld [vmem:[#allocation5 + $0xcd8] sm:$0xff] }
 0x10e   : > { %4245 = vmatprep.subr.mxu1 %v696_v41  ;;  %4211 = vmatpush3.msra.mxu0 %v648_v42  ;;  %v746_v39 = vld [vmem:[#allocation5 + $0xd60] sm:$0xff]  ;;  %v761_v41 = vld [vmem:[#allocation5 + $0xdd8] sm:$0xff] }
 0x10f   : > { %4246 = vmatpush3.msra.mxu1 %v680_v43  ;;  %4212 = vmatprep.subr.mxu0 %v663_v44  ;;  %v713_v42 = vld [vmem:[#allocation5 + $0xc58] sm:$0xff]  ;;  %v728_v44 = vld [vmem:[#allocation5 + $0xcd0] sm:$0xff] }
 0x110   : > { %4247 = vmatprep.subr.mxu1 %v695_v45  ;;  %4213 = vmatpush3.msra.mxu0 %v647_v46  ;;  %v745_v43 = vld [vmem:[#allocation5 + $0xd58] sm:$0xff]  ;;  %v760_v45 = vld [vmem:[#allocation5 + $0xdd0] sm:$0xff] }
 0x111   : > { %4248 = vmatpush3.msra.mxu1 %v679_v47  ;;  %4214 = vmatprep.subr.mxu0 %v662_v48  ;;  %v712_v46 = vld [vmem:[#allocation5 + $0xc50] sm:$0xff]  ;;  %v727_v48 = vld [vmem:[#allocation5 + $0xcc8] sm:$0xff] }
 0x112   : > { %4249 = vmatprep.subr.mxu1 %v694_v49  ;;  %4215 = vmatpush3.msra.mxu0 %v646_v50  ;;  %v744_v47 = vld [vmem:[#allocation5 + $0xd50] sm:$0xff]  ;;  %v759_v49 = vld [vmem:[#allocation5 + $0xdc8] sm:$0xff] }
 0x113   : > { %4250 = vmatpush3.msra.mxu1 %v678_v51  ;;  %4216 = vmatprep.subr.mxu0 %v661_v52  ;;  %v711_v50 = vld [vmem:[#allocation5 + $0xc48] sm:$0xff]  ;;  %v726_v52 = vld [vmem:[#allocation5 + $0xcc0] sm:$0xff] }
 0x114   : > { %4251 = vmatprep.subr.mxu1 %v693_v53  ;;  %4217 = vmatpush3.msra.mxu0 %v645_v54  ;;  %v743_v51 = vld [vmem:[#allocation5 + $0xd48] sm:$0xff]  ;;  %v758_v53 = vld [vmem:[#allocation5 + $0xdc0] sm:$0xff] }
 0x115   : > { %4252 = vmatpush3.msra.mxu1 %v677_v55  ;;  %4218 = vmatprep.subr.mxu0 %v660_v56  ;;  %v710_v54 = vld [vmem:[#allocation5 + $0xc40] sm:$0xff]  ;;  %v725_v56 = vld [vmem:[#allocation5 + $0xcb8] sm:$0xff] }
 0x116   : > { %4253 = vmatprep.subr.mxu1 %v692_v57  ;;  %4219 = vmatpush3.msra.mxu0 %v644_v58  ;;  %v742_v55 = vld [vmem:[#allocation5 + $0xd40] sm:$0xff]  ;;  %v757_v57 = vld [vmem:[#allocation5 + $0xdb8] sm:$0xff] }
 0x117   : > { %4254 = vmatpush3.msra.mxu1 %v676_v59  ;;  %4220 = vmatprep.subr.mxu0 %v659_v60  ;;  %v709_v58 = vld [vmem:[#allocation5 + $0xc38] sm:$0xff]  ;;  %v724_v60 = vld [vmem:[#allocation5 + $0xcb0] sm:$0xff] }
 0x118   : > { %4255 = vmatprep.subr.mxu1 %v691_v61  ;;  %4221 = vmatpush3.msra.mxu0 %v643_v62  ;;  %v741_v59 = vld [vmem:[#allocation5 + $0xd38] sm:$0xff]  ;;  %v756_v61 = vld [vmem:[#allocation5 + $0xdb0] sm:$0xff] }
 0x119   : > { %4256 = vmatpush3.msra.mxu1 %v675_v63  ;;  %4222 = vmatprep.subr.mxu0 %v658_v0  ;;  %v708_v62 = vld [vmem:[#allocation5 + $0xc30] sm:$0xff]  ;;  %v723_v0 = vld [vmem:[#allocation5 + $0xca8] sm:$0xff] }
 0x11a   : > { %4257 = vmatprep.subr.mxu1 %v690_v1  ;;  %4223 = vmatpush3.msra.mxu0 %v642_v2  ;;  %v740_v63 = vld [vmem:[#allocation5 + $0xd30] sm:$0xff]  ;;  %v755_v1 = vld [vmem:[#allocation5 + $0xda8] sm:$0xff] }
 0x11b   : > { %4258 = vmatpush3.msra.mxu1 %v674_v3  ;;  %4224 = vmatprep.subr.mxu0 %v657_v4  ;;  %v707_v2 = vld [vmem:[#allocation5 + $0xc28] sm:$0xff]  ;;  %v722_v4 = vld [vmem:[#allocation5 + $0xca0] sm:$0xff] }
 0x11c   : > { %4259 = vmatprep.subr.mxu1 %v689_v5  ;;  %4225 = vmatpush3.msra.mxu0 %v641_v6  ;;  %v739_v3 = vld [vmem:[#allocation5 + $0xd28] sm:$0xff]  ;;  %v754_v5 = vld [vmem:[#allocation5 + $0xda0] sm:$0xff] }
 0x11d   : > { %4260 = vmatpush3.msra.mxu1 %v673_v7  ;;  %4226 = vmatprep.subr.mxu0 %v656_v8  ;;  %v706_v6 = vld [vmem:[#allocation5 + $0xc20] sm:$0xff]  ;;  %v721_v8 = vld [vmem:[#allocation5 + $0xc98] sm:$0xff] }
 0x11e   : > { %4261 = vmatprep.subr.mxu1 %v688_v9  ;;  %4227 = vmatpush3.msra.mxu0 %v640_v10  ;;  %v738_v7 = vld [vmem:[#allocation5 + $0xd20] sm:$0xff]  ;;  %v753_v9 = vld [vmem:[#allocation5 + $0xd98] sm:$0xff] }
 0x11f   : > { %4262 = vmatpush3.msra.mxu1 %v672_v11  ;;  %4228 = vmatprep.subr.mxu0 %v655_v12  ;;  %v705_v10 = vld [vmem:[#allocation5 + $0xc18] sm:$0xff]  ;;  %v720_v12 = vld [vmem:[#allocation5 + $0xc90] sm:$0xff] }
 0x120   : > { %4263 = vmatprep.subr.mxu1 %v687_v13  ;;  %4229 = vmatpush3.msra.mxu0 %v639_v14  ;;  %v737_v11 = vld [vmem:[#allocation5 + $0xd18] sm:$0xff]  ;;  %v752_v13 = vld [vmem:[#allocation5 + $0xd90] sm:$0xff] }
 0x121   : > { %4264 = vmatpush3.msra.mxu1 %v671_v15  ;;  %4230 = vmatprep.subr.mxu0 %v654_v16  ;;  %v704_v14 = vld [vmem:[#allocation5 + $0xc10] sm:$0xff]  ;;  %v719_v16 = vld [vmem:[#allocation5 + $0xc88] sm:$0xff] }
 0x122   : > { %4265 = vmatprep.subr.mxu1 %v686_v17  ;;  %4231 = vmatpush3.msra.mxu0 %v638_v18  ;;  %v736_v15 = vld [vmem:[#allocation5 + $0xd10] sm:$0xff]  ;;  %v751_v17 = vld [vmem:[#allocation5 + $0xd88] sm:$0xff] }
 0x123   : > { %2106 = vmatprep.mubr.f32.mxu0 %v275_v19  ;;  %4266 = vmatpush3.msra.mxu1 %v670_v20  ;;  %v703_v18 = vld [vmem:[#allocation5 + $0xc08] sm:$0xff]  ;;  %v718_v20 = vld [vmem:[#allocation5 + $0xc80] sm:$0xff] }
 0x124   : > { %2107 = vmatmul.mubr.f32.vlgmr.msra.gmra.mxu0 %v274_v21  ;;  %2176 = vmatprep.mubr.f32.mxu1 %v277_v22  ;;  %v735_v19 = vld [vmem:[#allocation5 + $0xd08] sm:$0xff]  ;;  %v750_v21 = vld [vmem:[#allocation5 + $0xd80] sm:$0xff] }
 0x125   : > { %4270 = vmatprep.subr.mxu0 %v733_v23  ;;  %4305 = vmatprep.subr.mxu1 %v765_v24  ;;  %v702_v22 = vld [vmem:[#allocation5 + $0xc00] sm:$0xff]  ;;  %v279_v23 = vld [vmem:[%s5436_s10 + $0xc8] sm:$0xff] }
 0x126   : > { %2177 = vmatmul.mubr.f32.vlgmr.msra.gmra.mxu1 %v276_v25  ;;  %4271 = vmatpush3.msra.mxu0 %v717_v26  ;;  %v734_v24 = vld [vmem:[#allocation5 + $0xd00] sm:$0xff]  ;;  %v281_v26 = vld [vmem:[%s5436_s10 + $0xd8] sm:$0xff] }
 0x127   : > { %4306 = vmatpush3.msra.mxu1 %v749_v27  ;;  %4272 = vmatprep.subr.mxu0 %v732_v28  ;;  %v278_v25 = vld [vmem:[%s5436_s10 + $0xc0] sm:$0xff]  ;;  %v797_v27 = vld [vmem:[#allocation5 + $0xef8] sm:$0xff] }
 0x128   : > { %4307 = vmatprep.subr.mxu1 %v764_v29  ;;  %4273 = vmatpush3.msra.mxu0 %v716_v30  ;;  %v829_v28 = vld [vmem:[#allocation5 + $0xff8] sm:$0xff]  ;;  %v280_v29 = vld [vmem:[%s5436_s10 + $0xd0] sm:$0xff] }
 0x129   : > { %4308 = vmatpush3.msra.mxu1 %v748_v31  ;;  %4274 = vmatprep.subr.mxu0 %v731_v32  ;;  %v781_v30 = vld [vmem:[#allocation5 + $0xe78] sm:$0xff]  ;;  %v796_v32 = vld [vmem:[#allocation5 + $0xef0] sm:$0xff] }
 0x12a   : > { %4309 = vmatprep.subr.mxu1 %v763_v33  ;;  %4275 = vmatpush3.msra.mxu0 %v715_v34  ;;  %v813_v31 = vld [vmem:[#allocation5 + $0xf78] sm:$0xff]  ;;  %v828_v33 = vld [vmem:[#allocation5 + $0xff0] sm:$0xff] }
 0x12b   : > { %4310 = vmatpush3.msra.mxu1 %v747_v35  ;;  %4276 = vmatprep.subr.mxu0 %v730_v36  ;;  %v780_v34 = vld [vmem:[#allocation5 + $0xe70] sm:$0xff]  ;;  %v795_v36 = vld [vmem:[#allocation5 + $0xee8] sm:$0xff] }
 0x12c   : > { %4311 = vmatprep.subr.mxu1 %v762_v37  ;;  %4277 = vmatpush3.msra.mxu0 %v714_v38  ;;  %v812_v35 = vld [vmem:[#allocation5 + $0xf70] sm:$0xff]  ;;  %v827_v37 = vld [vmem:[#allocation5 + $0xfe8] sm:$0xff] }
 0x12d   : > { %4312 = vmatpush3.msra.mxu1 %v746_v39  ;;  %4278 = vmatprep.subr.mxu0 %v729_v40  ;;  %v779_v38 = vld [vmem:[#allocation5 + $0xe68] sm:$0xff]  ;;  %v794_v40 = vld [vmem:[#allocation5 + $0xee0] sm:$0xff] }
 0x12e   : > { %4313 = vmatprep.subr.mxu1 %v761_v41  ;;  %4279 = vmatpush3.msra.mxu0 %v713_v42  ;;  %v811_v39 = vld [vmem:[#allocation5 + $0xf68] sm:$0xff]  ;;  %v826_v41 = vld [vmem:[#allocation5 + $0xfe0] sm:$0xff] }
 0x12f   : > { %4314 = vmatpush3.msra.mxu1 %v745_v43  ;;  %4280 = vmatprep.subr.mxu0 %v728_v44  ;;  %v778_v42 = vld [vmem:[#allocation5 + $0xe60] sm:$0xff]  ;;  %v793_v44 = vld [vmem:[#allocation5 + $0xed8] sm:$0xff] }
 0x130   : > { %4315 = vmatprep.subr.mxu1 %v760_v45  ;;  %4281 = vmatpush3.msra.mxu0 %v712_v46  ;;  %v810_v43 = vld [vmem:[#allocation5 + $0xf60] sm:$0xff]  ;;  %v825_v45 = vld [vmem:[#allocation5 + $0xfd8] sm:$0xff] }
 0x131   : > { %4316 = vmatpush3.msra.mxu1 %v744_v47  ;;  %4282 = vmatprep.subr.mxu0 %v727_v48  ;;  %v777_v46 = vld [vmem:[#allocation5 + $0xe58] sm:$0xff]  ;;  %v792_v48 = vld [vmem:[#allocation5 + $0xed0] sm:$0xff] }
 0x132   : > { %4317 = vmatprep.subr.mxu1 %v759_v49  ;;  %4283 = vmatpush3.msra.mxu0 %v711_v50  ;;  %v809_v47 = vld [vmem:[#allocation5 + $0xf58] sm:$0xff]  ;;  %v824_v49 = vld [vmem:[#allocation5 + $0xfd0] sm:$0xff] }
 0x133   : > { %4318 = vmatpush3.msra.mxu1 %v743_v51  ;;  %4284 = vmatprep.subr.mxu0 %v726_v52  ;;  %v776_v50 = vld [vmem:[#allocation5 + $0xe50] sm:$0xff]  ;;  %v791_v52 = vld [vmem:[#allocation5 + $0xec8] sm:$0xff] }
 0x134   : > { %4319 = vmatprep.subr.mxu1 %v758_v53  ;;  %4285 = vmatpush3.msra.mxu0 %v710_v54  ;;  %v808_v51 = vld [vmem:[#allocation5 + $0xf50] sm:$0xff]  ;;  %v823_v53 = vld [vmem:[#allocation5 + $0xfc8] sm:$0xff] }
 0x135   : > { %4320 = vmatpush3.msra.mxu1 %v742_v55  ;;  %4286 = vmatprep.subr.mxu0 %v725_v56  ;;  %v775_v54 = vld [vmem:[#allocation5 + $0xe48] sm:$0xff]  ;;  %v790_v56 = vld [vmem:[#allocation5 + $0xec0] sm:$0xff] }
 0x136   : > { %4321 = vmatprep.subr.mxu1 %v757_v57  ;;  %4287 = vmatpush3.msra.mxu0 %v709_v58  ;;  %v807_v55 = vld [vmem:[#allocation5 + $0xf48] sm:$0xff]  ;;  %v822_v57 = vld [vmem:[#allocation5 + $0xfc0] sm:$0xff] }
 0x137   : > { %4322 = vmatpush3.msra.mxu1 %v741_v59  ;;  %4288 = vmatprep.subr.mxu0 %v724_v60  ;;  %v774_v58 = vld [vmem:[#allocation5 + $0xe40] sm:$0xff]  ;;  %v789_v60 = vld [vmem:[#allocation5 + $0xeb8] sm:$0xff] }
 0x138   : > { %4323 = vmatprep.subr.mxu1 %v756_v61  ;;  %4289 = vmatpush3.msra.mxu0 %v708_v62  ;;  %v806_v59 = vld [vmem:[#allocation5 + $0xf40] sm:$0xff]  ;;  %v821_v61 = vld [vmem:[#allocation5 + $0xfb8] sm:$0xff] }
 0x139   : > { %4324 = vmatpush3.msra.mxu1 %v740_v63  ;;  %4290 = vmatprep.subr.mxu0 %v723_v0  ;;  %v773_v62 = vld [vmem:[#allocation5 + $0xe38] sm:$0xff]  ;;  %v788_v0 = vld [vmem:[#allocation5 + $0xeb0] sm:$0xff] }
 0x13a   : > { %4325 = vmatprep.subr.mxu1 %v755_v1  ;;  %4291 = vmatpush3.msra.mxu0 %v707_v2  ;;  %v805_v63 = vld [vmem:[#allocation5 + $0xf38] sm:$0xff]  ;;  %v820_v1 = vld [vmem:[#allocation5 + $0xfb0] sm:$0xff] }
 0x13b   : > { %4326 = vmatpush3.msra.mxu1 %v739_v3  ;;  %4292 = vmatprep.subr.mxu0 %v722_v4  ;;  %v772_v2 = vld [vmem:[#allocation5 + $0xe30] sm:$0xff]  ;;  %v787_v4 = vld [vmem:[#allocation5 + $0xea8] sm:$0xff] }
 0x13c   : > { %4327 = vmatprep.subr.mxu1 %v754_v5  ;;  %4293 = vmatpush3.msra.mxu0 %v706_v6  ;;  %v804_v3 = vld [vmem:[#allocation5 + $0xf30] sm:$0xff]  ;;  %v819_v5 = vld [vmem:[#allocation5 + $0xfa8] sm:$0xff] }
 0x13d   : > { %4328 = vmatpush3.msra.mxu1 %v738_v7  ;;  %4294 = vmatprep.subr.mxu0 %v721_v8  ;;  %v771_v6 = vld [vmem:[#allocation5 + $0xe28] sm:$0xff]  ;;  %v786_v8 = vld [vmem:[#allocation5 + $0xea0] sm:$0xff] }
 0x13e   : > { %4329 = vmatprep.subr.mxu1 %v753_v9  ;;  %4295 = vmatpush3.msra.mxu0 %v705_v10  ;;  %v803_v7 = vld [vmem:[#allocation5 + $0xf28] sm:$0xff]  ;;  %v818_v9 = vld [vmem:[#allocation5 + $0xfa0] sm:$0xff] }
 0x13f   : > { %4330 = vmatpush3.msra.mxu1 %v737_v11  ;;  %4296 = vmatprep.subr.mxu0 %v720_v12  ;;  %v770_v10 = vld [vmem:[#allocation5 + $0xe20] sm:$0xff]  ;;  %v785_v12 = vld [vmem:[#allocation5 + $0xe98] sm:$0xff] }
 0x140   : > { %4331 = vmatprep.subr.mxu1 %v752_v13  ;;  %4297 = vmatpush3.msra.mxu0 %v704_v14  ;;  %v802_v11 = vld [vmem:[#allocation5 + $0xf20] sm:$0xff]  ;;  %v817_v13 = vld [vmem:[#allocation5 + $0xf98] sm:$0xff] }
 0x141   : > { %4332 = vmatpush3.msra.mxu1 %v736_v15  ;;  %4298 = vmatprep.subr.mxu0 %v719_v16  ;;  %v769_v14 = vld [vmem:[#allocation5 + $0xe18] sm:$0xff]  ;;  %v784_v16 = vld [vmem:[#allocation5 + $0xe90] sm:$0xff] }
 0x142   : > { %4333 = vmatprep.subr.mxu1 %v751_v17  ;;  %4299 = vmatpush3.msra.mxu0 %v703_v18  ;;  %v801_v15 = vld [vmem:[#allocation5 + $0xf18] sm:$0xff]  ;;  %v816_v17 = vld [vmem:[#allocation5 + $0xf90] sm:$0xff] }
 0x143   : > { %4334 = vmatpush3.msra.mxu1 %v735_v19  ;;  %4300 = vmatprep.subr.mxu0 %v718_v20  ;;  %v768_v18 = vld [vmem:[#allocation5 + $0xe10] sm:$0xff]  ;;  %v783_v20 = vld [vmem:[#allocation5 + $0xe88] sm:$0xff] }
 0x144   : > { %4335 = vmatprep.subr.mxu1 %v750_v21  ;;  %4301 = vmatpush3.msra.mxu0 %v702_v22  ;;  %v800_v19 = vld [vmem:[#allocation5 + $0xf10] sm:$0xff]  ;;  %v815_v21 = vld [vmem:[#allocation5 + $0xf88] sm:$0xff] }
 0x145   : > { %2246 = vmatprep.mubr.f32.mxu0 %v279_v23  ;;  %4336 = vmatpush3.msra.mxu1 %v734_v24  ;;  %v767_v22 = vld [vmem:[#allocation5 + $0xe08] sm:$0xff]  ;;  %v782_v24 = vld [vmem:[#allocation5 + $0xe80] sm:$0xff] }
 0x146   : > { %2247 = vmatmul.mubr.f32.vlgmr.msra.gmra.mxu0 %v278_v25  ;;  %2316 = vmatprep.mubr.f32.mxu1 %v281_v26  ;;  %v799_v23 = vld [vmem:[#allocation5 + $0xf08] sm:$0xff]  ;;  %v814_v25 = vld [vmem:[#allocation5 + $0xf80] sm:$0xff] }
 0x147   : > { %4340 = vmatprep.subr.mxu0 %v797_v27  ;;  %4375 = vmatprep.subr.mxu1 %v829_v28  ;;  %v766_v26 = vld [vmem:[#allocation5 + $0xe00] sm:$0xff]  ;;  %v283_v27 = vld [vmem:[%s5436_s10 + $0xe8] sm:$0xff] }
 0x148   : > { %2317 = vmatmul.mubr.f32.vlgmr.msra.gmra.mxu1 %v280_v29  ;;  %4341 = vmatpush3.msra.mxu0 %v781_v30  ;;  %v798_v28 = vld [vmem:[#allocation5 + $0xf00] sm:$0xff]  ;;  %v285_v30 = vld [vmem:[%s5436_s10 + $0xf8] sm:$0xff] }
 0x149   : > { %4376 = vmatpush3.msra.mxu1 %v813_v31  ;;  %4342 = vmatprep.subr.mxu0 %v796_v32  ;;  %v282_v29 = vld [vmem:[%s5436_s10 + $0xe0] sm:$0xff]  ;;  %v861_v31 = vld [vmem:[#allocation5 + $0x10f8] sm:$0xff] }
 0x14a   : > { %4377 = vmatprep.subr.mxu1 %v828_v33  ;;  %4343 = vmatpush3.msra.mxu0 %v780_v34  ;;  %v893_v32 = vld [vmem:[#allocation5 + $0x11f8] sm:$0xff]  ;;  %v284_v33 = vld [vmem:[%s5436_s10 + $0xf0] sm:$0xff] }
 0x14b   : > { %4378 = vmatpush3.msra.mxu1 %v812_v35  ;;  %4344 = vmatprep.subr.mxu0 %v795_v36  ;;  %v845_v34 = vld [vmem:[#allocation5 + $0x1078] sm:$0xff]  ;;  %v860_v36 = vld [vmem:[#allocation5 + $0x10f0] sm:$0xff] }
 0x14c   : > { %4379 = vmatprep.subr.mxu1 %v827_v37  ;;  %4345 = vmatpush3.msra.mxu0 %v779_v38  ;;  %v877_v35 = vld [vmem:[#allocation5 + $0x1178] sm:$0xff]  ;;  %v892_v37 = vld [vmem:[#allocation5 + $0x11f0] sm:$0xff] }
 0x14d   : > { %4380 = vmatpush3.msra.mxu1 %v811_v39  ;;  %4346 = vmatprep.subr.mxu0 %v794_v40  ;;  %v844_v38 = vld [vmem:[#allocation5 + $0x1070] sm:$0xff]  ;;  %v859_v40 = vld [vmem:[#allocation5 + $0x10e8] sm:$0xff] }
 0x14e   : > { %4381 = vmatprep.subr.mxu1 %v826_v41  ;;  %4347 = vmatpush3.msra.mxu0 %v778_v42  ;;  %v876_v39 = vld [vmem:[#allocation5 + $0x1170] sm:$0xff]  ;;  %v891_v41 = vld [vmem:[#allocation5 + $0x11e8] sm:$0xff] }
 0x14f   : > { %4382 = vmatpush3.msra.mxu1 %v810_v43  ;;  %4348 = vmatprep.subr.mxu0 %v793_v44  ;;  %v843_v42 = vld [vmem:[#allocation5 + $0x1068] sm:$0xff]  ;;  %v858_v44 = vld [vmem:[#allocation5 + $0x10e0] sm:$0xff] }
 0x150   : > { %4383 = vmatprep.subr.mxu1 %v825_v45  ;;  %4349 = vmatpush3.msra.mxu0 %v777_v46  ;;  %v875_v43 = vld [vmem:[#allocation5 + $0x1168] sm:$0xff]  ;;  %v890_v45 = vld [vmem:[#allocation5 + $0x11e0] sm:$0xff] }
 0x151   : > { %4384 = vmatpush3.msra.mxu1 %v809_v47  ;;  %4350 = vmatprep.subr.mxu0 %v792_v48  ;;  %v842_v46 = vld [vmem:[#allocation5 + $0x1060] sm:$0xff]  ;;  %v857_v48 = vld [vmem:[#allocation5 + $0x10d8] sm:$0xff] }
 0x152   : > { %4385 = vmatprep.subr.mxu1 %v824_v49  ;;  %4351 = vmatpush3.msra.mxu0 %v776_v50  ;;  %v874_v47 = vld [vmem:[#allocation5 + $0x1160] sm:$0xff]  ;;  %v889_v49 = vld [vmem:[#allocation5 + $0x11d8] sm:$0xff] }
 0x153   : > { %4386 = vmatpush3.msra.mxu1 %v808_v51  ;;  %4352 = vmatprep.subr.mxu0 %v791_v52  ;;  %v841_v50 = vld [vmem:[#allocation5 + $0x1058] sm:$0xff]  ;;  %v856_v52 = vld [vmem:[#allocation5 + $0x10d0] sm:$0xff] }
 0x154   : > { %4387 = vmatprep.subr.mxu1 %v823_v53  ;;  %4353 = vmatpush3.msra.mxu0 %v775_v54  ;;  %v873_v51 = vld [vmem:[#allocation5 + $0x1158] sm:$0xff]  ;;  %v888_v53 = vld [vmem:[#allocation5 + $0x11d0] sm:$0xff] }
 0x155   : > { %4388 = vmatpush3.msra.mxu1 %v807_v55  ;;  %4354 = vmatprep.subr.mxu0 %v790_v56  ;;  %v840_v54 = vld [vmem:[#allocation5 + $0x1050] sm:$0xff]  ;;  %v855_v56 = vld [vmem:[#allocation5 + $0x10c8] sm:$0xff] }
 0x156   : > { %4389 = vmatprep.subr.mxu1 %v822_v57  ;;  %4355 = vmatpush3.msra.mxu0 %v774_v58  ;;  %v872_v55 = vld [vmem:[#allocation5 + $0x1150] sm:$0xff]  ;;  %v887_v57 = vld [vmem:[#allocation5 + $0x11c8] sm:$0xff] }
 0x157   : > { %4390 = vmatpush3.msra.mxu1 %v806_v59  ;;  %4356 = vmatprep.subr.mxu0 %v789_v60  ;;  %v839_v58 = vld [vmem:[#allocation5 + $0x1048] sm:$0xff]  ;;  %v854_v60 = vld [vmem:[#allocation5 + $0x10c0] sm:$0xff] }
 0x158   : > { %4391 = vmatprep.subr.mxu1 %v821_v61  ;;  %4357 = vmatpush3.msra.mxu0 %v773_v62  ;;  %v871_v59 = vld [vmem:[#allocation5 + $0x1148] sm:$0xff]  ;;  %v886_v61 = vld [vmem:[#allocation5 + $0x11c0] sm:$0xff] }
 0x159   : > { %4392 = vmatpush3.msra.mxu1 %v805_v63  ;;  %4358 = vmatprep.subr.mxu0 %v788_v0  ;;  %v838_v62 = vld [vmem:[#allocation5 + $0x1040] sm:$0xff]  ;;  %v853_v0 = vld [vmem:[#allocation5 + $0x10b8] sm:$0xff] }
 0x15a   : > { %4393 = vmatprep.subr.mxu1 %v820_v1  ;;  %4359 = vmatpush3.msra.mxu0 %v772_v2  ;;  %v870_v63 = vld [vmem:[#allocation5 + $0x1140] sm:$0xff]  ;;  %v885_v1 = vld [vmem:[#allocation5 + $0x11b8] sm:$0xff] }
 0x15b   : > { %4394 = vmatpush3.msra.mxu1 %v804_v3  ;;  %4360 = vmatprep.subr.mxu0 %v787_v4  ;;  %v837_v2 = vld [vmem:[#allocation5 + $0x1038] sm:$0xff]  ;;  %v852_v4 = vld [vmem:[#allocation5 + $0x10b0] sm:$0xff] }
 0x15c   : > { %4395 = vmatprep.subr.mxu1 %v819_v5  ;;  %4361 = vmatpush3.msra.mxu0 %v771_v6  ;;  %v869_v3 = vld [vmem:[#allocation5 + $0x1138] sm:$0xff]  ;;  %v884_v5 = vld [vmem:[#allocation5 + $0x11b0] sm:$0xff] }
 0x15d   : > { %4396 = vmatpush3.msra.mxu1 %v803_v7  ;;  %4362 = vmatprep.subr.mxu0 %v786_v8  ;;  %v836_v6 = vld [vmem:[#allocation5 + $0x1030] sm:$0xff]  ;;  %v851_v8 = vld [vmem:[#allocation5 + $0x10a8] sm:$0xff] }
 0x15e   : > { %4397 = vmatprep.subr.mxu1 %v818_v9  ;;  %4363 = vmatpush3.msra.mxu0 %v770_v10  ;;  %v868_v7 = vld [vmem:[#allocation5 + $0x1130] sm:$0xff]  ;;  %v883_v9 = vld [vmem:[#allocation5 + $0x11a8] sm:$0xff] }
 0x15f   : > { %4398 = vmatpush3.msra.mxu1 %v802_v11  ;;  %4364 = vmatprep.subr.mxu0 %v785_v12  ;;  %v835_v10 = vld [vmem:[#allocation5 + $0x1028] sm:$0xff]  ;;  %v850_v12 = vld [vmem:[#allocation5 + $0x10a0] sm:$0xff] }
 0x160   : > { %4399 = vmatprep.subr.mxu1 %v817_v13  ;;  %4365 = vmatpush3.msra.mxu0 %v769_v14  ;;  %v867_v11 = vld [vmem:[#allocation5 + $0x1128] sm:$0xff]  ;;  %v882_v13 = vld [vmem:[#allocation5 + $0x11a0] sm:$0xff] }
 0x161   : > { %4400 = vmatpush3.msra.mxu1 %v801_v15  ;;  %4366 = vmatprep.subr.mxu0 %v784_v16  ;;  %v834_v14 = vld [vmem:[#allocation5 + $0x1020] sm:$0xff]  ;;  %v849_v16 = vld [vmem:[#allocation5 + $0x1098] sm:$0xff] }
 0x162   : > { %4401 = vmatprep.subr.mxu1 %v816_v17  ;;  %4367 = vmatpush3.msra.mxu0 %v768_v18  ;;  %v866_v15 = vld [vmem:[#allocation5 + $0x1120] sm:$0xff]  ;;  %v881_v17 = vld [vmem:[#allocation5 + $0x1198] sm:$0xff] }
 0x163   : > { %4402 = vmatpush3.msra.mxu1 %v800_v19  ;;  %4368 = vmatprep.subr.mxu0 %v783_v20  ;;  %v833_v18 = vld [vmem:[#allocation5 + $0x1018] sm:$0xff]  ;;  %v848_v20 = vld [vmem:[#allocation5 + $0x1090] sm:$0xff] }
 0x164   : > { %4403 = vmatprep.subr.mxu1 %v815_v21  ;;  %4369 = vmatpush3.msra.mxu0 %v767_v22  ;;  %v865_v19 = vld [vmem:[#allocation5 + $0x1118] sm:$0xff]  ;;  %v880_v21 = vld [vmem:[#allocation5 + $0x1190] sm:$0xff] }
 0x165   : > { %4404 = vmatpush3.msra.mxu1 %v799_v23  ;;  %4370 = vmatprep.subr.mxu0 %v782_v24  ;;  %v832_v22 = vld [vmem:[#allocation5 + $0x1010] sm:$0xff]  ;;  %v847_v24 = vld [vmem:[#allocation5 + $0x1088] sm:$0xff] }
 0x166   : > { %4405 = vmatprep.subr.mxu1 %v814_v25  ;;  %4371 = vmatpush3.msra.mxu0 %v766_v26  ;;  %v864_v23 = vld [vmem:[#allocation5 + $0x1110] sm:$0xff]  ;;  %v879_v25 = vld [vmem:[#allocation5 + $0x1188] sm:$0xff] }
 0x167   : > { %2386 = vmatprep.mubr.f32.mxu0 %v283_v27  ;;  %4406 = vmatpush3.msra.mxu1 %v798_v28  ;;  %v831_v26 = vld [vmem:[#allocation5 + $0x1008] sm:$0xff]  ;;  %v846_v28 = vld [vmem:[#allocation5 + $0x1080] sm:$0xff] }
 0x168   : > { %2387 = vmatmul.mubr.f32.vlgmr.msra.gmra.mxu0 %v282_v29  ;;  %2456 = vmatprep.mubr.f32.mxu1 %v285_v30  ;;  %v863_v27 = vld [vmem:[#allocation5 + $0x1108] sm:$0xff]  ;;  %v878_v29 = vld [vmem:[#allocation5 + $0x1180] sm:$0xff] }
 0x169   : > { %4410 = vmatprep.subr.mxu0 %v861_v31  ;;  %4445 = vmatprep.subr.mxu1 %v893_v32  ;;  %v830_v30 = vld [vmem:[#allocation5 + $0x1000] sm:$0xff]  ;;  %v287_v31 = vld [vmem:[%s5436_s10 + $0x108] sm:$0xff] }
 0x16a   : > { %2457 = vmatmul.mubr.f32.vlgmr.msra.gmra.mxu1 %v284_v33  ;;  %4411 = vmatpush3.msra.mxu0 %v845_v34  ;;  %v862_v32 = vld [vmem:[#allocation5 + $0x1100] sm:$0xff]  ;;  %v289_v34 = vld [vmem:[%s5436_s10 + $0x118] sm:$0xff] }
 0x16b   : > { %4446 = vmatpush3.msra.mxu1 %v877_v35  ;;  %4412 = vmatprep.subr.mxu0 %v860_v36  ;;  %v286_v33 = vld [vmem:[%s5436_s10 + $0x100] sm:$0xff]  ;;  %v925_v35 = vld [vmem:[#allocation5 + $0x12f8] sm:$0xff] }
 0x16c   : > { %4447 = vmatprep.subr.mxu1 %v892_v37  ;;  %4413 = vmatpush3.msra.mxu0 %v844_v38  ;;  %v957_v36 = vld [vmem:[#allocation5 + $0x13f8] sm:$0xff]  ;;  %v288_v37 = vld [vmem:[%s5436_s10 + $0x110] sm:$0xff] }
 0x16d   : > { %4448 = vmatpush3.msra.mxu1 %v876_v39  ;;  %4414 = vmatprep.subr.mxu0 %v859_v40  ;;  %v909_v38 = vld [vmem:[#allocation5 + $0x1278] sm:$0xff]  ;;  %v924_v40 = vld [vmem:[#allocation5 + $0x12f0] sm:$0xff] }
 0x16e   : > { %4449 = vmatprep.subr.mxu1 %v891_v41  ;;  %4415 = vmatpush3.msra.mxu0 %v843_v42  ;;  %v941_v39 = vld [vmem:[#allocation5 + $0x1378] sm:$0xff]  ;;  %v956_v41 = vld [vmem:[#allocation5 + $0x13f0] sm:$0xff] }
 0x16f   : > { %4450 = vmatpush3.msra.mxu1 %v875_v43  ;;  %4416 = vmatprep.subr.mxu0 %v858_v44  ;;  %v908_v42 = vld [vmem:[#allocation5 + $0x1270] sm:$0xff]  ;;  %v923_v44 = vld [vmem:[#allocation5 + $0x12e8] sm:$0xff] }
 0x170   : > { %4451 = vmatprep.subr.mxu1 %v890_v45  ;;  %4417 = vmatpush3.msra.mxu0 %v842_v46  ;;  %v940_v43 = vld [vmem:[#allocation5 + $0x1370] sm:$0xff]  ;;  %v955_v45 = vld [vmem:[#allocation5 + $0x13e8] sm:$0xff] }
 0x171   : > { %4452 = vmatpush3.msra.mxu1 %v874_v47  ;;  %4418 = vmatprep.subr.mxu0 %v857_v48  ;;  %v907_v46 = vld [vmem:[#allocation5 + $0x1268] sm:$0xff]  ;;  %v922_v48 = vld [vmem:[#allocation5 + $0x12e0] sm:$0xff] }
 0x172   : > { %4453 = vmatprep.subr.mxu1 %v889_v49  ;;  %4419 = vmatpush3.msra.mxu0 %v841_v50  ;;  %v939_v47 = vld [vmem:[#allocation5 + $0x1368] sm:$0xff]  ;;  %v954_v49 = vld [vmem:[#allocation5 + $0x13e0] sm:$0xff] }
 0x173   : > { %4454 = vmatpush3.msra.mxu1 %v873_v51  ;;  %4420 = vmatprep.subr.mxu0 %v856_v52  ;;  %v906_v50 = vld [vmem:[#allocation5 + $0x1260] sm:$0xff]  ;;  %v921_v52 = vld [vmem:[#allocation5 + $0x12d8] sm:$0xff] }
 0x174   : > { %4455 = vmatprep.subr.mxu1 %v888_v53  ;;  %4421 = vmatpush3.msra.mxu0 %v840_v54  ;;  %v938_v51 = vld [vmem:[#allocation5 + $0x1360] sm:$0xff]  ;;  %v953_v53 = vld [vmem:[#allocation5 + $0x13d8] sm:$0xff] }
 0x175   : > { %4456 = vmatpush3.msra.mxu1 %v872_v55  ;;  %4422 = vmatprep.subr.mxu0 %v855_v56  ;;  %v905_v54 = vld [vmem:[#allocation5 + $0x1258] sm:$0xff]  ;;  %v920_v56 = vld [vmem:[#allocation5 + $0x12d0] sm:$0xff] }
 0x176   : > { %4457 = vmatprep.subr.mxu1 %v887_v57  ;;  %4423 = vmatpush3.msra.mxu0 %v839_v58  ;;  %v937_v55 = vld [vmem:[#allocation5 + $0x1358] sm:$0xff]  ;;  %v952_v57 = vld [vmem:[#allocation5 + $0x13d0] sm:$0xff] }
 0x177   : > { %4458 = vmatpush3.msra.mxu1 %v871_v59  ;;  %4424 = vmatprep.subr.mxu0 %v854_v60  ;;  %v904_v58 = vld [vmem:[#allocation5 + $0x1250] sm:$0xff]  ;;  %v919_v60 = vld [vmem:[#allocation5 + $0x12c8] sm:$0xff] }
 0x178   : > { %4459 = vmatprep.subr.mxu1 %v886_v61  ;;  %4425 = vmatpush3.msra.mxu0 %v838_v62  ;;  %v936_v59 = vld [vmem:[#allocation5 + $0x1350] sm:$0xff]  ;;  %v951_v61 = vld [vmem:[#allocation5 + $0x13c8] sm:$0xff] }
 0x179   : > { %4460 = vmatpush3.msra.mxu1 %v870_v63  ;;  %4426 = vmatprep.subr.mxu0 %v853_v0  ;;  %v903_v62 = vld [vmem:[#allocation5 + $0x1248] sm:$0xff]  ;;  %v918_v0 = vld [vmem:[#allocation5 + $0x12c0] sm:$0xff] }
 0x17a   : > { %4461 = vmatprep.subr.mxu1 %v885_v1  ;;  %4427 = vmatpush3.msra.mxu0 %v837_v2  ;;  %v935_v63 = vld [vmem:[#allocation5 + $0x1348] sm:$0xff]  ;;  %v950_v1 = vld [vmem:[#allocation5 + $0x13c0] sm:$0xff] }
 0x17b   : > { %4462 = vmatpush3.msra.mxu1 %v869_v3  ;;  %4428 = vmatprep.subr.mxu0 %v852_v4  ;;  %v902_v2 = vld [vmem:[#allocation5 + $0x1240] sm:$0xff]  ;;  %v917_v4 = vld [vmem:[#allocation5 + $0x12b8] sm:$0xff] }
 0x17c   : > { %4463 = vmatprep.subr.mxu1 %v884_v5  ;;  %4429 = vmatpush3.msra.mxu0 %v836_v6  ;;  %v934_v3 = vld [vmem:[#allocation5 + $0x1340] sm:$0xff]  ;;  %v949_v5 = vld [vmem:[#allocation5 + $0x13b8] sm:$0xff] }
 0x17d   : > { %4464 = vmatpush3.msra.mxu1 %v868_v7  ;;  %4430 = vmatprep.subr.mxu0 %v851_v8  ;;  %v901_v6 = vld [vmem:[#allocation5 + $0x1238] sm:$0xff]  ;;  %v916_v8 = vld [vmem:[#allocation5 + $0x12b0] sm:$0xff] }
 0x17e   : > { %4465 = vmatprep.subr.mxu1 %v883_v9  ;;  %4431 = vmatpush3.msra.mxu0 %v835_v10  ;;  %v933_v7 = vld [vmem:[#allocation5 + $0x1338] sm:$0xff]  ;;  %v948_v9 = vld [vmem:[#allocation5 + $0x13b0] sm:$0xff] }
 0x17f   : > { %4466 = vmatpush3.msra.mxu1 %v867_v11  ;;  %4432 = vmatprep.subr.mxu0 %v850_v12  ;;  %v900_v10 = vld [vmem:[#allocation5 + $0x1230] sm:$0xff]  ;;  %v915_v12 = vld [vmem:[#allocation5 + $0x12a8] sm:$0xff] }
 0x180   : > { %4467 = vmatprep.subr.mxu1 %v882_v13  ;;  %4433 = vmatpush3.msra.mxu0 %v834_v14  ;;  %v932_v11 = vld [vmem:[#allocation5 + $0x1330] sm:$0xff]  ;;  %v947_v13 = vld [vmem:[#allocation5 + $0x13a8] sm:$0xff] }
 0x181   : > { %4468 = vmatpush3.msra.mxu1 %v866_v15  ;;  %4434 = vmatprep.subr.mxu0 %v849_v16  ;;  %v899_v14 = vld [vmem:[#allocation5 + $0x1228] sm:$0xff]  ;;  %v914_v16 = vld [vmem:[#allocation5 + $0x12a0] sm:$0xff] }
 0x182   : > { %4469 = vmatprep.subr.mxu1 %v881_v17  ;;  %4435 = vmatpush3.msra.mxu0 %v833_v18  ;;  %v931_v15 = vld [vmem:[#allocation5 + $0x1328] sm:$0xff]  ;;  %v946_v17 = vld [vmem:[#allocation5 + $0x13a0] sm:$0xff] }
 0x183   : > { %4470 = vmatpush3.msra.mxu1 %v865_v19  ;;  %4436 = vmatprep.subr.mxu0 %v848_v20  ;;  %v898_v18 = vld [vmem:[#allocation5 + $0x1220] sm:$0xff]  ;;  %v913_v20 = vld [vmem:[#allocation5 + $0x1298] sm:$0xff] }
 0x184   : > { %4471 = vmatprep.subr.mxu1 %v880_v21  ;;  %4437 = vmatpush3.msra.mxu0 %v832_v22  ;;  %v930_v19 = vld [vmem:[#allocation5 + $0x1320] sm:$0xff]  ;;  %v945_v21 = vld [vmem:[#allocation5 + $0x1398] sm:$0xff] }
 0x185   : > { %4472 = vmatpush3.msra.mxu1 %v864_v23  ;;  %4438 = vmatprep.subr.mxu0 %v847_v24  ;;  %v897_v22 = vld [vmem:[#allocation5 + $0x1218] sm:$0xff]  ;;  %v912_v24 = vld [vmem:[#allocation5 + $0x1290] sm:$0xff] }
 0x186   : > { %4473 = vmatprep.subr.mxu1 %v879_v25  ;;  %4439 = vmatpush3.msra.mxu0 %v831_v26  ;;  %v929_v23 = vld [vmem:[#allocation5 + $0x1318] sm:$0xff]  ;;  %v944_v25 = vld [vmem:[#allocation5 + $0x1390] sm:$0xff] }
 0x187   : > { %4474 = vmatpush3.msra.mxu1 %v863_v27  ;;  %4440 = vmatprep.subr.mxu0 %v846_v28  ;;  %v896_v26 = vld [vmem:[#allocation5 + $0x1210] sm:$0xff]  ;;  %v911_v28 = vld [vmem:[#allocation5 + $0x1288] sm:$0xff] }
 0x188   : > { %4475 = vmatprep.subr.mxu1 %v878_v29  ;;  %4441 = vmatpush3.msra.mxu0 %v830_v30  ;;  %v928_v27 = vld [vmem:[#allocation5 + $0x1310] sm:$0xff]  ;;  %v943_v29 = vld [vmem:[#allocation5 + $0x1388] sm:$0xff] }
 0x189   : > { %2526 = vmatprep.mubr.f32.mxu0 %v287_v31  ;;  %4476 = vmatpush3.msra.mxu1 %v862_v32  ;;  %v895_v30 = vld [vmem:[#allocation5 + $0x1208] sm:$0xff]  ;;  %v910_v32 = vld [vmem:[#allocation5 + $0x1280] sm:$0xff] }
 0x18a   : > { %2527 = vmatmul.mubr.f32.vlgmr.msra.gmra.mxu0 %v286_v33  ;;  %2596 = vmatprep.mubr.f32.mxu1 %v289_v34  ;;  %v927_v31 = vld [vmem:[#allocation5 + $0x1308] sm:$0xff]  ;;  %v942_v33 = vld [vmem:[#allocation5 + $0x1380] sm:$0xff] }
 0x18b   : > { %4480 = vmatprep.subr.mxu0 %v925_v35  ;;  %4515 = vmatprep.subr.mxu1 %v957_v36  ;;  %v894_v34 = vld [vmem:[#allocation5 + $0x1200] sm:$0xff]  ;;  %v291_v35 = vld [vmem:[%s5436_s10 + $0x128] sm:$0xff] }
 0x18c   : > { %2597 = vmatmul.mubr.f32.vlgmr.msra.gmra.mxu1 %v288_v37  ;;  %4481 = vmatpush3.msra.mxu0 %v909_v38  ;;  %v926_v36 = vld [vmem:[#allocation5 + $0x1300] sm:$0xff]  ;;  %v293_v38 = vld [vmem:[%s5436_s10 + $0x138] sm:$0xff] }
 0x18d   : > { %4516 = vmatpush3.msra.mxu1 %v941_v39  ;;  %4482 = vmatprep.subr.mxu0 %v924_v40  ;;  %v290_v37 = vld [vmem:[%s5436_s10 + $0x120] sm:$0xff]  ;;  %v989_v39 = vld [vmem:[#allocation5 + $0x14f8] sm:$0xff] }
 0x18e   : > { %4517 = vmatprep.subr.mxu1 %v956_v41  ;;  %4483 = vmatpush3.msra.mxu0 %v908_v42  ;;  %v1021_v40 = vld [vmem:[#allocation5 + $0x15f8] sm:$0xff]  ;;  %v292_v41 = vld [vmem:[%s5436_s10 + $0x130] sm:$0xff] }
 0x18f   : > { %4518 = vmatpush3.msra.mxu1 %v940_v43  ;;  %4484 = vmatprep.subr.mxu0 %v923_v44  ;;  %v973_v42 = vld [vmem:[#allocation5 + $0x1478] sm:$0xff]  ;;  %v988_v44 = vld [vmem:[#allocation5 + $0x14f0] sm:$0xff] }
 0x190   : > { %4519 = vmatprep.subr.mxu1 %v955_v45  ;;  %4485 = vmatpush3.msra.mxu0 %v907_v46  ;;  %v1005_v43 = vld [vmem:[#allocation5 + $0x1578] sm:$0xff]  ;;  %v1020_v45 = vld [vmem:[#allocation5 + $0x15f0] sm:$0xff] }
 0x191   : > { %4520 = vmatpush3.msra.mxu1 %v939_v47  ;;  %4486 = vmatprep.subr.mxu0 %v922_v48  ;;  %v972_v46 = vld [vmem:[#allocation5 + $0x1470] sm:$0xff]  ;;  %v987_v48 = vld [vmem:[#allocation5 + $0x14e8] sm:$0xff] }
 0x192   : > { %4521 = vmatprep.subr.mxu1 %v954_v49  ;;  %4487 = vmatpush3.msra.mxu0 %v906_v50  ;;  %v1004_v47 = vld [vmem:[#allocation5 + $0x1570] sm:$0xff]  ;;  %v1019_v49 = vld [vmem:[#allocation5 + $0x15e8] sm:$0xff] }
 0x193   : > { %4522 = vmatpush3.msra.mxu1 %v938_v51  ;;  %4488 = vmatprep.subr.mxu0 %v921_v52  ;;  %v971_v50 = vld [vmem:[#allocation5 + $0x1468] sm:$0xff]  ;;  %v986_v52 = vld [vmem:[#allocation5 + $0x14e0] sm:$0xff] }
 0x194   : > { %4523 = vmatprep.subr.mxu1 %v953_v53  ;;  %4489 = vmatpush3.msra.mxu0 %v905_v54  ;;  %v1003_v51 = vld [vmem:[#allocation5 + $0x1568] sm:$0xff]  ;;  %v1018_v53 = vld [vmem:[#allocation5 + $0x15e0] sm:$0xff] }
 0x195   : > { %4524 = vmatpush3.msra.mxu1 %v937_v55  ;;  %4490 = vmatprep.subr.mxu0 %v920_v56  ;;  %v970_v54 = vld [vmem:[#allocation5 + $0x1460] sm:$0xff]  ;;  %v985_v56 = vld [vmem:[#allocation5 + $0x14d8] sm:$0xff] }
 0x196   : > { %4525 = vmatprep.subr.mxu1 %v952_v57  ;;  %4491 = vmatpush3.msra.mxu0 %v904_v58  ;;  %v1002_v55 = vld [vmem:[#allocation5 + $0x1560] sm:$0xff]  ;;  %v1017_v57 = vld [vmem:[#allocation5 + $0x15d8] sm:$0xff] }
 0x197   : > { %4526 = vmatpush3.msra.mxu1 %v936_v59  ;;  %4492 = vmatprep.subr.mxu0 %v919_v60  ;;  %v969_v58 = vld [vmem:[#allocation5 + $0x1458] sm:$0xff]  ;;  %v984_v60 = vld [vmem:[#allocation5 + $0x14d0] sm:$0xff] }
 0x198   : > { %4527 = vmatprep.subr.mxu1 %v951_v61  ;;  %4493 = vmatpush3.msra.mxu0 %v903_v62  ;;  %v1001_v59 = vld [vmem:[#allocation5 + $0x1558] sm:$0xff]  ;;  %v1016_v61 = vld [vmem:[#allocation5 + $0x15d0] sm:$0xff] }
 0x199   : > { %4528 = vmatpush3.msra.mxu1 %v935_v63  ;;  %4494 = vmatprep.subr.mxu0 %v918_v0  ;;  %v968_v62 = vld [vmem:[#allocation5 + $0x1450] sm:$0xff]  ;;  %v983_v0 = vld [vmem:[#allocation5 + $0x14c8] sm:$0xff] }
 0x19a   : > { %4529 = vmatprep.subr.mxu1 %v950_v1  ;;  %4495 = vmatpush3.msra.mxu0 %v902_v2  ;;  %v1000_v63 = vld [vmem:[#allocation5 + $0x1550] sm:$0xff]  ;;  %v1015_v1 = vld [vmem:[#allocation5 + $0x15c8] sm:$0xff] }
 0x19b   : > { %4530 = vmatpush3.msra.mxu1 %v934_v3  ;;  %4496 = vmatprep.subr.mxu0 %v917_v4  ;;  %v967_v2 = vld [vmem:[#allocation5 + $0x1448] sm:$0xff]  ;;  %v982_v4 = vld [vmem:[#allocation5 + $0x14c0] sm:$0xff] }
 0x19c   : > { %4531 = vmatprep.subr.mxu1 %v949_v5  ;;  %4497 = vmatpush3.msra.mxu0 %v901_v6  ;;  %v999_v3 = vld [vmem:[#allocation5 + $0x1548] sm:$0xff]  ;;  %v1014_v5 = vld [vmem:[#allocation5 + $0x15c0] sm:$0xff] }
 0x19d   : > { %4532 = vmatpush3.msra.mxu1 %v933_v7  ;;  %4498 = vmatprep.subr.mxu0 %v916_v8  ;;  %v966_v6 = vld [vmem:[#allocation5 + $0x1440] sm:$0xff]  ;;  %v981_v8 = vld [vmem:[#allocation5 + $0x14b8] sm:$0xff] }
 0x19e   : > { %4533 = vmatprep.subr.mxu1 %v948_v9  ;;  %4499 = vmatpush3.msra.mxu0 %v900_v10  ;;  %v998_v7 = vld [vmem:[#allocation5 + $0x1540] sm:$0xff]  ;;  %v1013_v9 = vld [vmem:[#allocation5 + $0x15b8] sm:$0xff] }
 0x19f   : > { %4534 = vmatpush3.msra.mxu1 %v932_v11  ;;  %4500 = vmatprep.subr.mxu0 %v915_v12  ;;  %v965_v10 = vld [vmem:[#allocation5 + $0x1438] sm:$0xff]  ;;  %v980_v12 = vld [vmem:[#allocation5 + $0x14b0] sm:$0xff] }
 0x1a0   : > { %4535 = vmatprep.subr.mxu1 %v947_v13  ;;  %4501 = vmatpush3.msra.mxu0 %v899_v14  ;;  %v997_v11 = vld [vmem:[#allocation5 + $0x1538] sm:$0xff]  ;;  %v1012_v13 = vld [vmem:[#allocation5 + $0x15b0] sm:$0xff] }
 0x1a1   : > { %4536 = vmatpush3.msra.mxu1 %v931_v15  ;;  %4502 = vmatprep.subr.mxu0 %v914_v16  ;;  %v964_v14 = vld [vmem:[#allocation5 + $0x1430] sm:$0xff]  ;;  %v979_v16 = vld [vmem:[#allocation5 + $0x14a8] sm:$0xff] }
 0x1a2   : > { %4537 = vmatprep.subr.mxu1 %v946_v17  ;;  %4503 = vmatpush3.msra.mxu0 %v898_v18  ;;  %v996_v15 = vld [vmem:[#allocation5 + $0x1530] sm:$0xff]  ;;  %v1011_v17 = vld [vmem:[#allocation5 + $0x15a8] sm:$0xff] }
 0x1a3   : > { %4538 = vmatpush3.msra.mxu1 %v930_v19  ;;  %4504 = vmatprep.subr.mxu0 %v913_v20  ;;  %v963_v18 = vld [vmem:[#allocation5 + $0x1428] sm:$0xff]  ;;  %v978_v20 = vld [vmem:[#allocation5 + $0x14a0] sm:$0xff] }
 0x1a4   : > { %4539 = vmatprep.subr.mxu1 %v945_v21  ;;  %4505 = vmatpush3.msra.mxu0 %v897_v22  ;;  %v995_v19 = vld [vmem:[#allocation5 + $0x1528] sm:$0xff]  ;;  %v1010_v21 = vld [vmem:[#allocation5 + $0x15a0] sm:$0xff] }
 0x1a5   : > { %4540 = vmatpush3.msra.mxu1 %v929_v23  ;;  %4506 = vmatprep.subr.mxu0 %v912_v24  ;;  %v962_v22 = vld [vmem:[#allocation5 + $0x1420] sm:$0xff]  ;;  %v977_v24 = vld [vmem:[#allocation5 + $0x1498] sm:$0xff] }
 0x1a6   : > { %4541 = vmatprep.subr.mxu1 %v944_v25  ;;  %4507 = vmatpush3.msra.mxu0 %v896_v26  ;;  %v994_v23 = vld [vmem:[#allocation5 + $0x1520] sm:$0xff]  ;;  %v1009_v25 = vld [vmem:[#allocation5 + $0x1598] sm:$0xff] }
 0x1a7   : > { %4542 = vmatpush3.msra.mxu1 %v928_v27  ;;  %4508 = vmatprep.subr.mxu0 %v911_v28  ;;  %v961_v26 = vld [vmem:[#allocation5 + $0x1418] sm:$0xff]  ;;  %v976_v28 = vld [vmem:[#allocation5 + $0x1490] sm:$0xff] }
 0x1a8   : > { %4543 = vmatprep.subr.mxu1 %v943_v29  ;;  %4509 = vmatpush3.msra.mxu0 %v895_v30  ;;  %v993_v27 = vld [vmem:[#allocation5 + $0x1518] sm:$0xff]  ;;  %v1008_v29 = vld [vmem:[#allocation5 + $0x1590] sm:$0xff] }
 0x1a9   : > { %4544 = vmatpush3.msra.mxu1 %v927_v31  ;;  %4510 = vmatprep.subr.mxu0 %v910_v32  ;;  %v960_v30 = vld [vmem:[#allocation5 + $0x1410] sm:$0xff]  ;;  %v975_v32 = vld [vmem:[#allocation5 + $0x1488] sm:$0xff] }
 0x1aa   : > { %4545 = vmatprep.subr.mxu1 %v942_v33  ;;  %4511 = vmatpush3.msra.mxu0 %v894_v34  ;;  %v992_v31 = vld [vmem:[#allocation5 + $0x1510] sm:$0xff]  ;;  %v1007_v33 = vld [vmem:[#allocation5 + $0x1588] sm:$0xff] }
 0x1ab   : > { %2666 = vmatprep.mubr.f32.mxu0 %v291_v35  ;;  %4546 = vmatpush3.msra.mxu1 %v926_v36  ;;  %v959_v34 = vld [vmem:[#allocation5 + $0x1408] sm:$0xff]  ;;  %v974_v36 = vld [vmem:[#allocation5 + $0x1480] sm:$0xff] }
 0x1ac   : > { %2667 = vmatmul.mubr.f32.vlgmr.msra.gmra.mxu0 %v290_v37  ;;  %2736 = vmatprep.mubr.f32.mxu1 %v293_v38  ;;  %v991_v35 = vld [vmem:[#allocation5 + $0x1508] sm:$0xff]  ;;  %v1006_v37 = vld [vmem:[#allocation5 + $0x1580] sm:$0xff] }
 0x1ad   : > { %4550 = vmatprep.subr.mxu0 %v989_v39  ;;  %4585 = vmatprep.subr.mxu1 %v1021_v40  ;;  %v958_v38 = vld [vmem:[#allocation5 + $0x1400] sm:$0xff]  ;;  %v295_v39 = vld [vmem:[%s5436_s10 + $0x148] sm:$0xff] }
 0x1ae   : > { %2737 = vmatmul.mubr.f32.vlgmr.msra.gmra.mxu1 %v292_v41  ;;  %4551 = vmatpush3.msra.mxu0 %v973_v42  ;;  %v990_v40 = vld [vmem:[#allocation5 + $0x1500] sm:$0xff]  ;;  %v297_v42 = vld [vmem:[%s5436_s10 + $0x158] sm:$0xff] }
 0x1af   : > { %4586 = vmatpush3.msra.mxu1 %v1005_v43  ;;  %4552 = vmatprep.subr.mxu0 %v988_v44  ;;  %v294_v41 = vld [vmem:[%s5436_s10 + $0x140] sm:$0xff]  ;;  %v1053_v43 = vld [vmem:[#allocation5 + $0x16f8] sm:$0xff] }
 0x1b0   : > { %4587 = vmatprep.subr.mxu1 %v1020_v45  ;;  %4553 = vmatpush3.msra.mxu0 %v972_v46  ;;  %v1085_v44 = vld [vmem:[#allocation5 + $0x17f8] sm:$0xff]  ;;  %v296_v45 = vld [vmem:[%s5436_s10 + $0x150] sm:$0xff] }
 0x1b1   : > { %4588 = vmatpush3.msra.mxu1 %v1004_v47  ;;  %4554 = vmatprep.subr.mxu0 %v987_v48  ;;  %v1037_v46 = vld [vmem:[#allocation5 + $0x1678] sm:$0xff]  ;;  %v1052_v48 = vld [vmem:[#allocation5 + $0x16f0] sm:$0xff] }
 0x1b2   : > { %4589 = vmatprep.subr.mxu1 %v1019_v49  ;;  %4555 = vmatpush3.msra.mxu0 %v971_v50  ;;  %v1069_v47 = vld [vmem:[#allocation5 + $0x1778] sm:$0xff]  ;;  %v1084_v49 = vld [vmem:[#allocation5 + $0x17f0] sm:$0xff] }
 0x1b3   : > { %4590 = vmatpush3.msra.mxu1 %v1003_v51  ;;  %4556 = vmatprep.subr.mxu0 %v986_v52  ;;  %v1036_v50 = vld [vmem:[#allocation5 + $0x1670] sm:$0xff]  ;;  %v1051_v52 = vld [vmem:[#allocation5 + $0x16e8] sm:$0xff] }
 0x1b4   : > { %4591 = vmatprep.subr.mxu1 %v1018_v53  ;;  %4557 = vmatpush3.msra.mxu0 %v970_v54  ;;  %v1068_v51 = vld [vmem:[#allocation5 + $0x1770] sm:$0xff]  ;;  %v1083_v53 = vld [vmem:[#allocation5 + $0x17e8] sm:$0xff] }
 0x1b5   : > { %4592 = vmatpush3.msra.mxu1 %v1002_v55  ;;  %4558 = vmatprep.subr.mxu0 %v985_v56  ;;  %v1035_v54 = vld [vmem:[#allocation5 + $0x1668] sm:$0xff]  ;;  %v1050_v56 = vld [vmem:[#allocation5 + $0x16e0] sm:$0xff] }
 0x1b6   : > { %4593 = vmatprep.subr.mxu1 %v1017_v57  ;;  %4559 = vmatpush3.msra.mxu0 %v969_v58  ;;  %v1067_v55 = vld [vmem:[#allocation5 + $0x1768] sm:$0xff]  ;;  %v1082_v57 = vld [vmem:[#allocation5 + $0x17e0] sm:$0xff] }
 0x1b7   : > { %4594 = vmatpush3.msra.mxu1 %v1001_v59  ;;  %4560 = vmatprep.subr.mxu0 %v984_v60  ;;  %v1034_v58 = vld [vmem:[#allocation5 + $0x1660] sm:$0xff]  ;;  %v1049_v60 = vld [vmem:[#allocation5 + $0x16d8] sm:$0xff] }
 0x1b8   : > { %4595 = vmatprep.subr.mxu1 %v1016_v61  ;;  %4561 = vmatpush3.msra.mxu0 %v968_v62  ;;  %v1066_v59 = vld [vmem:[#allocation5 + $0x1760] sm:$0xff]  ;;  %v1081_v61 = vld [vmem:[#allocation5 + $0x17d8] sm:$0xff] }
 0x1b9   : > { %4596 = vmatpush3.msra.mxu1 %v1000_v63  ;;  %4562 = vmatprep.subr.mxu0 %v983_v0  ;;  %v1033_v62 = vld [vmem:[#allocation5 + $0x1658] sm:$0xff]  ;;  %v1048_v0 = vld [vmem:[#allocation5 + $0x16d0] sm:$0xff] }
 0x1ba   : > { %4597 = vmatprep.subr.mxu1 %v1015_v1  ;;  %4563 = vmatpush3.msra.mxu0 %v967_v2  ;;  %v1065_v63 = vld [vmem:[#allocation5 + $0x1758] sm:$0xff]  ;;  %v1080_v1 = vld [vmem:[#allocation5 + $0x17d0] sm:$0xff] }
 0x1bb   : > { %4598 = vmatpush3.msra.mxu1 %v999_v3  ;;  %4564 = vmatprep.subr.mxu0 %v982_v4  ;;  %v1032_v2 = vld [vmem:[#allocation5 + $0x1650] sm:$0xff]  ;;  %v1047_v4 = vld [vmem:[#allocation5 + $0x16c8] sm:$0xff] }
 0x1bc   : > { %4599 = vmatprep.subr.mxu1 %v1014_v5  ;;  %4565 = vmatpush3.msra.mxu0 %v966_v6  ;;  %v1064_v3 = vld [vmem:[#allocation5 + $0x1750] sm:$0xff]  ;;  %v1079_v5 = vld [vmem:[#allocation5 + $0x17c8] sm:$0xff] }
 0x1bd   : > { %4600 = vmatpush3.msra.mxu1 %v998_v7  ;;  %4566 = vmatprep.subr.mxu0 %v981_v8  ;;  %v1031_v6 = vld [vmem:[#allocation5 + $0x1648] sm:$0xff]  ;;  %v1046_v8 = vld [vmem:[#allocation5 + $0x16c0] sm:$0xff] }
 0x1be   : > { %4601 = vmatprep.subr.mxu1 %v1013_v9  ;;  %4567 = vmatpush3.msra.mxu0 %v965_v10  ;;  %v1063_v7 = vld [vmem:[#allocation5 + $0x1748] sm:$0xff]  ;;  %v1078_v9 = vld [vmem:[#allocation5 + $0x17c0] sm:$0xff] }
 0x1bf   : > { %4602 = vmatpush3.msra.mxu1 %v997_v11  ;;  %4568 = vmatprep.subr.mxu0 %v980_v12  ;;  %v1030_v10 = vld [vmem:[#allocation5 + $0x1640] sm:$0xff]  ;;  %v1045_v12 = vld [vmem:[#allocation5 + $0x16b8] sm:$0xff] }
 0x1c0   : > { %4603 = vmatprep.subr.mxu1 %v1012_v13  ;;  %4569 = vmatpush3.msra.mxu0 %v964_v14  ;;  %v1062_v11 = vld [vmem:[#allocation5 + $0x1740] sm:$0xff]  ;;  %v1077_v13 = vld [vmem:[#allocation5 + $0x17b8] sm:$0xff] }
 0x1c1   : > { %4604 = vmatpush3.msra.mxu1 %v996_v15  ;;  %4570 = vmatprep.subr.mxu0 %v979_v16  ;;  %v1029_v14 = vld [vmem:[#allocation5 + $0x1638] sm:$0xff]  ;;  %v1044_v16 = vld [vmem:[#allocation5 + $0x16b0] sm:$0xff] }
 0x1c2   : > { %4605 = vmatprep.subr.mxu1 %v1011_v17  ;;  %4571 = vmatpush3.msra.mxu0 %v963_v18  ;;  %v1061_v15 = vld [vmem:[#allocation5 + $0x1738] sm:$0xff]  ;;  %v1076_v17 = vld [vmem:[#allocation5 + $0x17b0] sm:$0xff] }
 0x1c3   : > { %4606 = vmatpush3.msra.mxu1 %v995_v19  ;;  %4572 = vmatprep.subr.mxu0 %v978_v20  ;;  %v1028_v18 = vld [vmem:[#allocation5 + $0x1630] sm:$0xff]  ;;  %v1043_v20 = vld [vmem:[#allocation5 + $0x16a8] sm:$0xff] }
 0x1c4   : > { %4607 = vmatprep.subr.mxu1 %v1010_v21  ;;  %4573 = vmatpush3.msra.mxu0 %v962_v22  ;;  %v1060_v19 = vld [vmem:[#allocation5 + $0x1730] sm:$0xff]  ;;  %v1075_v21 = vld [vmem:[#allocation5 + $0x17a8] sm:$0xff] }
 0x1c5   : > { %4608 = vmatpush3.msra.mxu1 %v994_v23  ;;  %4574 = vmatprep.subr.mxu0 %v977_v24  ;;  %v1027_v22 = vld [vmem:[#allocation5 + $0x1628] sm:$0xff]  ;;  %v1042_v24 = vld [vmem:[#allocation5 + $0x16a0] sm:$0xff] }
 0x1c6   : > { %4609 = vmatprep.subr.mxu1 %v1009_v25  ;;  %4575 = vmatpush3.msra.mxu0 %v961_v26  ;;  %v1059_v23 = vld [vmem:[#allocation5 + $0x1728] sm:$0xff]  ;;  %v1074_v25 = vld [vmem:[#allocation5 + $0x17a0] sm:$0xff] }
 0x1c7   : > { %4610 = vmatpush3.msra.mxu1 %v993_v27  ;;  %4576 = vmatprep.subr.mxu0 %v976_v28  ;;  %v1026_v26 = vld [vmem:[#allocation5 + $0x1620] sm:$0xff]  ;;  %v1041_v28 = vld [vmem:[#allocation5 + $0x1698] sm:$0xff] }
 0x1c8   : > { %4611 = vmatprep.subr.mxu1 %v1008_v29  ;;  %4577 = vmatpush3.msra.mxu0 %v960_v30  ;;  %v1058_v27 = vld [vmem:[#allocation5 + $0x1720] sm:$0xff]  ;;  %v1073_v29 = vld [vmem:[#allocation5 + $0x1798] sm:$0xff] }
 0x1c9   : > { %4612 = vmatpush3.msra.mxu1 %v992_v31  ;;  %4578 = vmatprep.subr.mxu0 %v975_v32  ;;  %v1025_v30 = vld [vmem:[#allocation5 + $0x1618] sm:$0xff]  ;;  %v1040_v32 = vld [vmem:[#allocation5 + $0x1690] sm:$0xff] }
 0x1ca   : > { %4613 = vmatprep.subr.mxu1 %v1007_v33  ;;  %4579 = vmatpush3.msra.mxu0 %v959_v34  ;;  %v1057_v31 = vld [vmem:[#allocation5 + $0x1718] sm:$0xff]  ;;  %v1072_v33 = vld [vmem:[#allocation5 + $0x1790] sm:$0xff] }
 0x1cb   : > { %4614 = vmatpush3.msra.mxu1 %v991_v35  ;;  %4580 = vmatprep.subr.mxu0 %v974_v36  ;;  %v1024_v34 = vld [vmem:[#allocation5 + $0x1610] sm:$0xff]  ;;  %v1039_v36 = vld [vmem:[#allocation5 + $0x1688] sm:$0xff] }
 0x1cc   : > { %4615 = vmatprep.subr.mxu1 %v1006_v37  ;;  %4581 = vmatpush3.msra.mxu0 %v958_v38  ;;  %v1056_v35 = vld [vmem:[#allocation5 + $0x1710] sm:$0xff]  ;;  %v1071_v37 = vld [vmem:[#allocation5 + $0x1788] sm:$0xff] }
 0x1cd   : > { %2806 = vmatprep.mubr.f32.mxu0 %v295_v39  ;;  %4616 = vmatpush3.msra.mxu1 %v990_v40  ;;  %v1023_v38 = vld [vmem:[#allocation5 + $0x1608] sm:$0xff]  ;;  %v1038_v40 = vld [vmem:[#allocation5 + $0x1680] sm:$0xff] }
 0x1ce   : > { %2807 = vmatmul.mubr.f32.vlgmr.msra.gmra.mxu0 %v294_v41  ;;  %2876 = vmatprep.mubr.f32.mxu1 %v297_v42  ;;  %v1055_v39 = vld [vmem:[#allocation5 + $0x1708] sm:$0xff]  ;;  %v1070_v41 = vld [vmem:[#allocation5 + $0x1780] sm:$0xff] }
 0x1cf   : > { %4620 = vmatprep.subr.mxu0 %v1053_v43  ;;  %4655 = vmatprep.subr.mxu1 %v1085_v44  ;;  %v1022_v42 = vld [vmem:[#allocation5 + $0x1600] sm:$0xff]  ;;  %v299_v43 = vld [vmem:[%s5436_s10 + $0x168] sm:$0xff] }
 0x1d0   : > { %2877 = vmatmul.mubr.f32.vlgmr.msra.gmra.mxu1 %v296_v45  ;;  %4621 = vmatpush3.msra.mxu0 %v1037_v46  ;;  %v1054_v44 = vld [vmem:[#allocation5 + $0x1700] sm:$0xff]  ;;  %v301_v46 = vld [vmem:[%s5436_s10 + $0x178] sm:$0xff] }
 0x1d1   : > { %4656 = vmatpush3.msra.mxu1 %v1069_v47  ;;  %4622 = vmatprep.subr.mxu0 %v1052_v48  ;;  %v298_v45 = vld [vmem:[%s5436_s10 + $0x160] sm:$0xff]  ;;  %v1117_v47 = vld [vmem:[#allocation5 + $0x18f8] sm:$0xff] }
 0x1d2   : > { %4657 = vmatprep.subr.mxu1 %v1084_v49  ;;  %4623 = vmatpush3.msra.mxu0 %v1036_v50  ;;  %v1149_v48 = vld [vmem:[#allocation5 + $0x19f8] sm:$0xff]  ;;  %v300_v49 = vld [vmem:[%s5436_s10 + $0x170] sm:$0xff] }
 0x1d3   : > { %4658 = vmatpush3.msra.mxu1 %v1068_v51  ;;  %4624 = vmatprep.subr.mxu0 %v1051_v52  ;;  %v1101_v50 = vld [vmem:[#allocation5 + $0x1878] sm:$0xff]  ;;  %v1116_v52 = vld [vmem:[#allocation5 + $0x18f0] sm:$0xff] }
 0x1d4   : > { %4659 = vmatprep.subr.mxu1 %v1083_v53  ;;  %4625 = vmatpush3.msra.mxu0 %v1035_v54  ;;  %v1133_v51 = vld [vmem:[#allocation5 + $0x1978] sm:$0xff]  ;;  %v1148_v53 = vld [vmem:[#allocation5 + $0x19f0] sm:$0xff] }
 0x1d5   : > { %4660 = vmatpush3.msra.mxu1 %v1067_v55  ;;  %4626 = vmatprep.subr.mxu0 %v1050_v56  ;;  %v1100_v54 = vld [vmem:[#allocation5 + $0x1870] sm:$0xff]  ;;  %v1115_v56 = vld [vmem:[#allocation5 + $0x18e8] sm:$0xff] }
 0x1d6   : > { %4661 = vmatprep.subr.mxu1 %v1082_v57  ;;  %4627 = vmatpush3.msra.mxu0 %v1034_v58  ;;  %v1132_v55 = vld [vmem:[#allocation5 + $0x1970] sm:$0xff]  ;;  %v1147_v57 = vld [vmem:[#allocation5 + $0x19e8] sm:$0xff] }
 0x1d7   : > { %4662 = vmatpush3.msra.mxu1 %v1066_v59  ;;  %4628 = vmatprep.subr.mxu0 %v1049_v60  ;;  %v1099_v58 = vld [vmem:[#allocation5 + $0x1868] sm:$0xff]  ;;  %v1114_v60 = vld [vmem:[#allocation5 + $0x18e0] sm:$0xff] }
 0x1d8   : > { %4663 = vmatprep.subr.mxu1 %v1081_v61  ;;  %4629 = vmatpush3.msra.mxu0 %v1033_v62  ;;  %v1131_v59 = vld [vmem:[#allocation5 + $0x1968] sm:$0xff]  ;;  %v1146_v61 = vld [vmem:[#allocation5 + $0x19e0] sm:$0xff] }
 0x1d9   : > { %4664 = vmatpush3.msra.mxu1 %v1065_v63  ;;  %4630 = vmatprep.subr.mxu0 %v1048_v0  ;;  %v1098_v62 = vld [vmem:[#allocation5 + $0x1860] sm:$0xff]  ;;  %v1113_v0 = vld [vmem:[#allocation5 + $0x18d8] sm:$0xff] }
 0x1da   : > { %4665 = vmatprep.subr.mxu1 %v1080_v1  ;;  %4631 = vmatpush3.msra.mxu0 %v1032_v2  ;;  %v1130_v63 = vld [vmem:[#allocation5 + $0x1960] sm:$0xff]  ;;  %v1145_v1 = vld [vmem:[#allocation5 + $0x19d8] sm:$0xff] }
 0x1db   : > { %4666 = vmatpush3.msra.mxu1 %v1064_v3  ;;  %4632 = vmatprep.subr.mxu0 %v1047_v4  ;;  %v1097_v2 = vld [vmem:[#allocation5 + $0x1858] sm:$0xff]  ;;  %v1112_v4 = vld [vmem:[#allocation5 + $0x18d0] sm:$0xff] }
 0x1dc   : > { %4667 = vmatprep.subr.mxu1 %v1079_v5  ;;  %4633 = vmatpush3.msra.mxu0 %v1031_v6  ;;  %v1129_v3 = vld [vmem:[#allocation5 + $0x1958] sm:$0xff]  ;;  %v1144_v5 = vld [vmem:[#allocation5 + $0x19d0] sm:$0xff] }
 0x1dd   : > { %4668 = vmatpush3.msra.mxu1 %v1063_v7  ;;  %4634 = vmatprep.subr.mxu0 %v1046_v8  ;;  %v1096_v6 = vld [vmem:[#allocation5 + $0x1850] sm:$0xff]  ;;  %v1111_v8 = vld [vmem:[#allocation5 + $0x18c8] sm:$0xff] }
 0x1de   : > { %4669 = vmatprep.subr.mxu1 %v1078_v9  ;;  %4635 = vmatpush3.msra.mxu0 %v1030_v10  ;;  %v1128_v7 = vld [vmem:[#allocation5 + $0x1950] sm:$0xff]  ;;  %v1143_v9 = vld [vmem:[#allocation5 + $0x19c8] sm:$0xff] }
 0x1df   : > { %4670 = vmatpush3.msra.mxu1 %v1062_v11  ;;  %4636 = vmatprep.subr.mxu0 %v1045_v12  ;;  %v1095_v10 = vld [vmem:[#allocation5 + $0x1848] sm:$0xff]  ;;  %v1110_v12 = vld [vmem:[#allocation5 + $0x18c0] sm:$0xff] }
 0x1e0   : > { %4671 = vmatprep.subr.mxu1 %v1077_v13  ;;  %4637 = vmatpush3.msra.mxu0 %v1029_v14  ;;  %v1127_v11 = vld [vmem:[#allocation5 + $0x1948] sm:$0xff]  ;;  %v1142_v13 = vld [vmem:[#allocation5 + $0x19c0] sm:$0xff] }
 0x1e1   : > { %4672 = vmatpush3.msra.mxu1 %v1061_v15  ;;  %4638 = vmatprep.subr.mxu0 %v1044_v16  ;;  %v1094_v14 = vld [vmem:[#allocation5 + $0x1840] sm:$0xff]  ;;  %v1109_v16 = vld [vmem:[#allocation5 + $0x18b8] sm:$0xff] }
 0x1e2   : > { %4673 = vmatprep.subr.mxu1 %v1076_v17  ;;  %4639 = vmatpush3.msra.mxu0 %v1028_v18  ;;  %v1126_v15 = vld [vmem:[#allocation5 + $0x1940] sm:$0xff]  ;;  %v1141_v17 = vld [vmem:[#allocation5 + $0x19b8] sm:$0xff] }
 0x1e3   : > { %4674 = vmatpush3.msra.mxu1 %v1060_v19  ;;  %4640 = vmatprep.subr.mxu0 %v1043_v20  ;;  %v1093_v18 = vld [vmem:[#allocation5 + $0x1838] sm:$0xff]  ;;  %v1108_v20 = vld [vmem:[#allocation5 + $0x18b0] sm:$0xff] }
 0x1e4   : > { %4675 = vmatprep.subr.mxu1 %v1075_v21  ;;  %4641 = vmatpush3.msra.mxu0 %v1027_v22  ;;  %v1125_v19 = vld [vmem:[#allocation5 + $0x1938] sm:$0xff]  ;;  %v1140_v21 = vld [vmem:[#allocation5 + $0x19b0] sm:$0xff] }
 0x1e5   : > { %4676 = vmatpush3.msra.mxu1 %v1059_v23  ;;  %4642 = vmatprep.subr.mxu0 %v1042_v24  ;;  %v1092_v22 = vld [vmem:[#allocation5 + $0x1830] sm:$0xff]  ;;  %v1107_v24 = vld [vmem:[#allocation5 + $0x18a8] sm:$0xff] }
 0x1e6   : > { %4677 = vmatprep.subr.mxu1 %v1074_v25  ;;  %4643 = vmatpush3.msra.mxu0 %v1026_v26  ;;  %v1124_v23 = vld [vmem:[#allocation5 + $0x1930] sm:$0xff]  ;;  %v1139_v25 = vld [vmem:[#allocation5 + $0x19a8] sm:$0xff] }
 0x1e7   : > { %4678 = vmatpush3.msra.mxu1 %v1058_v27  ;;  %4644 = vmatprep.subr.mxu0 %v1041_v28  ;;  %v1091_v26 = vld [vmem:[#allocation5 + $0x1828] sm:$0xff]  ;;  %v1106_v28 = vld [vmem:[#allocation5 + $0x18a0] sm:$0xff] }
 0x1e8   : > { %4679 = vmatprep.subr.mxu1 %v1073_v29  ;;  %4645 = vmatpush3.msra.mxu0 %v1025_v30  ;;  %v1123_v27 = vld [vmem:[#allocation5 + $0x1928] sm:$0xff]  ;;  %v1138_v29 = vld [vmem:[#allocation5 + $0x19a0] sm:$0xff] }
 0x1e9   : > { %4680 = vmatpush3.msra.mxu1 %v1057_v31  ;;  %4646 = vmatprep.subr.mxu0 %v1040_v32  ;;  %v1090_v30 = vld [vmem:[#allocation5 + $0x1820] sm:$0xff]  ;;  %v1105_v32 = vld [vmem:[#allocation5 + $0x1898] sm:$0xff] }
 0x1ea   : > { %4681 = vmatprep.subr.mxu1 %v1072_v33  ;;  %4647 = vmatpush3.msra.mxu0 %v1024_v34  ;;  %v1122_v31 = vld [vmem:[#allocation5 + $0x1920] sm:$0xff]  ;;  %v1137_v33 = vld [vmem:[#allocation5 + $0x1998] sm:$0xff] }
 0x1eb   : > { %4682 = vmatpush3.msra.mxu1 %v1056_v35  ;;  %4648 = vmatprep.subr.mxu0 %v1039_v36  ;;  %v1089_v34 = vld [vmem:[#allocation5 + $0x1818] sm:$0xff]  ;;  %v1104_v36 = vld [vmem:[#allocation5 + $0x1890] sm:$0xff] }
 0x1ec   : > { %4683 = vmatprep.subr.mxu1 %v1071_v37  ;;  %4649 = vmatpush3.msra.mxu0 %v1023_v38  ;;  %v1121_v35 = vld [vmem:[#allocation5 + $0x1918] sm:$0xff]  ;;  %v1136_v37 = vld [vmem:[#allocation5 + $0x1990] sm:$0xff] }
 0x1ed   : > { %4684 = vmatpush3.msra.mxu1 %v1055_v39  ;;  %4650 = vmatprep.subr.mxu0 %v1038_v40  ;;  %v1088_v38 = vld [vmem:[#allocation5 + $0x1810] sm:$0xff]  ;;  %v1103_v40 = vld [vmem:[#allocation5 + $0x1888] sm:$0xff] }
 0x1ee   : > { %4685 = vmatprep.subr.mxu1 %v1070_v41  ;;  %4651 = vmatpush3.msra.mxu0 %v1022_v42  ;;  %v1120_v39 = vld [vmem:[#allocation5 + $0x1910] sm:$0xff]  ;;  %v1135_v41 = vld [vmem:[#allocation5 + $0x1988] sm:$0xff] }
 0x1ef   : > { %2946 = vmatprep.mubr.f32.mxu0 %v299_v43  ;;  %4686 = vmatpush3.msra.mxu1 %v1054_v44  ;;  %v1087_v42 = vld [vmem:[#allocation5 + $0x1808] sm:$0xff]  ;;  %v1102_v44 = vld [vmem:[#allocation5 + $0x1880] sm:$0xff] }
 0x1f0   : > { %2947 = vmatmul.mubr.f32.vlgmr.msra.gmra.mxu0 %v298_v45  ;;  %3016 = vmatprep.mubr.f32.mxu1 %v301_v46  ;;  %v1119_v43 = vld [vmem:[#allocation5 + $0x1908] sm:$0xff]  ;;  %v1134_v45 = vld [vmem:[#allocation5 + $0x1980] sm:$0xff] }
 0x1f1   : > { %4690 = vmatprep.subr.mxu0 %v1117_v47  ;;  %4725 = vmatprep.subr.mxu1 %v1149_v48  ;;  %v1086_v46 = vld [vmem:[#allocation5 + $0x1800] sm:$0xff]  ;;  %v303_v47 = vld [vmem:[%s5436_s10 + $0x188] sm:$0xff] }
 0x1f2   : > { %3017 = vmatmul.mubr.f32.vlgmr.msra.gmra.mxu1 %v300_v49  ;;  %4691 = vmatpush3.msra.mxu0 %v1101_v50  ;;  %v1118_v48 = vld [vmem:[#allocation5 + $0x1900] sm:$0xff]  ;;  %v305_v50 = vld [vmem:[%s5436_s10 + $0x198] sm:$0xff] }
 0x1f3   : > { %4726 = vmatpush3.msra.mxu1 %v1133_v51  ;;  %4692 = vmatprep.subr.mxu0 %v1116_v52  ;;  %v302_v49 = vld [vmem:[%s5436_s10 + $0x180] sm:$0xff]  ;;  %v1181_v51 = vld [vmem:[#allocation5 + $0x1af8] sm:$0xff] }
 0x1f4   : > { %4727 = vmatprep.subr.mxu1 %v1148_v53  ;;  %4693 = vmatpush3.msra.mxu0 %v1100_v54  ;;  %v1213_v52 = vld [vmem:[#allocation5 + $0x1bf8] sm:$0xff]  ;;  %v304_v53 = vld [vmem:[%s5436_s10 + $0x190] sm:$0xff] }
 0x1f5   : > { %4728 = vmatpush3.msra.mxu1 %v1132_v55  ;;  %4694 = vmatprep.subr.mxu0 %v1115_v56  ;;  %v1165_v54 = vld [vmem:[#allocation5 + $0x1a78] sm:$0xff]  ;;  %v1180_v56 = vld [vmem:[#allocation5 + $0x1af0] sm:$0xff] }
 0x1f6   : > { %4729 = vmatprep.subr.mxu1 %v1147_v57  ;;  %4695 = vmatpush3.msra.mxu0 %v1099_v58  ;;  %v1197_v55 = vld [vmem:[#allocation5 + $0x1b78] sm:$0xff]  ;;  %v1212_v57 = vld [vmem:[#allocation5 + $0x1bf0] sm:$0xff] }
 0x1f7   : > { %4730 = vmatpush3.msra.mxu1 %v1131_v59  ;;  %4696 = vmatprep.subr.mxu0 %v1114_v60  ;;  %v1164_v58 = vld [vmem:[#allocation5 + $0x1a70] sm:$0xff]  ;;  %v1179_v60 = vld [vmem:[#allocation5 + $0x1ae8] sm:$0xff] }
 0x1f8   : > { %4731 = vmatprep.subr.mxu1 %v1146_v61  ;;  %4697 = vmatpush3.msra.mxu0 %v1098_v62  ;;  %v1196_v59 = vld [vmem:[#allocation5 + $0x1b70] sm:$0xff]  ;;  %v1211_v61 = vld [vmem:[#allocation5 + $0x1be8] sm:$0xff] }
 0x1f9   : > { %4732 = vmatpush3.msra.mxu1 %v1130_v63  ;;  %4698 = vmatprep.subr.mxu0 %v1113_v0  ;;  %v1163_v62 = vld [vmem:[#allocation5 + $0x1a68] sm:$0xff]  ;;  %v1178_v0 = vld [vmem:[#allocation5 + $0x1ae0] sm:$0xff] }
 0x1fa   : > { %4733 = vmatprep.subr.mxu1 %v1145_v1  ;;  %4699 = vmatpush3.msra.mxu0 %v1097_v2  ;;  %v1195_v63 = vld [vmem:[#allocation5 + $0x1b68] sm:$0xff]  ;;  %v1210_v1 = vld [vmem:[#allocation5 + $0x1be0] sm:$0xff] }
 0x1fb   : > { %4734 = vmatpush3.msra.mxu1 %v1129_v3  ;;  %4700 = vmatprep.subr.mxu0 %v1112_v4  ;;  %v1162_v2 = vld [vmem:[#allocation5 + $0x1a60] sm:$0xff]  ;;  %v1177_v4 = vld [vmem:[#allocation5 + $0x1ad8] sm:$0xff] }
 0x1fc   : > { %4735 = vmatprep.subr.mxu1 %v1144_v5  ;;  %4701 = vmatpush3.msra.mxu0 %v1096_v6  ;;  %v1194_v3 = vld [vmem:[#allocation5 + $0x1b60] sm:$0xff]  ;;  %v1209_v5 = vld [vmem:[#allocation5 + $0x1bd8] sm:$0xff] }
 0x1fd   : > { %4736 = vmatpush3.msra.mxu1 %v1128_v7  ;;  %4702 = vmatprep.subr.mxu0 %v1111_v8  ;;  %v1161_v6 = vld [vmem:[#allocation5 + $0x1a58] sm:$0xff]  ;;  %v1176_v8 = vld [vmem:[#allocation5 + $0x1ad0] sm:$0xff] }
 0x1fe   : > { %4737 = vmatprep.subr.mxu1 %v1143_v9  ;;  %4703 = vmatpush3.msra.mxu0 %v1095_v10  ;;  %v1193_v7 = vld [vmem:[#allocation5 + $0x1b58] sm:$0xff]  ;;  %v1208_v9 = vld [vmem:[#allocation5 + $0x1bd0] sm:$0xff] }
 0x1ff   : > { %4738 = vmatpush3.msra.mxu1 %v1127_v11  ;;  %4704 = vmatprep.subr.mxu0 %v1110_v12  ;;  %v1160_v10 = vld [vmem:[#allocation5 + $0x1a50] sm:$0xff]  ;;  %v1175_v12 = vld [vmem:[#allocation5 + $0x1ac8] sm:$0xff] }
 0x200   : > { %4739 = vmatprep.subr.mxu1 %v1142_v13  ;;  %4705 = vmatpush3.msra.mxu0 %v1094_v14  ;;  %v1192_v11 = vld [vmem:[#allocation5 + $0x1b50] sm:$0xff]  ;;  %v1207_v13 = vld [vmem:[#allocation5 + $0x1bc8] sm:$0xff] }
 0x201   : > { %4740 = vmatpush3.msra.mxu1 %v1126_v15  ;;  %4706 = vmatprep.subr.mxu0 %v1109_v16  ;;  %v1159_v14 = vld [vmem:[#allocation5 + $0x1a48] sm:$0xff]  ;;  %v1174_v16 = vld [vmem:[#allocation5 + $0x1ac0] sm:$0xff] }
 0x202   : > { %4741 = vmatprep.subr.mxu1 %v1141_v17  ;;  %4707 = vmatpush3.msra.mxu0 %v1093_v18  ;;  %v1191_v15 = vld [vmem:[#allocation5 + $0x1b48] sm:$0xff]  ;;  %v1206_v17 = vld [vmem:[#allocation5 + $0x1bc0] sm:$0xff] }
 0x203   : > { %4742 = vmatpush3.msra.mxu1 %v1125_v19  ;;  %4708 = vmatprep.subr.mxu0 %v1108_v20  ;;  %v1158_v18 = vld [vmem:[#allocation5 + $0x1a40] sm:$0xff]  ;;  %v1173_v20 = vld [vmem:[#allocation5 + $0x1ab8] sm:$0xff] }
 0x204   : > { %4743 = vmatprep.subr.mxu1 %v1140_v21  ;;  %4709 = vmatpush3.msra.mxu0 %v1092_v22  ;;  %v1190_v19 = vld [vmem:[#allocation5 + $0x1b40] sm:$0xff]  ;;  %v1205_v21 = vld [vmem:[#allocation5 + $0x1bb8] sm:$0xff] }
 0x205   : > { %4744 = vmatpush3.msra.mxu1 %v1124_v23  ;;  %4710 = vmatprep.subr.mxu0 %v1107_v24  ;;  %v1157_v22 = vld [vmem:[#allocation5 + $0x1a38] sm:$0xff]  ;;  %v1172_v24 = vld [vmem:[#allocation5 + $0x1ab0] sm:$0xff] }
 0x206   : > { %4745 = vmatprep.subr.mxu1 %v1139_v25  ;;  %4711 = vmatpush3.msra.mxu0 %v1091_v26  ;;  %v1189_v23 = vld [vmem:[#allocation5 + $0x1b38] sm:$0xff]  ;;  %v1204_v25 = vld [vmem:[#allocation5 + $0x1bb0] sm:$0xff] }
 0x207   : > { %4746 = vmatpush3.msra.mxu1 %v1123_v27  ;;  %4712 = vmatprep.subr.mxu0 %v1106_v28  ;;  %v1156_v26 = vld [vmem:[#allocation5 + $0x1a30] sm:$0xff]  ;;  %v1171_v28 = vld [vmem:[#allocation5 + $0x1aa8] sm:$0xff] }
 0x208   : > { %4747 = vmatprep.subr.mxu1 %v1138_v29  ;;  %4713 = vmatpush3.msra.mxu0 %v1090_v30  ;;  %v1188_v27 = vld [vmem:[#allocation5 + $0x1b30] sm:$0xff]  ;;  %v1203_v29 = vld [vmem:[#allocation5 + $0x1ba8] sm:$0xff] }
 0x209   : > { %4748 = vmatpush3.msra.mxu1 %v1122_v31  ;;  %4714 = vmatprep.subr.mxu0 %v1105_v32  ;;  %v1155_v30 = vld [vmem:[#allocation5 + $0x1a28] sm:$0xff]  ;;  %v1170_v32 = vld [vmem:[#allocation5 + $0x1aa0] sm:$0xff] }
 0x20a   : > { %4749 = vmatprep.subr.mxu1 %v1137_v33  ;;  %4715 = vmatpush3.msra.mxu0 %v1089_v34  ;;  %v1187_v31 = vld [vmem:[#allocation5 + $0x1b28] sm:$0xff]  ;;  %v1202_v33 = vld [vmem:[#allocation5 + $0x1ba0] sm:$0xff] }
 0x20b   : > { %4750 = vmatpush3.msra.mxu1 %v1121_v35  ;;  %4716 = vmatprep.subr.mxu0 %v1104_v36  ;;  %v1154_v34 = vld [vmem:[#allocation5 + $0x1a20] sm:$0xff]  ;;  %v1169_v36 = vld [vmem:[#allocation5 + $0x1a98] sm:$0xff] }
 0x20c   : > { %4751 = vmatprep.subr.mxu1 %v1136_v37  ;;  %4717 = vmatpush3.msra.mxu0 %v1088_v38  ;;  %v1186_v35 = vld [vmem:[#allocation5 + $0x1b20] sm:$0xff]  ;;  %v1201_v37 = vld [vmem:[#allocation5 + $0x1b98] sm:$0xff] }
 0x20d   : > { %4752 = vmatpush3.msra.mxu1 %v1120_v39  ;;  %4718 = vmatprep.subr.mxu0 %v1103_v40  ;;  %v1153_v38 = vld [vmem:[#allocation5 + $0x1a18] sm:$0xff]  ;;  %v1168_v40 = vld [vmem:[#allocation5 + $0x1a90] sm:$0xff] }
 0x20e   : > { %4753 = vmatprep.subr.mxu1 %v1135_v41  ;;  %4719 = vmatpush3.msra.mxu0 %v1087_v42  ;;  %v1185_v39 = vld [vmem:[#allocation5 + $0x1b18] sm:$0xff]  ;;  %v1200_v41 = vld [vmem:[#allocation5 + $0x1b90] sm:$0xff] }
 0x20f   : > { %4754 = vmatpush3.msra.mxu1 %v1119_v43  ;;  %4720 = vmatprep.subr.mxu0 %v1102_v44  ;;  %v1152_v42 = vld [vmem:[#allocation5 + $0x1a10] sm:$0xff]  ;;  %v1167_v44 = vld [vmem:[#allocation5 + $0x1a88] sm:$0xff] }
 0x210   : > { %4755 = vmatprep.subr.mxu1 %v1134_v45  ;;  %4721 = vmatpush3.msra.mxu0 %v1086_v46  ;;  %v1184_v43 = vld [vmem:[#allocation5 + $0x1b10] sm:$0xff]  ;;  %v1199_v45 = vld [vmem:[#allocation5 + $0x1b88] sm:$0xff] }
 0x211   : > { %3086 = vmatprep.mubr.f32.mxu0 %v303_v47  ;;  %4756 = vmatpush3.msra.mxu1 %v1118_v48  ;;  %v1151_v46 = vld [vmem:[#allocation5 + $0x1a08] sm:$0xff]  ;;  %v1166_v48 = vld [vmem:[#allocation5 + $0x1a80] sm:$0xff] }
 0x212   : > { %3087 = vmatmul.mubr.f32.vlgmr.msra.gmra.mxu0 %v302_v49  ;;  %3156 = vmatprep.mubr.f32.mxu1 %v305_v50  ;;  %v1183_v47 = vld [vmem:[#allocation5 + $0x1b08] sm:$0xff]  ;;  %v1198_v49 = vld [vmem:[#allocation5 + $0x1b80] sm:$0xff] }
 0x213   : > { %4760 = vmatprep.subr.mxu0 %v1181_v51  ;;  %4795 = vmatprep.subr.mxu1 %v1213_v52  ;;  %v1150_v50 = vld [vmem:[#allocation5 + $0x1a00] sm:$0xff]  ;;  %v307_v51 = vld [vmem:[%s5436_s10 + $0x1a8] sm:$0xff] }
 0x214   : > { %3157 = vmatmul.mubr.f32.vlgmr.msra.gmra.mxu1 %v304_v53  ;;  %4761 = vmatpush3.msra.mxu0 %v1165_v54  ;;  %v1182_v52 = vld [vmem:[#allocation5 + $0x1b00] sm:$0xff]  ;;  %v309_v54 = vld [vmem:[%s5436_s10 + $0x1b8] sm:$0xff] }
 0x215   : > { %4796 = vmatpush3.msra.mxu1 %v1197_v55  ;;  %4762 = vmatprep.subr.mxu0 %v1180_v56  ;;  %v306_v53 = vld [vmem:[%s5436_s10 + $0x1a0] sm:$0xff]  ;;  %v1245_v55 = vld [vmem:[#allocation5 + $0x1cf8] sm:$0xff] }
 0x216   : > { %4797 = vmatprep.subr.mxu1 %v1212_v57  ;;  %4763 = vmatpush3.msra.mxu0 %v1164_v58  ;;  %v1277_v56 = vld [vmem:[#allocation5 + $0x1df8] sm:$0xff]  ;;  %v308_v57 = vld [vmem:[%s5436_s10 + $0x1b0] sm:$0xff] }
 0x217   : > { %4798 = vmatpush3.msra.mxu1 %v1196_v59  ;;  %4764 = vmatprep.subr.mxu0 %v1179_v60  ;;  %v1229_v58 = vld [vmem:[#allocation5 + $0x1c78] sm:$0xff]  ;;  %v1244_v60 = vld [vmem:[#allocation5 + $0x1cf0] sm:$0xff] }
 0x218   : > { %4799 = vmatprep.subr.mxu1 %v1211_v61  ;;  %4765 = vmatpush3.msra.mxu0 %v1163_v62  ;;  %v1261_v59 = vld [vmem:[#allocation5 + $0x1d78] sm:$0xff]  ;;  %v1276_v61 = vld [vmem:[#allocation5 + $0x1df0] sm:$0xff] }
 0x219   : > { %4800 = vmatpush3.msra.mxu1 %v1195_v63  ;;  %4766 = vmatprep.subr.mxu0 %v1178_v0  ;;  %v1228_v62 = vld [vmem:[#allocation5 + $0x1c70] sm:$0xff]  ;;  %v1243_v0 = vld [vmem:[#allocation5 + $0x1ce8] sm:$0xff] }
 0x21a   : > { %4801 = vmatprep.subr.mxu1 %v1210_v1  ;;  %4767 = vmatpush3.msra.mxu0 %v1162_v2  ;;  %v1260_v63 = vld [vmem:[#allocation5 + $0x1d70] sm:$0xff]  ;;  %v1275_v1 = vld [vmem:[#allocation5 + $0x1de8] sm:$0xff] }
 0x21b   : > { %4802 = vmatpush3.msra.mxu1 %v1194_v3  ;;  %4768 = vmatprep.subr.mxu0 %v1177_v4  ;;  %v1227_v2 = vld [vmem:[#allocation5 + $0x1c68] sm:$0xff]  ;;  %v1242_v4 = vld [vmem:[#allocation5 + $0x1ce0] sm:$0xff] }
 0x21c   : > { %4803 = vmatprep.subr.mxu1 %v1209_v5  ;;  %4769 = vmatpush3.msra.mxu0 %v1161_v6  ;;  %v1259_v3 = vld [vmem:[#allocation5 + $0x1d68] sm:$0xff]  ;;  %v1274_v5 = vld [vmem:[#allocation5 + $0x1de0] sm:$0xff] }
 0x21d   : > { %4804 = vmatpush3.msra.mxu1 %v1193_v7  ;;  %4770 = vmatprep.subr.mxu0 %v1176_v8  ;;  %v1226_v6 = vld [vmem:[#allocation5 + $0x1c60] sm:$0xff]  ;;  %v1241_v8 = vld [vmem:[#allocation5 + $0x1cd8] sm:$0xff] }
 0x21e   : > { %4805 = vmatprep.subr.mxu1 %v1208_v9  ;;  %4771 = vmatpush3.msra.mxu0 %v1160_v10  ;;  %v1258_v7 = vld [vmem:[#allocation5 + $0x1d60] sm:$0xff]  ;;  %v1273_v9 = vld [vmem:[#allocation5 + $0x1dd8] sm:$0xff] }
 0x21f   : > { %4806 = vmatpush3.msra.mxu1 %v1192_v11  ;;  %4772 = vmatprep.subr.mxu0 %v1175_v12  ;;  %v1225_v10 = vld [vmem:[#allocation5 + $0x1c58] sm:$0xff]  ;;  %v1240_v12 = vld [vmem:[#allocation5 + $0x1cd0] sm:$0xff] }
 0x220   : > { %4807 = vmatprep.subr.mxu1 %v1207_v13  ;;  %4773 = vmatpush3.msra.mxu0 %v1159_v14  ;;  %v1257_v11 = vld [vmem:[#allocation5 + $0x1d58] sm:$0xff]  ;;  %v1272_v13 = vld [vmem:[#allocation5 + $0x1dd0] sm:$0xff] }
 0x221   : > { %4808 = vmatpush3.msra.mxu1 %v1191_v15  ;;  %4774 = vmatprep.subr.mxu0 %v1174_v16  ;;  %v1224_v14 = vld [vmem:[#allocation5 + $0x1c50] sm:$0xff]  ;;  %v1239_v16 = vld [vmem:[#allocation5 + $0x1cc8] sm:$0xff] }
 0x222   : > { %4809 = vmatprep.subr.mxu1 %v1206_v17  ;;  %4775 = vmatpush3.msra.mxu0 %v1158_v18  ;;  %v1256_v15 = vld [vmem:[#allocation5 + $0x1d50] sm:$0xff]  ;;  %v1271_v17 = vld [vmem:[#allocation5 + $0x1dc8] sm:$0xff] }
 0x223   : > { %4810 = vmatpush3.msra.mxu1 %v1190_v19  ;;  %4776 = vmatprep.subr.mxu0 %v1173_v20  ;;  %v1223_v18 = vld [vmem:[#allocation5 + $0x1c48] sm:$0xff]  ;;  %v1238_v20 = vld [vmem:[#allocation5 + $0x1cc0] sm:$0xff] }
 0x224   : > { %4811 = vmatprep.subr.mxu1 %v1205_v21  ;;  %4777 = vmatpush3.msra.mxu0 %v1157_v22  ;;  %v1255_v19 = vld [vmem:[#allocation5 + $0x1d48] sm:$0xff]  ;;  %v1270_v21 = vld [vmem:[#allocation5 + $0x1dc0] sm:$0xff] }
 0x225   : > { %4812 = vmatpush3.msra.mxu1 %v1189_v23  ;;  %4778 = vmatprep.subr.mxu0 %v1172_v24  ;;  %v1222_v22 = vld [vmem:[#allocation5 + $0x1c40] sm:$0xff]  ;;  %v1237_v24 = vld [vmem:[#allocation5 + $0x1cb8] sm:$0xff] }
 0x226   : > { %4813 = vmatprep.subr.mxu1 %v1204_v25  ;;  %4779 = vmatpush3.msra.mxu0 %v1156_v26  ;;  %v1254_v23 = vld [vmem:[#allocation5 + $0x1d40] sm:$0xff]  ;;  %v1269_v25 = vld [vmem:[#allocation5 + $0x1db8] sm:$0xff] }
 0x227   : > { %4814 = vmatpush3.msra.mxu1 %v1188_v27  ;;  %4780 = vmatprep.subr.mxu0 %v1171_v28  ;;  %v1221_v26 = vld [vmem:[#allocation5 + $0x1c38] sm:$0xff]  ;;  %v1236_v28 = vld [vmem:[#allocation5 + $0x1cb0] sm:$0xff] }
 0x228   : > { %4815 = vmatprep.subr.mxu1 %v1203_v29  ;;  %4781 = vmatpush3.msra.mxu0 %v1155_v30  ;;  %v1253_v27 = vld [vmem:[#allocation5 + $0x1d38] sm:$0xff]  ;;  %v1268_v29 = vld [vmem:[#allocation5 + $0x1db0] sm:$0xff] }
 0x229   : > { %4816 = vmatpush3.msra.mxu1 %v1187_v31  ;;  %4782 = vmatprep.subr.mxu0 %v1170_v32  ;;  %v1220_v30 = vld [vmem:[#allocation5 + $0x1c30] sm:$0xff]  ;;  %v1235_v32 = vld [vmem:[#allocation5 + $0x1ca8] sm:$0xff] }
 0x22a   : > { %4817 = vmatprep.subr.mxu1 %v1202_v33  ;;  %4783 = vmatpush3.msra.mxu0 %v1154_v34  ;;  %v1252_v31 = vld [vmem:[#allocation5 + $0x1d30] sm:$0xff]  ;;  %v1267_v33 = vld [vmem:[#allocation5 + $0x1da8] sm:$0xff] }
 0x22b   : > { %4818 = vmatpush3.msra.mxu1 %v1186_v35  ;;  %4784 = vmatprep.subr.mxu0 %v1169_v36  ;;  %v1219_v34 = vld [vmem:[#allocation5 + $0x1c28] sm:$0xff]  ;;  %v1234_v36 = vld [vmem:[#allocation5 + $0x1ca0] sm:$0xff] }
 0x22c   : > { %4819 = vmatprep.subr.mxu1 %v1201_v37  ;;  %4785 = vmatpush3.msra.mxu0 %v1153_v38  ;;  %v1251_v35 = vld [vmem:[#allocation5 + $0x1d28] sm:$0xff]  ;;  %v1266_v37 = vld [vmem:[#allocation5 + $0x1da0] sm:$0xff] }
 0x22d   : > { %4820 = vmatpush3.msra.mxu1 %v1185_v39  ;;  %4786 = vmatprep.subr.mxu0 %v1168_v40  ;;  %v1218_v38 = vld [vmem:[#allocation5 + $0x1c20] sm:$0xff]  ;;  %v1233_v40 = vld [vmem:[#allocation5 + $0x1c98] sm:$0xff] }
 0x22e   : > { %4821 = vmatprep.subr.mxu1 %v1200_v41  ;;  %4787 = vmatpush3.msra.mxu0 %v1152_v42  ;;  %v1250_v39 = vld [vmem:[#allocation5 + $0x1d20] sm:$0xff]  ;;  %v1265_v41 = vld [vmem:[#allocation5 + $0x1d98] sm:$0xff] }
 0x22f   : > { %4822 = vmatpush3.msra.mxu1 %v1184_v43  ;;  %4788 = vmatprep.subr.mxu0 %v1167_v44  ;;  %v1217_v42 = vld [vmem:[#allocation5 + $0x1c18] sm:$0xff]  ;;  %v1232_v44 = vld [vmem:[#allocation5 + $0x1c90] sm:$0xff] }
 0x230   : > { %4823 = vmatprep.subr.mxu1 %v1199_v45  ;;  %4789 = vmatpush3.msra.mxu0 %v1151_v46  ;;  %v1249_v43 = vld [vmem:[#allocation5 + $0x1d18] sm:$0xff]  ;;  %v1264_v45 = vld [vmem:[#allocation5 + $0x1d90] sm:$0xff] }
 0x231   : > { %4824 = vmatpush3.msra.mxu1 %v1183_v47  ;;  %4790 = vmatprep.subr.mxu0 %v1166_v48  ;;  %v1216_v46 = vld [vmem:[#allocation5 + $0x1c10] sm:$0xff]  ;;  %v1231_v48 = vld [vmem:[#allocation5 + $0x1c88] sm:$0xff] }
 0x232   : > { %4825 = vmatprep.subr.mxu1 %v1198_v49  ;;  %4791 = vmatpush3.msra.mxu0 %v1150_v50  ;;  %v1248_v47 = vld [vmem:[#allocation5 + $0x1d10] sm:$0xff]  ;;  %v1263_v49 = vld [vmem:[#allocation5 + $0x1d88] sm:$0xff] }
 0x233   : > { %3226 = vmatprep.mubr.f32.mxu0 %v307_v51  ;;  %4826 = vmatpush3.msra.mxu1 %v1182_v52  ;;  %v1215_v50 = vld [vmem:[#allocation5 + $0x1c08] sm:$0xff]  ;;  %v1230_v52 = vld [vmem:[#allocation5 + $0x1c80] sm:$0xff] }
 0x234   : > { %3227 = vmatmul.mubr.f32.vlgmr.msra.gmra.mxu0 %v306_v53  ;;  %3296 = vmatprep.mubr.f32.mxu1 %v309_v54  ;;  %v1247_v51 = vld [vmem:[#allocation5 + $0x1d08] sm:$0xff]  ;;  %v1262_v53 = vld [vmem:[#allocation5 + $0x1d80] sm:$0xff] }
 0x235   : > { %4830 = vmatprep.subr.mxu0 %v1245_v55  ;;  %4865 = vmatprep.subr.mxu1 %v1277_v56  ;;  %v1214_v54 = vld [vmem:[#allocation5 + $0x1c00] sm:$0xff]  ;;  %v311_v55 = vld [vmem:[%s5436_s10 + $0x1c8] sm:$0xff] }
 0x236   : > { %3297 = vmatmul.mubr.f32.vlgmr.msra.gmra.mxu1 %v308_v57  ;;  %4831 = vmatpush3.msra.mxu0 %v1229_v58  ;;  %v1246_v56 = vld [vmem:[#allocation5 + $0x1d00] sm:$0xff]  ;;  %v313_v58 = vld [vmem:[%s5436_s10 + $0x1d8] sm:$0xff] }
 0x237   : > { %4866 = vmatpush3.msra.mxu1 %v1261_v59  ;;  %4832 = vmatprep.subr.mxu0 %v1244_v60  ;;  %v310_v57 = vld [vmem:[%s5436_s10 + $0x1c0] sm:$0xff]  ;;  %v1309_v59 = vld [vmem:[#allocation5 + $0x1ef8] sm:$0xff] }
 0x238   : > { %4867 = vmatprep.subr.mxu1 %v1276_v61  ;;  %4833 = vmatpush3.msra.mxu0 %v1228_v62  ;;  %v1341_v60 = vld [vmem:[#allocation5 + $0x1ff8] sm:$0xff]  ;;  %v312_v61 = vld [vmem:[%s5436_s10 + $0x1d0] sm:$0xff] }
 0x239   : > { %4868 = vmatpush3.msra.mxu1 %v1260_v63  ;;  %4834 = vmatprep.subr.mxu0 %v1243_v0  ;;  %v1293_v62 = vld [vmem:[#allocation5 + $0x1e78] sm:$0xff]  ;;  %v1308_v0 = vld [vmem:[#allocation5 + $0x1ef0] sm:$0xff] }
 0x23a   : > { %4869 = vmatprep.subr.mxu1 %v1275_v1  ;;  %4835 = vmatpush3.msra.mxu0 %v1227_v2  ;;  %v1325_v63 = vld [vmem:[#allocation5 + $0x1f78] sm:$0xff]  ;;  %v1340_v1 = vld [vmem:[#allocation5 + $0x1ff0] sm:$0xff] }
 0x23b   : > { %4870 = vmatpush3.msra.mxu1 %v1259_v3  ;;  %4836 = vmatprep.subr.mxu0 %v1242_v4  ;;  %v1292_v2 = vld [vmem:[#allocation5 + $0x1e70] sm:$0xff]  ;;  %v1307_v4 = vld [vmem:[#allocation5 + $0x1ee8] sm:$0xff] }
 0x23c   : > { %4871 = vmatprep.subr.mxu1 %v1274_v5  ;;  %4837 = vmatpush3.msra.mxu0 %v1226_v6  ;;  %v1324_v3 = vld [vmem:[#allocation5 + $0x1f70] sm:$0xff]  ;;  %v1339_v5 = vld [vmem:[#allocation5 + $0x1fe8] sm:$0xff] }
 0x23d   : > { %4872 = vmatpush3.msra.mxu1 %v1258_v7  ;;  %4838 = vmatprep.subr.mxu0 %v1241_v8  ;;  %v1291_v6 = vld [vmem:[#allocation5 + $0x1e68] sm:$0xff]  ;;  %v1306_v8 = vld [vmem:[#allocation5 + $0x1ee0] sm:$0xff] }
 0x23e   : > { %4873 = vmatprep.subr.mxu1 %v1273_v9  ;;  %4839 = vmatpush3.msra.mxu0 %v1225_v10  ;;  %v1323_v7 = vld [vmem:[#allocation5 + $0x1f68] sm:$0xff]  ;;  %v1338_v9 = vld [vmem:[#allocation5 + $0x1fe0] sm:$0xff] }
 0x23f   : > { %4874 = vmatpush3.msra.mxu1 %v1257_v11  ;;  %4840 = vmatprep.subr.mxu0 %v1240_v12  ;;  %v1290_v10 = vld [vmem:[#allocation5 + $0x1e60] sm:$0xff]  ;;  %v1305_v12 = vld [vmem:[#allocation5 + $0x1ed8] sm:$0xff] }
 0x240   : > { %4875 = vmatprep.subr.mxu1 %v1272_v13  ;;  %4841 = vmatpush3.msra.mxu0 %v1224_v14  ;;  %v1322_v11 = vld [vmem:[#allocation5 + $0x1f60] sm:$0xff]  ;;  %v1337_v13 = vld [vmem:[#allocation5 + $0x1fd8] sm:$0xff] }
 0x241   : > { %4876 = vmatpush3.msra.mxu1 %v1256_v15  ;;  %4842 = vmatprep.subr.mxu0 %v1239_v16  ;;  %v1289_v14 = vld [vmem:[#allocation5 + $0x1e58] sm:$0xff]  ;;  %v1304_v16 = vld [vmem:[#allocation5 + $0x1ed0] sm:$0xff] }
 0x242   : > { %4877 = vmatprep.subr.mxu1 %v1271_v17  ;;  %4843 = vmatpush3.msra.mxu0 %v1223_v18  ;;  %v1321_v15 = vld [vmem:[#allocation5 + $0x1f58] sm:$0xff]  ;;  %v1336_v17 = vld [vmem:[#allocation5 + $0x1fd0] sm:$0xff] }
 0x243   : > { %4878 = vmatpush3.msra.mxu1 %v1255_v19  ;;  %4844 = vmatprep.subr.mxu0 %v1238_v20  ;;  %v1288_v18 = vld [vmem:[#allocation5 + $0x1e50] sm:$0xff]  ;;  %v1303_v20 = vld [vmem:[#allocation5 + $0x1ec8] sm:$0xff] }
 0x244   : > { %4879 = vmatprep.subr.mxu1 %v1270_v21  ;;  %4845 = vmatpush3.msra.mxu0 %v1222_v22  ;;  %v1320_v19 = vld [vmem:[#allocation5 + $0x1f50] sm:$0xff]  ;;  %v1335_v21 = vld [vmem:[#allocation5 + $0x1fc8] sm:$0xff] }
 0x245   : > { %4880 = vmatpush3.msra.mxu1 %v1254_v23  ;;  %4846 = vmatprep.subr.mxu0 %v1237_v24  ;;  %v1287_v22 = vld [vmem:[#allocation5 + $0x1e48] sm:$0xff]  ;;  %v1302_v24 = vld [vmem:[#allocation5 + $0x1ec0] sm:$0xff] }
 0x246   : > { %4881 = vmatprep.subr.mxu1 %v1269_v25  ;;  %4847 = vmatpush3.msra.mxu0 %v1221_v26  ;;  %v1319_v23 = vld [vmem:[#allocation5 + $0x1f48] sm:$0xff]  ;;  %v1334_v25 = vld [vmem:[#allocation5 + $0x1fc0] sm:$0xff] }
 0x247   : > { %4882 = vmatpush3.msra.mxu1 %v1253_v27  ;;  %4848 = vmatprep.subr.mxu0 %v1236_v28  ;;  %v1286_v26 = vld [vmem:[#allocation5 + $0x1e40] sm:$0xff]  ;;  %v1301_v28 = vld [vmem:[#allocation5 + $0x1eb8] sm:$0xff] }
 0x248   : > { %4883 = vmatprep.subr.mxu1 %v1268_v29  ;;  %4849 = vmatpush3.msra.mxu0 %v1220_v30  ;;  %v1318_v27 = vld [vmem:[#allocation5 + $0x1f40] sm:$0xff]  ;;  %v1333_v29 = vld [vmem:[#allocation5 + $0x1fb8] sm:$0xff] }
 0x249   : > { %4884 = vmatpush3.msra.mxu1 %v1252_v31  ;;  %4850 = vmatprep.subr.mxu0 %v1235_v32  ;;  %v1285_v30 = vld [vmem:[#allocation5 + $0x1e38] sm:$0xff]  ;;  %v1300_v32 = vld [vmem:[#allocation5 + $0x1eb0] sm:$0xff] }
 0x24a   : > { %4885 = vmatprep.subr.mxu1 %v1267_v33  ;;  %4851 = vmatpush3.msra.mxu0 %v1219_v34  ;;  %v1317_v31 = vld [vmem:[#allocation5 + $0x1f38] sm:$0xff]  ;;  %v1332_v33 = vld [vmem:[#allocation5 + $0x1fb0] sm:$0xff] }
 0x24b   : > { %4886 = vmatpush3.msra.mxu1 %v1251_v35  ;;  %4852 = vmatprep.subr.mxu0 %v1234_v36  ;;  %v1284_v34 = vld [vmem:[#allocation5 + $0x1e30] sm:$0xff]  ;;  %v1299_v36 = vld [vmem:[#allocation5 + $0x1ea8] sm:$0xff] }
 0x24c   : > { %4887 = vmatprep.subr.mxu1 %v1266_v37  ;;  %4853 = vmatpush3.msra.mxu0 %v1218_v38  ;;  %v1316_v35 = vld [vmem:[#allocation5 + $0x1f30] sm:$0xff]  ;;  %v1331_v37 = vld [vmem:[#allocation5 + $0x1fa8] sm:$0xff] }
 0x24d   : > { %4888 = vmatpush3.msra.mxu1 %v1250_v39  ;;  %4854 = vmatprep.subr.mxu0 %v1233_v40  ;;  %v1283_v38 = vld [vmem:[#allocation5 + $0x1e28] sm:$0xff]  ;;  %v1298_v40 = vld [vmem:[#allocation5 + $0x1ea0] sm:$0xff] }
 0x24e   : > { %4889 = vmatprep.subr.mxu1 %v1265_v41  ;;  %4855 = vmatpush3.msra.mxu0 %v1217_v42  ;;  %v1315_v39 = vld [vmem:[#allocation5 + $0x1f28] sm:$0xff]  ;;  %v1330_v41 = vld [vmem:[#allocation5 + $0x1fa0] sm:$0xff] }
 0x24f   : > { %4890 = vmatpush3.msra.mxu1 %v1249_v43  ;;  %4856 = vmatprep.subr.mxu0 %v1232_v44  ;;  %v1282_v42 = vld [vmem:[#allocation5 + $0x1e20] sm:$0xff]  ;;  %v1297_v44 = vld [vmem:[#allocation5 + $0x1e98] sm:$0xff] }
 0x250   : > { %4891 = vmatprep.subr.mxu1 %v1264_v45  ;;  %4857 = vmatpush3.msra.mxu0 %v1216_v46  ;;  %v1314_v43 = vld [vmem:[#allocation5 + $0x1f20] sm:$0xff]  ;;  %v1329_v45 = vld [vmem:[#allocation5 + $0x1f98] sm:$0xff] }
 0x251   : > { %4892 = vmatpush3.msra.mxu1 %v1248_v47  ;;  %4858 = vmatprep.subr.mxu0 %v1231_v48  ;;  %v1281_v46 = vld [vmem:[#allocation5 + $0x1e18] sm:$0xff]  ;;  %v1296_v48 = vld [vmem:[#allocation5 + $0x1e90] sm:$0xff] }
 0x252   : > { %4893 = vmatprep.subr.mxu1 %v1263_v49  ;;  %4859 = vmatpush3.msra.mxu0 %v1215_v50  ;;  %v1313_v47 = vld [vmem:[#allocation5 + $0x1f18] sm:$0xff]  ;;  %v1328_v49 = vld [vmem:[#allocation5 + $0x1f90] sm:$0xff] }
 0x253   : > { %4894 = vmatpush3.msra.mxu1 %v1247_v51  ;;  %4860 = vmatprep.subr.mxu0 %v1230_v52  ;;  %v1280_v50 = vld [vmem:[#allocation5 + $0x1e10] sm:$0xff]  ;;  %v1295_v52 = vld [vmem:[#allocation5 + $0x1e88] sm:$0xff] }
 0x254   : > { %4895 = vmatprep.subr.mxu1 %v1262_v53  ;;  %4861 = vmatpush3.msra.mxu0 %v1214_v54  ;;  %v1312_v51 = vld [vmem:[#allocation5 + $0x1f10] sm:$0xff]  ;;  %v1327_v53 = vld [vmem:[#allocation5 + $0x1f88] sm:$0xff] }
 0x255   : > { %3366 = vmatprep.mubr.f32.mxu0 %v311_v55  ;;  %4896 = vmatpush3.msra.mxu1 %v1246_v56  ;;  %v1279_v54 = vld [vmem:[#allocation5 + $0x1e08] sm:$0xff]  ;;  %v1294_v56 = vld [vmem:[#allocation5 + $0x1e80] sm:$0xff] }
 0x256   : > { %3367 = vmatmul.mubr.f32.vlgmr.msra.gmra.mxu0 %v310_v57  ;;  %3436 = vmatprep.mubr.f32.mxu1 %v313_v58  ;;  %v1311_v55 = vld [vmem:[#allocation5 + $0x1f08] sm:$0xff]  ;;  %v1326_v57 = vld [vmem:[#allocation5 + $0x1f80] sm:$0xff] }
 0x257   : > { %4900 = vmatprep.subr.mxu0 %v1309_v59  ;;  %4935 = vmatprep.subr.mxu1 %v1341_v60  ;;  %v1278_v58 = vld [vmem:[#allocation5 + $0x1e00] sm:$0xff]  ;;  %v315_v59 = vld [vmem:[%s5436_s10 + $0x1e8] sm:$0xff] }
 0x258   : > { %3437 = vmatmul.mubr.f32.vlgmr.msra.gmra.mxu1 %v312_v61  ;;  %4901 = vmatpush3.msra.mxu0 %v1293_v62  ;;  %v1310_v60 = vld [vmem:[#allocation5 + $0x1f00] sm:$0xff]  ;;  %v317_v61 = vld [vmem:[%s5436_s10 + $0x1f8] sm:$0xff] }
 0x259   : > { %4936 = vmatpush3.msra.mxu1 %v1325_v63  ;;  %4902 = vmatprep.subr.mxu0 %v1308_v0  ;;  %v314_v62 = vld [vmem:[%s5436_s10 + $0x1e0] sm:$0xff]  ;;  %v316_v63 = vld [vmem:[%s5436_s10 + $0x1f0] sm:$0xff]  ;;  %v3598_v0 = vld [vmem:[#allocation7 + $0x78] sm:$0xff] }
 0x25a   : > { %4937 = vmatprep.subr.mxu1 %v1340_v1  ;;  %4903 = vmatpush3.msra.mxu0 %v1292_v2  ;;  %v5285_v1 = vmov 0.0   ;;  %v3597_v2 = vld [vmem:[#allocation7 + $0x70] sm:$0xff] }
 0x25b   : > { %4938 = vmatpush3.msra.mxu1 %v1324_v3  ;;  %4904 = vmatprep.subr.mxu0 %v1307_v4  ;;  %v3596_v3 = vld [vmem:[#allocation7 + $0x68] sm:$0xff]  ;;  %v3595_v4 = vld [vmem:[#allocation7 + $0x60] sm:$0xff] }
 0x25c   : > { %4939 = vmatprep.subr.mxu1 %v1339_v5  ;;  %4905 = vmatpush3.msra.mxu0 %v1291_v6  ;;  %v3594_v5 = vld [vmem:[#allocation7 + $0x58] sm:$0xff]  ;;  %v3593_v6 = vld [vmem:[#allocation7 + $0x50] sm:$0xff] }
 0x25d   : > { %4940 = vmatpush3.msra.mxu1 %v1323_v7  ;;  %4906 = vmatprep.subr.mxu0 %v1306_v8  ;;  %v3592_v7 = vld [vmem:[#allocation7 + $0x48] sm:$0xff]  ;;  %v3591_v8 = vld [vmem:[#allocation7 + $0x40] sm:$0xff] }
 0x25e   : > { %4941 = vmatprep.subr.mxu1 %v1338_v9  ;;  %4907 = vmatpush3.msra.mxu0 %v1290_v10  ;;  %v3590_v9 = vld [vmem:[#allocation7 + $0x38] sm:$0xff]  ;;  %v3589_v10 = vld [vmem:[#allocation7 + $0x30] sm:$0xff] }
 0x25f   : > { %4942 = vmatpush3.msra.mxu1 %v1322_v11  ;;  %4908 = vmatprep.subr.mxu0 %v1305_v12  ;;  %v3588_v11 = vld [vmem:[#allocation7 + $0x28] sm:$0xff]  ;;  %v3587_v12 = vld [vmem:[#allocation7 + $0x20] sm:$0xff] }
 0x260   : > { %4943 = vmatprep.subr.mxu1 %v1337_v13  ;;  %4909 = vmatpush3.msra.mxu0 %v1289_v14  ;;  %v3586_v13 = vld [vmem:[#allocation7 + $0x18] sm:$0xff]  ;;  %v3585_v14 = vld [vmem:[#allocation7 + $0x10] sm:$0xff] }
 0x261   : > { %4944 = vmatpush3.msra.mxu1 %v1321_v15  ;;  %4910 = vmatprep.subr.mxu0 %v1304_v16  ;;  %v3584_v15 = vld [vmem:[#allocation7 + $0x8] sm:$0xff]  ;;  %v3583_v16 = vld [vmem:[#allocation7] sm:$0xff] }
 0x262   : > { %4945 = vmatprep.subr.mxu1 %v1336_v17  ;;  %4911 = vmatpush3.msra.mxu0 %v1288_v18  ;;  %v3882_v17 = vpop.f32.mrf.mxu0  ;;  %v3917_v18 = vpop.f32.mrf.mxu1 }
 0x263   : > { %4946 = vmatpush3.msra.mxu1 %v1320_v19  ;;  %4912 = vmatprep.subr.mxu0 %v1303_v20 }
 0x264   : > { %4947 = vmatprep.subr.mxu1 %v1335_v21  ;;  %4913 = vmatpush3.msra.mxu0 %v1287_v22  ;;  %v3883_v19 = vpop.f32.mrf.mxu0  ;;  %v3918_v21 = vpop.f32.mrf.mxu1 }
 0x265   : > { %4948 = vmatpush3.msra.mxu1 %v1319_v23  ;;  %4914 = vmatprep.subr.mxu0 %v1302_v24  ;;  %v3884_v24 = vadd.f32 %v3883_v19, %v3882_v17 }
 0x266   : > { %4949 = vmatprep.subr.mxu1 %v1334_v25  ;;  %4915 = vmatpush3.msra.mxu0 %v1286_v26  ;;  %v3952_v20 = vpop.f32.mrf.mxu0  ;;  %v3987_v22 = vpop.f32.mrf.mxu1  ;;  %v3919_v25 = vadd.f32 %v3918_v21, %v3917_v18 }
 0x267   : > { %4950 = vmatpush3.msra.mxu1 %v1318_v27  ;;  %4916 = vmatprep.subr.mxu0 %v1301_v28 }
 0x268   : > { %4951 = vmatprep.subr.mxu1 %v1333_v29  ;;  %4917 = vmatpush3.msra.mxu0 %v1285_v30  ;;  %v3953_v23 = vpop.f32.mrf.mxu0  ;;  %v3988_v28 = vpop.f32.mrf.mxu1  ;;  %v1479_v29 = vadd.f32 %v3919_v25, %v3884_v24 }
 0x269   : > { %4952 = vmatpush3.msra.mxu1 %v1317_v31  ;;  %4918 = vmatprep.subr.mxu0 %v1300_v32  ;;  %v3954_v27 = vadd.f32 %v3953_v23, %v3952_v20 }
 0x26a   : > { %4953 = vmatprep.subr.mxu1 %v1332_v33  ;;  %4919 = vmatpush3.msra.mxu0 %v1284_v34  ;;  %v4022_v26 = vpop.f32.mrf.mxu0  ;;  %v4057_v30 = vpop.f32.mrf.mxu1  ;;  %v3989_v33 = vadd.f32 %v3988_v28, %v3987_v22 }
 0x26b   : > { %4954 = vmatpush3.msra.mxu1 %v1316_v35  ;;  %4920 = vmatprep.subr.mxu0 %v1299_v36  ;;  %v1549_v32 = vadd.f32 %v3954_v27, %v1479_v29 }
 0x26c   : > { %4955 = vmatprep.subr.mxu1 %v1331_v37  ;;  %4921 = vmatpush3.msra.mxu0 %v1283_v38  ;;  %v4023_v31 = vpop.f32.mrf.mxu0  ;;  %v4058_v36 = vpop.f32.mrf.mxu1 }
 0x26d   : > { %4956 = vmatpush3.msra.mxu1 %v1315_v39  ;;  %4922 = vmatprep.subr.mxu0 %v1298_v40  ;;  %v4024_v35 = vadd.f32 %v4023_v31, %v4022_v26  ;;  %v1619_v37 = vadd.f32 %v3989_v33, %v1549_v32 }
 0x26e   : > { %4957 = vmatprep.subr.mxu1 %v1330_v41  ;;  %4923 = vmatpush3.msra.mxu0 %v1282_v42  ;;  %v4092_v34 = vpop.f32.mrf.mxu0  ;;  %v4127_v38 = vpop.f32.mrf.mxu1  ;;  %v4059_v41 = vadd.f32 %v4058_v36, %v4057_v30 }
 0x26f   : > { %4958 = vmatpush3.msra.mxu1 %v1314_v43  ;;  %4924 = vmatprep.subr.mxu0 %v1297_v44  ;;  %v1689_v40 = vadd.f32 %v4024_v35, %v1619_v37 }
 0x270   : > { %4959 = vmatprep.subr.mxu1 %v1329_v45  ;;  %4925 = vmatpush3.msra.mxu0 %v1281_v46  ;;  %v4093_v39 = vpop.f32.mrf.mxu0  ;;  %v4128_v44 = vpop.f32.mrf.mxu1 }
 0x271   : > { %4960 = vmatpush3.msra.mxu1 %v1313_v47  ;;  %4926 = vmatprep.subr.mxu0 %v1296_v48  ;;  %v4094_v43 = vadd.f32 %v4093_v39, %v4092_v34  ;;  %v1759_v45 = vadd.f32 %v4059_v41, %v1689_v40 }
 0x272   : > { %4961 = vmatprep.subr.mxu1 %v1328_v49  ;;  %4927 = vmatpush3.msra.mxu0 %v1280_v50  ;;  %v4162_v42 = vpop.f32.mrf.mxu0  ;;  %v4197_v46 = vpop.f32.mrf.mxu1  ;;  %v4129_v49 = vadd.f32 %v4128_v44, %v4127_v38 }
 0x273   : > { %4962 = vmatpush3.msra.mxu1 %v1312_v51  ;;  %4928 = vmatprep.subr.mxu0 %v1295_v52  ;;  %v1829_v48 = vadd.f32 %v4094_v43, %v1759_v45 }
 0x274   : > { %4963 = vmatprep.subr.mxu1 %v1327_v53  ;;  %4929 = vmatpush3.msra.mxu0 %v1279_v54  ;;  %v4163_v47 = vpop.f32.mrf.mxu0  ;;  %v4198_v52 = vpop.f32.mrf.mxu1 }
 0x275   : > { %4964 = vmatpush3.msra.mxu1 %v1311_v55  ;;  %4930 = vmatprep.subr.mxu0 %v1294_v56  ;;  %v4164_v51 = vadd.f32 %v4163_v47, %v4162_v42  ;;  %v1899_v53 = vadd.f32 %v4129_v49, %v1829_v48 }
 0x276   : > { %4965 = vmatprep.subr.mxu1 %v1326_v57  ;;  %4931 = vmatpush3.msra.mxu0 %v1278_v58  ;;  %v4232_v50 = vpop.f32.mrf.mxu0  ;;  %v4267_v54 = vpop.f32.mrf.mxu1  ;;  %v4199_v57 = vadd.f32 %v4198_v52, %v4197_v46 }
 0x277   : > { %3506 = vmatprep.mubr.f32.mxu0 %v315_v59  ;;  %4966 = vmatpush3.msra.mxu1 %v1310_v60  ;;  %v1969_v56 = vadd.f32 %v4164_v51, %v1899_v53 }
 0x278   : > { %3576 = vmatprep.mubr.f32.mxu1 %v317_v61  ;;  %3507 = vmatmul.mubr.f32.vlgmr.msra.gmra.mxu0 %v314_v62  ;;  %v4233_v55 = vpop.f32.mrf.mxu0  ;;  %v4268_v60 = vpop.f32.mrf.mxu1 }
 0x279   : > { %3577 = vmatmul.mubr.f32.vlgmr.msra.gmra.mxu1 %v316_v63  ;;  %4987 = vmatprep.subr.mxu0 %v5285_v1  ;;  %v4234_v59 = vadd.f32 %v4233_v55, %v4232_v50  ;;  %v2039_v61 = vadd.f32 %v4199_v57, %v1969_v56 }
 0x27a   : > { %4988 = vmatpush3.msra.mxu0 %v3598_v0  ;;  %5019 = vmatprep.mubr.msk.f32.mxu0 %vm5286_vm0, %v5285_v1  ;;  %v4302_v58 = vpop.f32.mrf.mxu0  ;;  %v4337_v62 = vpop.f32.mrf.mxu1 }
 0x27b   : > { %4989 = vmatprep.subr.mxu0 %v5285_v1  ;;  %v2109_v0 = vadd.f32 %v4234_v59, %v2039_v61 }
 0x27c   : > { %4990 = vmatpush3.msra.mxu0 %v3597_v2  ;;  %v4303_v63 = vpop.f32.mrf.mxu0 }
 0x27d   : > { %4991 = vmatprep.subr.mxu0 %v5285_v1 }
 0x27e   : > { %4992 = vmatpush3.msra.mxu0 %v3596_v3  ;;  %v4372_v2 = vpop.f32.mrf.mxu0  ;;  %v4304_v3 = vadd.f32 %v4303_v63, %v4302_v58 }
 0x27f   : > { %4993 = vmatprep.subr.mxu0 %v5285_v1 }
 0x280   : > { %4994 = vmatpush3.msra.mxu0 %v3595_v4  ;;  %v4338_v4 = vpop.f32.mrf.mxu1 }
 0x281   : > { %4995 = vmatprep.subr.mxu0 %v5285_v1 }
 0x282   : > { %4996 = vmatpush3.msra.mxu0 %v3594_v5 }
 0x283   : > { %4997 = vmatprep.subr.mxu0 %v5285_v1 }
 0x284   : > { %4998 = vmatpush3.msra.mxu0 %v3593_v6  ;;  %v4407_v6 = vpop.f32.mrf.mxu1 }
 0x285   : > { %4999 = vmatprep.subr.mxu0 %v5285_v1 }
 0x286   : > { %5000 = vmatpush3.msra.mxu0 %v3592_v7  ;;  %v4373_v7 = vpop.f32.mrf.mxu0 }
 0x287   : > { %5001 = vmatprep.subr.mxu0 %v5285_v1 }
 0x288   : > { %5002 = vmatpush3.msra.mxu0 %v3591_v8 }
 0x289   : > { %5003 = vmatprep.subr.mxu0 %v5285_v1 }
 0x28a   : > { %5004 = vmatpush3.msra.mxu0 %v3590_v9  ;;  %v4339_v9 = vadd.f32 %v4338_v4, %v4337_v62 }
 0x28b   : > { %5005 = vmatprep.subr.mxu0 %v5285_v1 }
 0x28c   : > { %5006 = vmatpush3.msra.mxu0 %v3589_v10  ;;  %v4442_v10 = vpop.f32.mrf.mxu0 }
 0x28d   : > { %5007 = vmatprep.subr.mxu0 %v5285_v1 }
 0x28e   : > { %5008 = vmatpush3.msra.mxu0 %v3588_v11  ;;  %v4374_v11 = vadd.f32 %v4373_v7, %v4372_v2 }
 0x28f   : > { %5009 = vmatprep.subr.mxu0 %v5285_v1 }
 0x290   : > { %5010 = vmatpush3.msra.mxu0 %v3587_v12  ;;  %v4408_v12 = vpop.f32.mrf.mxu1 }
 0x291   : > { %5011 = vmatprep.subr.mxu0 %v5285_v1  ;;  %v4409_v17 = vadd.f32 %v4408_v12, %v4407_v6 }
 0x292   : > { %5012 = vmatpush3.msra.mxu0 %v3586_v13 }
 0x293   : > { %5013 = vmatprep.subr.mxu0 %v5285_v1 }
 0x294   : > { %5014 = vmatpush3.msra.mxu0 %v3585_v14  ;;  %v4477_v14 = vpop.f32.mrf.mxu1 }
 0x295   : > { %5015 = vmatprep.subr.mxu0 %v5285_v1 }
 0x296   : > { %5016 = vmatpush3.msra.mxu0 %v3584_v15  ;;  %v4443_v15 = vpop.f32.mrf.mxu0  ;;  %v4478_v20 = vpop.f32.mrf.mxu1 }
 0x297   : > { %5017 = vmatprep.subr.mxu0 %v5285_v1  ;;  %v4269_v1 = vadd.f32 %v4268_v60, %v4267_v54  ;;  %v4444_v19 = vadd.f32 %v4443_v15, %v4442_v10  ;;  %v4479_v25 = vadd.f32 %v4478_v20, %v4477_v14 }
 0x298   : > { %5018 = vmatpush3.msra.mxu0 %v3583_v16  ;;  %v4512_v18 = vpop.f32.mrf.mxu0  ;;  %v4547_v22 = vpop.f32.mrf.mxu1 }
 0x299   : > { %v2179_v5 = vadd.f32 %v4269_v1, %v2109_v0 }
 0x29a   : > { %v4513_v23 = vpop.f32.mrf.mxu0  ;;  %v4548_v28 = vpop.f32.mrf.mxu1 }
 0x29b   : > { %v2249_v8 = vadd.f32 %v4304_v3, %v2179_v5  ;;  %v4514_v27 = vadd.f32 %v4513_v23, %v4512_v18  ;;  %v4549_v33 = vadd.f32 %v4548_v28, %v4547_v22 }
 0x29c   : > { %v4582_v26 = vpop.f32.mrf.mxu0  ;;  %v4617_v30 = vpop.f32.mrf.mxu1 }
 0x29d   : > { %v2319_v13 = vadd.f32 %v4339_v9, %v2249_v8 }
 0x29e   : > { %v4583_v31 = vpop.f32.mrf.mxu0  ;;  %v4618_v36 = vpop.f32.mrf.mxu1 }
 0x29f   : > { %v2389_v16 = vadd.f32 %v4374_v11, %v2319_v13  ;;  %v4584_v35 = vadd.f32 %v4583_v31, %v4582_v26  ;;  %v4619_v41 = vadd.f32 %v4618_v36, %v4617_v30 }
 0x2a1   : > { %v2459_v21 = vadd.f32 %v4409_v17, %v2389_v16 }
 0x2a3   : > { %v2529_v24 = vadd.f32 %v4444_v19, %v2459_v21 }
 0x2a5   : > { %v2599_v29 = vadd.f32 %v4479_v25, %v2529_v24 }
 0x2a7   : > { %v2669_v32 = vadd.f32 %v4514_v27, %v2599_v29 }
 0x2a9   : > { %v2739_v37 = vadd.f32 %v4549_v33, %v2669_v32 }
 0x2ab   : > { %v2809_v40 = vadd.f32 %v4584_v35, %v2739_v37 }
 0x2ad   : > { %v2879_v45 = vadd.f32 %v4619_v41, %v2809_v40 }
 0x2b0   : > { %v4652_v34 = vpop.f32.mrf.mxu0 }
 0x2b2   : > { %v4687_v38 = vpop.f32.mrf.mxu1  ;;  %v4653_v39 = vpop.f32.mrf.mxu0 }
 0x2b3   : > { %v4654_v43 = vadd.f32 %v4653_v39, %v4652_v34 }
 0x2b4   : > { %v4688_v44 = vpop.f32.mrf.mxu1 }
 0x2b5   : > { %v2949_v48 = vadd.f32 %v4654_v43, %v2879_v45  ;;  %v4689_v49 = vadd.f32 %v4688_v44, %v4687_v38 }
 0x2b7   : > { %v3019_v53 = vadd.f32 %v4689_v49, %v2949_v48 }
 0x2d2   : > { %v4722_v42 = vpop.f32.mrf.mxu0 }
 0x2d4   : > { %v4757_v46 = vpop.f32.mrf.mxu1  ;;  %v4723_v47 = vpop.f32.mrf.mxu0 }
 0x2d5   : > { %v4724_v51 = vadd.f32 %v4723_v47, %v4722_v42 }
 0x2d6   : > { %v4758_v52 = vpop.f32.mrf.mxu1 }
 0x2d7   : > { %v3089_v56 = vadd.f32 %v4724_v51, %v3019_v53  ;;  %v4759_v57 = vadd.f32 %v4758_v52, %v4757_v46 }
 0x2d9   : > { %v3159_v61 = vadd.f32 %v4759_v57, %v3089_v56 }
 0x2f4   : > { %v4792_v50 = vpop.f32.mrf.mxu0 }
 0x2f6   : > { %v4827_v54 = vpop.f32.mrf.mxu1  ;;  %v4793_v55 = vpop.f32.mrf.mxu0 }
 0x2f7   : > { %v4794_v59 = vadd.f32 %v4793_v55, %v4792_v50 }
 0x2f8   : > { %v4828_v60 = vpop.f32.mrf.mxu1 }
 0x2f9   : > { %v3229_v0 = vadd.f32 %v4794_v59, %v3159_v61  ;;  %v4829_v1 = vadd.f32 %v4828_v60, %v4827_v54 }
 0x2fb   : > { %v3299_v4 = vadd.f32 %v4829_v1, %v3229_v0 }
 0x316   : > { %v4862_v58 = vpop.f32.mrf.mxu0 }
 0x318   : > { %v4897_v62 = vpop.f32.mrf.mxu1  ;;  %v4863_v63 = vpop.f32.mrf.mxu0 }
 0x319   : > { %v4864_v2 = vadd.f32 %v4863_v63, %v4862_v58 }
 0x31a   : > { %v4898_v3 = vpop.f32.mrf.mxu1 }
 0x31b   : > { %v3369_v5 = vadd.f32 %v4864_v2, %v3299_v4  ;;  %v4899_v6 = vadd.f32 %v4898_v3, %v4897_v62 }
 0x31d   : > { %v3439_v11 = vadd.f32 %v4899_v6, %v3369_v5 }
 0x338   : > { %v4932_v7 = vpop.f32.mrf.mxu0 }
 0x339   : > { %v4967_v8 = vpop.f32.mrf.mxu1 }
 0x33a   : > { %v4933_v9 = vpop.f32.mrf.mxu0 }
 0x33b   : > { %v4968_v10 = vpop.f32.mrf.mxu1  ;;  %v4934_v12 = vadd.f32 %v4933_v9, %v4932_v7 }
 0x33c   : > { %v4969_v14 = vadd.f32 %v4968_v10, %v4967_v8 }
 0x33d   : > { %v3509_v13 = vadd.f32 %v4934_v12, %v3439_v11 }
 0x33f   : > { %v3579_v15 = vadd.f32 %v4969_v14, %v3509_v13 }
 0x341   : > { %5020 = vmatmul.mubr.f32.vlgmr.msra.gmra.mxu0 %v3579_v15  ;;  %v3669_v16 = vmul.f32 %v3579_v15, %v3579_v15  ;;  %3582 = vst [vmem:[%s246_s23] sm:$0xff] %v3579_v15 }
 0x343   : > { %3670 = vadd.xlane.f32.xlu0 %v3669_v16 }
 0x344   : > { %5193 = shalt.err (!%p5190_p9)
}
 0x345   : > { %s5194_s28 = scalar_lea.hbm %s3693_s12, 128  ;;  %s5198_s10 = scalar_lea.hbm %s5579_s3, 256 }
 0x346   : > { %p5195_p13 = scmp.ne.s32.totalorder %s3693_s12, %s5194_s28  ;;  %p5199_p0 = scmp.lt.s32.totalorder %s3693_s12, %s5579_s3 }
 0x347   : > { %p5200_p4 = scmp.lt.s32.totalorder %s5198_s10, %s5194_s28 }
 0x348   : > { %p5196_p5 = pnand %p5195_p13, %p5596_p11 }
 0x349   : > { %p5201_p8 = por %p5200_p4, %p5199_p0 }
 0x34a   : > { %p5197_p10 = pneg %p5196_p5 }
 0x34c   : > { %p5202_p3 = pnand %p5201_p8, %p5197_p10 }
 0x34e   : > { %5205 = shalt.err (!%p5202_p3)
}
 0x34f   : > { %5032 = dma.vmem_to_hbm [thread:$0]  (%p5596_p11), %s3696_s5, 128, %s3693_s12, %s3677_s13  }
 0x350   : > { %s253_s7 = scalar_lea.vmem [#allocation9], %s3841_s21  ;;  %s5539_s27 = scalar_lea.hbm %s5580_s4, %s3845_s29 }
 0x351   : > { %s3708_s25 = sshll.u32 %s253_s7, 4  ;;  %s3682_s5 = scalar_lea.sflag [#allocation10], %s5432_s30  ;;  %s3709_s25 = int_to_ptr.vmem [resolvable:$true] %s3708_s25 }
 0x352   : > { %s5206_s12 = scalar_lea.vmem %s3709_s25, 128  ;;  %s5288_s21 = smov [#allocation9]  }
 0x353   : > { %p5207_p1 = scmp.ne.s32.totalorder %s3709_s25, %s5206_s12  ;;  %s5210_s13 = sshll.u32 %s5288_s21, 4  ;;  %s5211_s13 = int_to_ptr.vmem [resolvable:$false] %s5210_s13 }
 0x354   : > { %s5212_s28 = scalar_lea.vmem %s5211_s13, 256  ;;  %p5213_p12 = scmp.lt.s32.totalorder %s3709_s25, %s5211_s13 }
 0x355   : > { %p5208_p2 = pnand %p5207_p1, %p5596_p11  ;;  %p5214_p7 = scmp.lt.s32.totalorder %s5212_s28, %s5206_s12 }
 0x357   : > { %p5209_p6 = pneg %p5208_p2  ;;  %p5215_p9 = por %p5214_p7, %p5213_p12 }
 0x359   : > { %p5216_p13 = pnand %p5215_p9, %p5209_p6 }
 0x3cc   : > { %v3671_v17 = vpop.xlane.xlu0 %3670 }
 0x3cd   : > { %v3672_v18 = vmax.f32 %v3671_v17, 1e-24 }
 0x3cf   : > { %5098 = vrsqrt.f32 %v3672_v18 }
 0x3dc   : > { %v5099_v19 = vpop.eup %5098 }
 0x401   : > { %v3665_v20 = vpop.f32.mrf.mxu0 }
 0x402   : > { %v3674_v21 = vmul.f32 %v5099_v19, %v3665_v20 }
 0x403   : > { %v5021_v22 = vpop.f32.mrf.mxu0 }
 0x404   : > { %3675 = vst [vmem:[%s253_s7] sm:$0xff] %v3674_v21 }
 0x405   : > { %5219 = shalt.err (!%p5216_p13)
}
 0x406   : > { %s5220_s19 = scalar_lea.hbm %s5539_s27, 128  ;;  %s5224_s8 = scalar_lea.hbm %s5580_s4, 256 }
 0x407   : > { %p5221_p5 = scmp.ne.s32.totalorder %s5539_s27, %s5220_s19  ;;  %p5225_p4 = scmp.lt.s32.totalorder %s5539_s27, %s5580_s4 }
 0x408   : > { %p5226_p8 = scmp.lt.s32.totalorder %s5224_s8, %s5220_s19 }
 0x409   : > { %p5222_p10 = pnand %p5221_p5, %p5596_p11 }
 0x40a   : > { %p5227_p3 = por %p5226_p8, %p5225_p4 }
 0x40b   : > { %p5223_p0 = pneg %p5222_p10 }
 0x40d   : > { %p5228_p1 = pnand %p5227_p3, %p5223_p0 }
 0x40f   : > { %5231 = shalt.err (!%p5228_p1)
}
 0x410   : > { %5033 = dma.vmem_to_hbm [thread:$0]  (%p5596_p11), %s3709_s25, 128, %s5539_s27, %s3682_s5  }
 0x411 PF: > { %s3720_s23 = sand.u32 1, %s5266_s15   ;;  %p5597_p2 = scmp.ne.s32.totalorder %s5586_s22, 0 }
 0x412   : > { %p5598_p6 = scmp.ge.s32.totalorder %s5278_s18, 2  ;;  %s3721_s6 = scalar_lea.sflag [#allocation4], %s3720_s23 }
 0x414   : > { %p5048_p12 = pnand %p5598_p6, %p5597_p2 }
 0x416   : > { %p5049_p7 = pneg %p5048_p12 }
 0x418   : > { %5257 = dma.done.wait (%p5049_p7), %s3721_s6, 128  }
 0x419   : > { %5259 = vsyncadd (%p5049_p7), %s3721_s6, 4294967168  ;;  %s3730_s7 = scalar_lea.sflag [#allocation10], %s3720_s23 }
 0x41a   : > { %5261 = dma.done.wait (%p5049_p7), %s3730_s7, 128  }
 0x41b   : > { %5263 = vsyncadd (%p5049_p7), %s3730_s7, 4294967168  ;;  %p22_p11 = scmp.ge.s32.totalorder %s5386_s11, 4   ;;  %s5599_s15 = smov %s5270_s16 }
 0x41c   : > { %s5600_s16 = smov %s5274_s17  ;;  %s5601_s17 = smov %s5402_s20 }
 0x41d   : > { %s5602_s18 = smov %s5386_s11  ;;  %24 = sbr.rel (!%p22_p11) target bundleno = 8 (0x8), region = 102 }
 0x422   :  { %3735 = vsyncpa [#allocation3], 1 }
 0x423   :  { %3737 = vsyncpa [#allocation3 + $0x1], 1 }
 0x424   :  { %3738 = vsyncpa [#allocation6], 1 }
 0x425   :  { %3739 = vsyncpa [#allocation4], 1 }
 0x426   :  { %3741 = vsyncpa [#allocation4 + $0x1], 1 }
 0x427   :  { %3742 = vsyncpa [#allocation10], 1 }
 0x428   :  { %3744 = vsyncpa [#allocation10 + $0x1], 1 }

</bundles_post_ra>
